<compile_context>
chip_gen: v5e
topology: v5e:2x2
jax: 0.10.0
libtpu: 0.0.40
codegen_flags: <defaults>
</compile_context>

<pallas_src>
import math

import jax
import jax.numpy as jnp
from jax.experimental import pallas as pl
from jax.experimental.pallas import tpu as pltpu

# ----------------------------- config --------------------------------------
EMBED_DIM = 64        # module default: 768
PROJ_DIM = 32         # module default: 256
NUM_LAYERS = 2
NUM_HEADS = 4
HEAD_DIM = EMBED_DIM // NUM_HEADS
INTERMEDIATE = 128
VOCAB = 50
MAX_POS = 64
PAD_ID = 1            # RoBERTa padding_idx
LN_EPS = 1e-5
ATTN_SCALE = 1.0 / math.sqrt(HEAD_DIM)
OUT_WIDTH = 128       # lane-dense output slab: [pooled(64) | projection(32) | pad(32)]
MXU_DTYPE = jnp.bfloat16

# --- per-layer bf16 weight blob: (L, H, LW_WIDTH), 128-aligned column segments ---
WQ_OFF, WK_OFF, WV_OFF = 0, 128, 256     # padded QKV layout (each segment EMBED_DIM wide)
QKV_WIDTH = 384
WO_OFF = 384                              # attention output projection (H wide)
WI_OFF = 512                              # FFN intermediate weight (INTERMEDIATE wide)
WF_OFF = 640                              # FFN output weight stored TRANSPOSED: (H, INTERMEDIATE)
LW_WIDTH = 768

# --- per-layer f32 bias/LN blob: (L, 1, LV_WIDTH), 128-aligned segments ---
BQKV_OFF = 0                              # padded QKV bias (width 384, matches QKV layout)
BO_OFF = 384
BI_OFF = 512
BF_OFF = 640
LN1G_OFF, LN1B_OFF = 768, 896
LN2G_OFF, LN2B_OFF = 1024, 1152
LV_WIDTH = 1280

# --- head bf16 weight blob: (H, HW_WIDTH) ---
POOLW_OFF, P1W_OFF, P2W_OFF = 0, 128, 256
HW_WIDTH = 384

# --- head f32 vector blob: (1, HV_WIDTH) ---
EMBG_OFF, EMBB_OFF = 0, 128
POOLB_OFF, P1B_OFF, P2B_OFF = 256, 384, 512
HV_WIDTH = 640


# ----------------------------- in-kernel helpers ----------------------------
def _layernorm(x, g, b):
    mu = jnp.mean(x, axis=-1, keepdims=True)
    xc = x - mu
    var = jnp.mean(xc * xc, axis=-1, keepdims=True)
    return xc * jax.lax.rsqrt(var + LN_EPS) * g + b


def _gelu(x):
    # TODO(synk): HF RoBERTa uses exact (erf) GELU; tanh approximation kept for Mosaic robustness.
    return 0.5 * x * (1.0 + jnp.tanh(0.7978845608028654 * (x + 0.044715 * x * x * x)))


# ----------------------------- parameters ----------------------------------
def _dense(key, fan_in, fan_out):
    k1, k2 = jax.random.split(key)
    w = jax.random.normal(k1, (fan_in, fan_out), jnp.float32) / math.sqrt(fan_in)
    b = jax.random.normal(k2, (fan_out,), jnp.float32) * 0.01
    return w, b


def init_params(key):
    H = EMBED_DIM
    keys = jax.random.split(key, 4 + NUM_LAYERS)
    p = {}
    p["word_emb"] = jax.random.normal(keys[0], (VOCAB, H), jnp.float32) * 0.02
    p["pos_emb"] = jax.random.normal(keys[1], (MAX_POS, H), jnp.float32) * 0.02
    p["type_emb"] = jax.random.normal(keys[2], (1, H), jnp.float32) * 0.02

    lw_list, lv_list = [], []
    for l in range(NUM_LAYERS):
        lk = jax.random.split(keys[3 + l], 6)
        qw, qb = _dense(lk[0], H, H)
        kw, kb = _dense(lk[1], H, H)
        vw, vb = _dense(lk[2], H, H)
        ow, ob = _dense(lk[3], H, H)
        iw, ib = _dense(lk[4], H, INTERMEDIATE)
        fw, fb = _dense(lk[5], INTERMEDIATE, H)

        w = jnp.zeros((H, LW_WIDTH), jnp.float32)
        w = w.at[:, WQ_OFF:WQ_OFF + H].set(qw * ATTN_SCALE)     # attention scale folded in
        w = w.at[:, WK_OFF:WK_OFF + H].set(kw)
        w = w.at[:, WV_OFF:WV_OFF + H].set(vw)
        w = w.at[:, WO_OFF:WO_OFF + H].set(ow)
        w = w.at[:, WI_OFF:WI_OFF + INTERMEDIATE].set(iw)
        w = w.at[:, WF_OFF:WF_OFF + INTERMEDIATE].set(fw.T)     # stored transposed

        v = jnp.zeros((1, LV_WIDTH), jnp.float32)
        v = v.at[0, BQKV_OFF + WQ_OFF:BQKV_OFF + WQ_OFF + H].set(qb * ATTN_SCALE)
        v = v.at[0, BQKV_OFF + WK_OFF:BQKV_OFF + WK_OFF + H].set(kb)
        v = v.at[0, BQKV_OFF + WV_OFF:BQKV_OFF + WV_OFF + H].set(vb)
        v = v.at[0, BO_OFF:BO_OFF + H].set(ob)
        v = v.at[0, BI_OFF:BI_OFF + INTERMEDIATE].set(ib)
        v = v.at[0, BF_OFF:BF_OFF + H].set(fb)
        v = v.at[0, LN1G_OFF:LN1G_OFF + H].set(jnp.ones((H,), jnp.float32))
        v = v.at[0, LN2G_OFF:LN2G_OFF + H].set(jnp.ones((H,), jnp.float32))
        # LN betas remain zero (blob initialized to zero).
        lw_list.append(w)
        lv_list.append(v)

    p["layer_w"] = jnp.stack(lw_list).astype(MXU_DTYPE)   # (L, H, 768) bf16
    p["layer_v"] = jnp.stack(lv_list)                     # (L, 1, 1280) f32

    hk = jax.random.split(keys[3 + NUM_LAYERS], 3)
    pw, pb = _dense(hk[0], H, H)           # roberta.pooler
    w1, b1 = _dense(hk[1], H, H)           # projection[0]
    w2, b2 = _dense(hk[2], H, PROJ_DIM)    # projection[2]

    hw = jnp.zeros((H, HW_WIDTH), jnp.float32)
    hw = hw.at[:, POOLW_OFF:POOLW_OFF + H].set(pw)
    hw = hw.at[:, P1W_OFF:P1W_OFF + H].set(w1)
    hw = hw.at[:, P2W_OFF:P2W_OFF + PROJ_DIM].set(w2)

    hv = jnp.zeros((1, HV_WIDTH), jnp.float32)
    hv = hv.at[0, EMBG_OFF:EMBG_OFF + H].set(jnp.ones((H,), jnp.float32))  # emb LN gamma
    hv = hv.at[0, POOLB_OFF:POOLB_OFF + H].set(pb)
    hv = hv.at[0, P1B_OFF:P1B_OFF + H].set(b1)
    hv = hv.at[0, P2B_OFF:P2B_OFF + PROJ_DIM].set(b2)

    p["head_w"] = hw.astype(MXU_DTYPE)     # (H, 384) bf16
    p["head_v"] = hv                       # (1, 640) f32
    return p


# ----------------------------- forward -------------------------------------
def roberta_embedding_model(input_ids, attention_mask, params, rows_per_step=None):
    B, S = input_ids.shape
    H = EMBED_DIM
    if rows_per_step is None:
        rows_per_step = B      # single grid step (v5e/v6e); on v7x use B // 2 for both TCs
    assert B % rows_per_step == 0
    rps = rows_per_step
    steps = B // rps
    N = rps * S                # token rows per grid step
    BH = rps * NUM_HEADS       # batched-heads axis per grid step

    # --- embeddings (table gathers are glue, plain JAX) ---
    # TODO(synk): for the full 768-dim config, move this gather in-kernel (resident table
    # + scalar-prefetched ids) to avoid the HBM round-trip of the (B,S,H) activation.
    not_pad = (input_ids != PAD_ID).astype(jnp.int32)
    position_ids = jnp.cumsum(not_pad, axis=1) * not_pad + PAD_ID    # RoBERTa position ids
    token_type_ids = jnp.zeros_like(input_ids)
    emb = (params["word_emb"][input_ids]
           + params["pos_emb"][position_ids]
           + params["type_emb"][token_type_ids])                     # (B, S, H) f32
    emb2d = emb.reshape(B * S, H).astype(MXU_DTYPE)                  # bf16 into the kernel

    add_mask = (1.0 - attention_mask.astype(jnp.float32)) * -1e9     # (B, S) additive key mask
    mask_bh = jnp.broadcast_to(add_mask[:, None, :],
                               (B, NUM_HEADS, S)).reshape(B * NUM_HEADS, S)

    def kernel(emb_ref, mask_ref, lw_ref, lv_ref, hw_ref, hv_ref, out_ref):
        x = emb_ref[...].astype(jnp.float32)                          # (N, H)
        h = _layernorm(x, hv_ref[:, EMBG_OFF:EMBG_OFF + H],
                       hv_ref[:, EMBB_OFF:EMBB_OFF + H])
        m = mask_ref[...]                                             # (BH, S)
        # dropout: eval-mode no-op

        def to_heads(t):                                              # (N, H) f32 -> (BH, S, HD) bf16
            t = t.reshape(rps, S, NUM_HEADS, HEAD_DIM)
            t = jnp.transpose(t, (0, 2, 1, 3))
            return t.reshape(BH, S, HEAD_DIM).astype(MXU_DTYPE)

        for l in range(NUM_LAYERS):                                   # statically unrolled
            resid = h
            # fused QKV: one matmul, 128-lane-aligned Q/K/V output segments
            qkv = (jnp.dot(h.astype(MXU_DTYPE), lw_ref[l, :, 0:QKV_WIDTH],
                           preferred_element_type=jnp.float32)
                   + lv_ref[l, :, BQKV_OFF:BQKV_OFF + QKV_WIDTH])     # (N, 384)
            q3 = to_heads(qkv[:, WQ_OFF:WQ_OFF + H])                  # scale already folded
            k3 = to_heads(qkv[:, WK_OFF:WK_OFF + H])
            v3 = to_heads(qkv[:, WV_OFF:WV_OFF + H])

            # all heads & batch rows in one batched dot_general
            s = jnp.einsum('bqd,bkd->bqk', q3, k3,
                           preferred_element_type=jnp.float32)        # (BH, S, S)
            s = s + m[:, None, :]
            s = s - jnp.max(s, axis=-1, keepdims=True)
            p = jnp.exp(s)
            p = p * pl.reciprocal(jnp.sum(p, axis=-1, keepdims=True), approx=True)
            ctx3 = jnp.einsum('bqk,bkd->bqd', p.astype(MXU_DTYPE), v3,
                              preferred_element_type=jnp.float32)     # (BH, S, HD)
            ctx = jnp.transpose(ctx3.reshape(rps, NUM_HEADS, S, HEAD_DIM),
                                (0, 2, 1, 3)).reshape(N, H).astype(MXU_DTYPE)

            attn = (jnp.dot(ctx, lw_ref[l, :, WO_OFF:WO_OFF + H],
                            preferred_element_type=jnp.float32)
                    + lv_ref[l, :, BO_OFF:BO_OFF + H])
            h1 = _layernorm(attn + resid,
                            lv_ref[l, :, LN1G_OFF:LN1G_OFF + H],
                            lv_ref[l, :, LN1B_OFF:LN1B_OFF + H])

            ff = _gelu(jnp.dot(h1.astype(MXU_DTYPE),
                               lw_ref[l, :, WI_OFF:WI_OFF + INTERMEDIATE],
                               preferred_element_type=jnp.float32)
                       + lv_ref[l, :, BI_OFF:BI_OFF + INTERMEDIATE])  # (N, I)
            ff2 = (jax.lax.dot_general(ff.astype(MXU_DTYPE),
                                       lw_ref[l, :, WF_OFF:WF_OFF + INTERMEDIATE],
                                       (((1,), (1,)), ((), ())),
                                       preferred_element_type=jnp.float32)
                   + lv_ref[l, :, BF_OFF:BF_OFF + H])                 # (N, H)
            h = _layernorm(ff2 + h1,
                           lv_ref[l, :, LN2G_OFF:LN2G_OFF + H],
                           lv_ref[l, :, LN2B_OFF:LN2B_OFF + H])

        # pooler + projection head on the CLS rows, chained in VMEM
        cls = h.reshape(rps, S, H)[:, 0, :]                                    # (rps, H)
        pooled = jnp.tanh(jnp.dot(cls.astype(MXU_DTYPE),
                                  hw_ref[:, POOLW_OFF:POOLW_OFF + H],
                                  preferred_element_type=jnp.float32)
                          + hv_ref[:, POOLB_OFF:POOLB_OFF + H])
        z = jnp.maximum(jnp.dot(pooled.astype(MXU_DTYPE),
                                hw_ref[:, P1W_OFF:P1W_OFF + H],
                                preferred_element_type=jnp.float32)
                        + hv_ref[:, P1B_OFF:P1B_OFF + H], 0.0)
        proj = (jnp.dot(z.astype(MXU_DTYPE),
                        hw_ref[:, P2W_OFF:P2W_OFF + PROJ_DIM],
                        preferred_element_type=jnp.float32)
                + hv_ref[:, P2B_OFF:P2B_OFF + PROJ_DIM])

        pad = jnp.zeros((rps, OUT_WIDTH - H - PROJ_DIM), jnp.float32)
        out_ref[...] = jnp.concatenate([pooled, proj, pad], axis=-1)           # (rps, 128)

    in_specs = [
        pl.BlockSpec((N, H), lambda i: (i, 0)),                     # activations (per step)
        pl.BlockSpec((BH, S), lambda i: (i, 0)),                    # additive mask (per step)
        pl.BlockSpec((NUM_LAYERS, H, LW_WIDTH), lambda i: (0, 0, 0)),   # resident weight blob
        pl.BlockSpec((NUM_LAYERS, 1, LV_WIDTH), lambda i: (0, 0, 0)),   # resident bias/LN blob
        pl.BlockSpec((H, HW_WIDTH), lambda i: (0, 0)),              # resident head weights
        pl.BlockSpec((1, HV_WIDTH), lambda i: (0, 0)),              # resident head vectors
    ]
    out_spec = pl.BlockSpec((rps, OUT_WIDTH), lambda i: (i, 0))

    args = (emb2d, mask_bh,
            params["layer_w"], params["layer_v"], params["head_w"], params["head_v"])

    T = B * S
    flops = int(NUM_LAYERS * (2 * T * H * QKV_WIDTH
                              + 4 * B * NUM_HEADS * S * S * HEAD_DIM
                              + 2 * T * H * H
                              + 4 * T * H * INTERMEDIATE)
                + 2 * B * (2 * H * H + H * PROJ_DIM))
    transcendentals = int(NUM_LAYERS * (B * NUM_HEADS * S * S + T * INTERMEDIATE) + B * H)
    bytes_accessed = int(sum(int(a.size) * a.dtype.itemsize for a in args)
                         + B * OUT_WIDTH * 4)

    out = pl.pallas_call(
        kernel,
        grid=(steps,),
        in_specs=in_specs,
        out_specs=out_spec,
        out_shape=jax.ShapeDtypeStruct((B, OUT_WIDTH), jnp.float32),
        compiler_params=pltpu.CompilerParams(
            dimension_semantics=("parallel" if steps > 1 else "arbitrary",)),
        cost_estimate=pl.CostEstimate(flops=flops,
                                      transcendentals=transcendentals,
                                      bytes_accessed=bytes_accessed),
    )(*args)

    pooled = out[:, :H]                              # pooler_output  (B, H)
    projection = out[:, H:H + PROJ_DIM]              # projection     (B, P)
    return pooled, projection


# ----------------------------- main -----------------------------------------
if __name__ == "__main__":
    key = jax.random.PRNGKey(0)
    pkey, dkey = jax.random.split(key)
    params = init_params(pkey)

    B, S = 2, 8
    input_ids = jax.random.randint(dkey, (B, S), 2, VOCAB, dtype=jnp.int32)
    input_ids = input_ids.at[1, 5:].set(PAD_ID)        # some padding to exercise the mask
    attention_mask = (input_ids != PAD_ID).astype(jnp.int32)

    fwd = jax.jit(roberta_embedding_model)
    pooled, projection = fwd(input_ids, attention_mask, params)
    jax.block_until_ready((pooled, projection))

    assert pooled.shape == (B, EMBED_DIM)
    assert projection.shape == (B, PROJ_DIM)
    assert bool(jnp.all(jnp.isfinite(pooled))) and bool(jnp.all(jnp.isfinite(projection)))
    print("KERNEL_OK")
</pallas_src>

<mosaic_0001>
module attributes {stable_mosaic.version = 11 : i64} {
  func.func @kernel(%arg0: i32, %arg1: memref<16x64xbf16, #tpu.memory_space<vmem>>, %arg2: memref<8x8xf32, #tpu.memory_space<vmem>>, %arg3: memref<2x64x768xbf16, #tpu.memory_space<vmem>>, %arg4: memref<2x1x1280xf32, #tpu.memory_space<vmem>>, %arg5: memref<64x384xbf16, #tpu.memory_space<vmem>>, %arg6: memref<1x640xf32, #tpu.memory_space<vmem>>, %arg7: memref<2x128xf32, #tpu.memory_space<vmem>>) attributes {dimension_semantics = [#tpu.dimension_semantics<arbitrary>], iteration_bounds = array<i64: 1>, scalar_prefetch = 0 : i64, scratch_operands = 0 : i64, tpu.core_type = #tpu.core_type<tc>, window_params = [{transform_indices = @transform_0, window_bounds = array<i64: 16, 64>}, {transform_indices = @transform_1, window_bounds = array<i64: 8, 8>}, {pipeline_mode = #tpu.pipeline_mode<synchronous>, transform_indices = @transform_2, window_bounds = array<i64: 2, 64, 768>}, {pipeline_mode = #tpu.pipeline_mode<synchronous>, transform_indices = @transform_3, window_bounds = array<i64: 2, 1, 1280>}, {pipeline_mode = #tpu.pipeline_mode<synchronous>, transform_indices = @transform_4, window_bounds = array<i64: 64, 384>}, {pipeline_mode = #tpu.pipeline_mode<synchronous>, transform_indices = @transform_5, window_bounds = array<i64: 1, 640>}, {transform_indices = @transform_6, window_bounds = array<i64: 2, 128>}]} {
    %c0 = arith.constant 0 : index
    %c0_0 = arith.constant 0 : index
    %0 = vector.load %arg1[%c0, %c0_0] : memref<16x64xbf16, #tpu.memory_space<vmem>>, vector<16x64xbf16>
    %1 = arith.extf %0 : vector<16x64xbf16> to vector<16x64xf32>
    %c0_1 = arith.constant 0 : index
    %c0_2 = arith.constant 0 : index
    %2 = vector.load %arg6[%c0_1, %c0_2] : memref<1x640xf32, #tpu.memory_space<vmem>>, vector<1x64xf32>
    %c0_3 = arith.constant 0 : index
    %c128 = arith.constant 128 : index
    %3 = vector.load %arg6[%c0_3, %c128] : memref<1x640xf32, #tpu.memory_space<vmem>>, vector<1x64xf32>
    %cst = arith.constant dense<0.000000e+00> : vector<16xf32>
    %4 = vector.multi_reduction <add>, %1, %cst [1] : vector<16x64xf32> to vector<16xf32>
    %5 = vector.shape_cast %4 : vector<16xf32> to vector<16x1xf32>
    %cst_4 = arith.constant 6.400000e+01 : f32
    %6 = vector.broadcast %cst_4 : f32 to vector<16x1xf32>
    %7 = arith.divf %5, %6 : vector<16x1xf32>
    %8 = vector.broadcast %7 : vector<16x1xf32> to vector<16x64xf32>
    %9 = arith.subf %1, %8 : vector<16x64xf32>
    %10 = arith.mulf %9, %9 : vector<16x64xf32>
    %cst_5 = arith.constant dense<0.000000e+00> : vector<16xf32>
    %11 = vector.multi_reduction <add>, %10, %cst_5 [1] : vector<16x64xf32> to vector<16xf32>
    %12 = vector.shape_cast %11 : vector<16xf32> to vector<16x1xf32>
    %cst_6 = arith.constant 6.400000e+01 : f32
    %13 = vector.broadcast %cst_6 : f32 to vector<16x1xf32>
    %14 = arith.divf %12, %13 : vector<16x1xf32>
    %cst_7 = arith.constant 9.99999974E-6 : f32
    %15 = vector.broadcast %cst_7 : f32 to vector<16x1xf32>
    %16 = arith.addf %14, %15 : vector<16x1xf32>
    %17 = math.rsqrt %16 : vector<16x1xf32>
    %18 = vector.broadcast %17 : vector<16x1xf32> to vector<16x64xf32>
    %19 = arith.mulf %9, %18 : vector<16x64xf32>
    %20 = vector.broadcast %2 : vector<1x64xf32> to vector<16x64xf32>
    %21 = arith.mulf %19, %20 : vector<16x64xf32>
    %22 = vector.broadcast %3 : vector<1x64xf32> to vector<16x64xf32>
    %23 = arith.addf %21, %22 : vector<16x64xf32>
    %c0_8 = arith.constant 0 : index
    %c0_9 = arith.constant 0 : index
    %24 = vector.load %arg2[%c0_8, %c0_9] : memref<8x8xf32, #tpu.memory_space<vmem>>, vector<8x8xf32>
    %25 = arith.truncf %23 : vector<16x64xf32> to vector<16x64xbf16>
    %c0_10 = arith.constant 0 : index
    %c0_11 = arith.constant 0 : index
    %c0_12 = arith.constant 0 : index
    %26 = vector.load %arg3[%c0_10, %c0_11, %c0_12] : memref<2x64x768xbf16, #tpu.memory_space<vmem>>, vector<1x64x384xbf16>
    %27 = vector.shape_cast %26 : vector<1x64x384xbf16> to vector<64x384xbf16>
    %cst_13 = arith.constant dense<0.000000e+00> : vector<16x384xf32>
    %28 = tpu.matmul %25, %27, %cst_13 {dimension_numbers = #tpu.dot_dimension_numbers<[1], [0], [0], [1], [0, 0, 1, 1], [], []>} : vector<16x64xbf16>, vector<64x384xbf16>, vector<16x384xf32> -> vector<16x384xf32>
    %c0_14 = arith.constant 0 : index
    %c0_15 = arith.constant 0 : index
    %c0_16 = arith.constant 0 : index
    %29 = vector.load %arg4[%c0_14, %c0_15, %c0_16] : memref<2x1x1280xf32, #tpu.memory_space<vmem>>, vector<1x1x384xf32>
    %30 = vector.shape_cast %29 : vector<1x1x384xf32> to vector<1x384xf32>
    %31 = vector.broadcast %30 : vector<1x384xf32> to vector<16x384xf32>
    %32 = arith.addf %28, %31 : vector<16x384xf32>
    %33 = vector.extract_strided_slice %32 {offsets = [0, 0], sizes = [16, 64], strides = [1, 1]} : vector<16x384xf32> to vector<16x64xf32>
    %34 = vector.shape_cast %33 : vector<16x64xf32> to vector<2x8x4x16xf32>
    %35 = tpu.transpose %34, [0, 2, 1, 3] : vector<2x8x4x16xf32> -> vector<2x4x8x16xf32>
    %36 = vector.shape_cast %35 : vector<2x4x8x16xf32> to vector<8x8x16xf32>
    %37 = arith.truncf %36 : vector<8x8x16xf32> to vector<8x8x16xbf16>
    %38 = vector.extract_strided_slice %32 {offsets = [0, 128], sizes = [16, 64], strides = [1, 1]} : vector<16x384xf32> to vector<16x64xf32>
    %39 = vector.shape_cast %38 : vector<16x64xf32> to vector<2x8x4x16xf32>
    %40 = tpu.transpose %39, [0, 2, 1, 3] : vector<2x8x4x16xf32> -> vector<2x4x8x16xf32>
    %41 = vector.shape_cast %40 : vector<2x4x8x16xf32> to vector<8x8x16xf32>
    %42 = arith.truncf %41 : vector<8x8x16xf32> to vector<8x8x16xbf16>
    %43 = vector.extract_strided_slice %32 {offsets = [0, 256], sizes = [16, 64], strides = [1, 1]} : vector<16x384xf32> to vector<16x64xf32>
    %44 = vector.shape_cast %43 : vector<16x64xf32> to vector<2x8x4x16xf32>
    %45 = tpu.transpose %44, [0, 2, 1, 3] : vector<2x8x4x16xf32> -> vector<2x4x8x16xf32>
    %46 = vector.shape_cast %45 : vector<2x4x8x16xf32> to vector<8x8x16xf32>
    %47 = arith.truncf %46 : vector<8x8x16xf32> to vector<8x8x16xbf16>
    "tpu.trace_start"() <{level = 10 : i32, message = "bqd,bkd->bqk"}> : () -> ()
    %cst_17 = arith.constant dense<0.000000e+00> : vector<8x8x8xf32>
    %48 = tpu.matmul %37, %42, %cst_17 {dimension_numbers = #tpu.dot_dimension_numbers<[2], [2], [1], [1], [0, 0, 0, 1, 1, 1], [0], [0]>} : vector<8x8x16xbf16>, vector<8x8x16xbf16>, vector<8x8x8xf32> -> vector<8x8x8xf32>
    "tpu.trace_stop"() : () -> ()
    %49 = vector.shape_cast %24 : vector<8x8xf32> to vector<8x1x8xf32>
    %50 = vector.broadcast %49 : vector<8x1x8xf32> to vector<8x8x8xf32>
    %51 = arith.addf %48, %50 : vector<8x8x8xf32>
    %cst_18 = arith.constant dense<0xFF800000> : vector<8x8xf32>
    %52 = vector.multi_reduction <maximumf>, %51, %cst_18 [2] : vector<8x8x8xf32> to vector<8x8xf32>
    %53 = vector.shape_cast %52 : vector<8x8xf32> to vector<8x8x1xf32>
    %54 = vector.broadcast %53 : vector<8x8x1xf32> to vector<8x8x8xf32>
    %55 = arith.subf %51, %54 : vector<8x8x8xf32>
    %56 = math.exp %55 : vector<8x8x8xf32>
    %cst_19 = arith.constant dense<0.000000e+00> : vector<8x8xf32>
    %57 = vector.multi_reduction <add>, %56, %cst_19 [2] : vector<8x8x8xf32> to vector<8x8xf32>
    %58 = vector.shape_cast %57 : vector<8x8xf32> to vector<8x8x1xf32>
    %59 = tpu.reciprocal %58 {approx = true} : vector<8x8x1xf32> -> vector<8x8x1xf32>
    %60 = vector.broadcast %59 : vector<8x8x1xf32> to vector<8x8x8xf32>
    %61 = arith.mulf %56, %60 : vector<8x8x8xf32>
    %62 = arith.truncf %61 : vector<8x8x8xf32> to vector<8x8x8xbf16>
    "tpu.trace_start"() <{level = 10 : i32, message = "bqk,bkd->bqd"}> : () -> ()
    %cst_20 = arith.constant dense<0.000000e+00> : vector<8x8x16xf32>
    %63 = tpu.matmul %62, %47, %cst_20 {dimension_numbers = #tpu.dot_dimension_numbers<[2], [1], [1], [2], [0, 0, 0, 1, 1, 2], [0], [0]>} : vector<8x8x8xbf16>, vector<8x8x16xbf16>, vector<8x8x16xf32> -> vector<8x8x16xf32>
    "tpu.trace_stop"() : () -> ()
    %64 = vector.shape_cast %63 : vector<8x8x16xf32> to vector<2x4x8x16xf32>
    %65 = tpu.transpose %64, [0, 2, 1, 3] : vector<2x4x8x16xf32> -> vector<2x8x4x16xf32>
    %66 = vector.shape_cast %65 : vector<2x8x4x16xf32> to vector<16x64xf32>
    %67 = arith.truncf %66 : vector<16x64xf32> to vector<16x64xbf16>
    %c0_21 = arith.constant 0 : index
    %c0_22 = arith.constant 0 : index
    %c384 = arith.constant 384 : index
    %68 = vector.load %arg3[%c0_21, %c0_22, %c384] : memref<2x64x768xbf16, #tpu.memory_space<vmem>>, vector<1x64x64xbf16>
    %69 = vector.shape_cast %68 : vector<1x64x64xbf16> to vector<64x64xbf16>
    %cst_23 = arith.constant dense<0.000000e+00> : vector<16x64xf32>
    %70 = tpu.matmul %67, %69, %cst_23 {dimension_numbers = #tpu.dot_dimension_numbers<[1], [0], [0], [1], [0, 0, 1, 1], [], []>} : vector<16x64xbf16>, vector<64x64xbf16>, vector<16x64xf32> -> vector<16x64xf32>
    %c0_24 = arith.constant 0 : index
    %c0_25 = arith.constant 0 : index
    %c384_26 = arith.constant 384 : index
    %71 = vector.load %arg4[%c0_24, %c0_25, %c384_26] : memref<2x1x1280xf32, #tpu.memory_space<vmem>>, vector<1x1x64xf32>
    %72 = vector.shape_cast %71 : vector<1x1x64xf32> to vector<1x64xf32>
    %73 = vector.broadcast %72 : vector<1x64xf32> to vector<16x64xf32>
    %74 = arith.addf %70, %73 : vector<16x64xf32>
    %75 = arith.addf %74, %23 : vector<16x64xf32>
    %c0_27 = arith.constant 0 : index
    %c0_28 = arith.constant 0 : index
    %c768 = arith.constant 768 : index
    %76 = vector.load %arg4[%c0_27, %c0_28, %c768] : memref<2x1x1280xf32, #tpu.memory_space<vmem>>, vector<1x1x64xf32>
    %77 = vector.shape_cast %76 : vector<1x1x64xf32> to vector<1x64xf32>
    %c0_29 = arith.constant 0 : index
    %c0_30 = arith.constant 0 : index
    %c896 = arith.constant 896 : index
    %78 = vector.load %arg4[%c0_29, %c0_30, %c896] : memref<2x1x1280xf32, #tpu.memory_space<vmem>>, vector<1x1x64xf32>
    %79 = vector.shape_cast %78 : vector<1x1x64xf32> to vector<1x64xf32>
    %cst_31 = arith.constant dense<0.000000e+00> : vector<16xf32>
    %80 = vector.multi_reduction <add>, %75, %cst_31 [1] : vector<16x64xf32> to vector<16xf32>
    %81 = vector.shape_cast %80 : vector<16xf32> to vector<16x1xf32>
    %cst_32 = arith.constant 6.400000e+01 : f32
    %82 = vector.broadcast %cst_32 : f32 to vector<16x1xf32>
    %83 = arith.divf %81, %82 : vector<16x1xf32>
    %84 = vector.broadcast %83 : vector<16x1xf32> to vector<16x64xf32>
    %85 = arith.subf %75, %84 : vector<16x64xf32>
    %86 = arith.mulf %85, %85 : vector<16x64xf32>
    %cst_33 = arith.constant dense<0.000000e+00> : vector<16xf32>
    %87 = vector.multi_reduction <add>, %86, %cst_33 [1] : vector<16x64xf32> to vector<16xf32>
    %88 = vector.shape_cast %87 : vector<16xf32> to vector<16x1xf32>
    %cst_34 = arith.constant 6.400000e+01 : f32
    %89 = vector.broadcast %cst_34 : f32 to vector<16x1xf32>
    %90 = arith.divf %88, %89 : vector<16x1xf32>
    %cst_35 = arith.constant 9.99999974E-6 : f32
    %91 = vector.broadcast %cst_35 : f32 to vector<16x1xf32>
    %92 = arith.addf %90, %91 : vector<16x1xf32>
    %93 = math.rsqrt %92 : vector<16x1xf32>
    %94 = vector.broadcast %93 : vector<16x1xf32> to vector<16x64xf32>
    %95 = arith.mulf %85, %94 : vector<16x64xf32>
    %96 = vector.broadcast %77 : vector<1x64xf32> to vector<16x64xf32>
    %97 = arith.mulf %95, %96 : vector<16x64xf32>
    %98 = vector.broadcast %79 : vector<1x64xf32> to vector<16x64xf32>
    %99 = arith.addf %97, %98 : vector<16x64xf32>
    %100 = arith.truncf %99 : vector<16x64xf32> to vector<16x64xbf16>
    %c0_36 = arith.constant 0 : index
    %c0_37 = arith.constant 0 : index
    %c512 = arith.constant 512 : index
    %101 = vector.load %arg3[%c0_36, %c0_37, %c512] : memref<2x64x768xbf16, #tpu.memory_space<vmem>>, vector<1x64x128xbf16>
    %102 = vector.shape_cast %101 : vector<1x64x128xbf16> to vector<64x128xbf16>
    %cst_38 = arith.constant dense<0.000000e+00> : vector<16x128xf32>
    %103 = tpu.matmul %100, %102, %cst_38 {dimension_numbers = #tpu.dot_dimension_numbers<[1], [0], [0], [1], [0, 0, 1, 1], [], []>} : vector<16x64xbf16>, vector<64x128xbf16>, vector<16x128xf32> -> vector<16x128xf32>
    %c0_39 = arith.constant 0 : index
    %c0_40 = arith.constant 0 : index
    %c512_41 = arith.constant 512 : index
    %104 = vector.load %arg4[%c0_39, %c0_40, %c512_41] : memref<2x1x1280xf32, #tpu.memory_space<vmem>>, vector<1x1x128xf32>
    %105 = vector.shape_cast %104 : vector<1x1x128xf32> to vector<1x128xf32>
    %106 = vector.broadcast %105 : vector<1x128xf32> to vector<16x128xf32>
    %107 = arith.addf %103, %106 : vector<16x128xf32>
    %cst_42 = arith.constant 5.000000e-01 : f32
    %108 = vector.broadcast %cst_42 : f32 to vector<16x128xf32>
    %109 = arith.mulf %108, %107 : vector<16x128xf32>
    %cst_43 = arith.constant 4.471500e-02 : f32
    %110 = vector.broadcast %cst_43 : f32 to vector<16x128xf32>
    %111 = arith.mulf %110, %107 : vector<16x128xf32>
    %112 = arith.mulf %111, %107 : vector<16x128xf32>
    %113 = arith.mulf %112, %107 : vector<16x128xf32>
    %114 = arith.addf %107, %113 : vector<16x128xf32>
    %cst_44 = arith.constant 0.797884583 : f32
    %115 = vector.broadcast %cst_44 : f32 to vector<16x128xf32>
    %116 = arith.mulf %115, %114 : vector<16x128xf32>
    %117 = math.tanh %116 : vector<16x128xf32>
    %cst_45 = arith.constant 1.000000e+00 : f32
    %118 = vector.broadcast %cst_45 : f32 to vector<16x128xf32>
    %119 = arith.addf %118, %117 : vector<16x128xf32>
    %120 = arith.mulf %109, %119 : vector<16x128xf32>
    %121 = arith.truncf %120 : vector<16x128xf32> to vector<16x128xbf16>
    %c0_46 = arith.constant 0 : index
    %c0_47 = arith.constant 0 : index
    %c640 = arith.constant 640 : index
    %122 = vector.load %arg3[%c0_46, %c0_47, %c640] : memref<2x64x768xbf16, #tpu.memory_space<vmem>>, vector<1x64x128xbf16>
    %123 = vector.shape_cast %122 : vector<1x64x128xbf16> to vector<64x128xbf16>
    %cst_48 = arith.constant dense<0.000000e+00> : vector<16x64xf32>
    %124 = tpu.matmul %121, %123, %cst_48 {dimension_numbers = #tpu.dot_dimension_numbers<[1], [1], [0], [0], [0, 0, 1, 0], [], []>} : vector<16x128xbf16>, vector<64x128xbf16>, vector<16x64xf32> -> vector<16x64xf32>
    %c0_49 = arith.constant 0 : index
    %c0_50 = arith.constant 0 : index
    %c640_51 = arith.constant 640 : index
    %125 = vector.load %arg4[%c0_49, %c0_50, %c640_51] : memref<2x1x1280xf32, #tpu.memory_space<vmem>>, vector<1x1x64xf32>
    %126 = vector.shape_cast %125 : vector<1x1x64xf32> to vector<1x64xf32>
    %127 = vector.broadcast %126 : vector<1x64xf32> to vector<16x64xf32>
    %128 = arith.addf %124, %127 : vector<16x64xf32>
    %129 = arith.addf %128, %99 : vector<16x64xf32>
    %c0_52 = arith.constant 0 : index
    %c0_53 = arith.constant 0 : index
    %c1024 = arith.constant 1024 : index
    %130 = vector.load %arg4[%c0_52, %c0_53, %c1024] : memref<2x1x1280xf32, #tpu.memory_space<vmem>>, vector<1x1x64xf32>
    %131 = vector.shape_cast %130 : vector<1x1x64xf32> to vector<1x64xf32>
    %c0_54 = arith.constant 0 : index
    %c0_55 = arith.constant 0 : index
    %c1152 = arith.constant 1152 : index
    %132 = vector.load %arg4[%c0_54, %c0_55, %c1152] : memref<2x1x1280xf32, #tpu.memory_space<vmem>>, vector<1x1x64xf32>
    %133 = vector.shape_cast %132 : vector<1x1x64xf32> to vector<1x64xf32>
    %cst_56 = arith.constant dense<0.000000e+00> : vector<16xf32>
    %134 = vector.multi_reduction <add>, %129, %cst_56 [1] : vector<16x64xf32> to vector<16xf32>
    %135 = vector.shape_cast %134 : vector<16xf32> to vector<16x1xf32>
    %cst_57 = arith.constant 6.400000e+01 : f32
    %136 = vector.broadcast %cst_57 : f32 to vector<16x1xf32>
    %137 = arith.divf %135, %136 : vector<16x1xf32>
    %138 = vector.broadcast %137 : vector<16x1xf32> to vector<16x64xf32>
    %139 = arith.subf %129, %138 : vector<16x64xf32>
    %140 = arith.mulf %139, %139 : vector<16x64xf32>
    %cst_58 = arith.constant dense<0.000000e+00> : vector<16xf32>
    %141 = vector.multi_reduction <add>, %140, %cst_58 [1] : vector<16x64xf32> to vector<16xf32>
    %142 = vector.shape_cast %141 : vector<16xf32> to vector<16x1xf32>
    %cst_59 = arith.constant 6.400000e+01 : f32
    %143 = vector.broadcast %cst_59 : f32 to vector<16x1xf32>
    %144 = arith.divf %142, %143 : vector<16x1xf32>
    %cst_60 = arith.constant 9.99999974E-6 : f32
    %145 = vector.broadcast %cst_60 : f32 to vector<16x1xf32>
    %146 = arith.addf %144, %145 : vector<16x1xf32>
    %147 = math.rsqrt %146 : vector<16x1xf32>
    %148 = vector.broadcast %147 : vector<16x1xf32> to vector<16x64xf32>
    %149 = arith.mulf %139, %148 : vector<16x64xf32>
    %150 = vector.broadcast %131 : vector<1x64xf32> to vector<16x64xf32>
    %151 = arith.mulf %149, %150 : vector<16x64xf32>
    %152 = vector.broadcast %133 : vector<1x64xf32> to vector<16x64xf32>
    %153 = arith.addf %151, %152 : vector<16x64xf32>
    %154 = arith.truncf %153 : vector<16x64xf32> to vector<16x64xbf16>
    %c1 = arith.constant 1 : index
    %c0_61 = arith.constant 0 : index
    %c0_62 = arith.constant 0 : index
    %155 = vector.load %arg3[%c1, %c0_61, %c0_62] : memref<2x64x768xbf16, #tpu.memory_space<vmem>>, vector<1x64x384xbf16>
    %156 = vector.shape_cast %155 : vector<1x64x384xbf16> to vector<64x384xbf16>
    %cst_63 = arith.constant dense<0.000000e+00> : vector<16x384xf32>
    %157 = tpu.matmul %154, %156, %cst_63 {dimension_numbers = #tpu.dot_dimension_numbers<[1], [0], [0], [1], [0, 0, 1, 1], [], []>} : vector<16x64xbf16>, vector<64x384xbf16>, vector<16x384xf32> -> vector<16x384xf32>
    %c1_64 = arith.constant 1 : index
    %c0_65 = arith.constant 0 : index
    %c0_66 = arith.constant 0 : index
    %158 = vector.load %arg4[%c1_64, %c0_65, %c0_66] : memref<2x1x1280xf32, #tpu.memory_space<vmem>>, vector<1x1x384xf32>
    %159 = vector.shape_cast %158 : vector<1x1x384xf32> to vector<1x384xf32>
    %160 = vector.broadcast %159 : vector<1x384xf32> to vector<16x384xf32>
    %161 = arith.addf %157, %160 : vector<16x384xf32>
    %162 = vector.extract_strided_slice %161 {offsets = [0, 0], sizes = [16, 64], strides = [1, 1]} : vector<16x384xf32> to vector<16x64xf32>
    %163 = vector.shape_cast %162 : vector<16x64xf32> to vector<2x8x4x16xf32>
    %164 = tpu.transpose %163, [0, 2, 1, 3] : vector<2x8x4x16xf32> -> vector<2x4x8x16xf32>
    %165 = vector.shape_cast %164 : vector<2x4x8x16xf32> to vector<8x8x16xf32>
    %166 = arith.truncf %165 : vector<8x8x16xf32> to vector<8x8x16xbf16>
    %167 = vector.extract_strided_slice %161 {offsets = [0, 128], sizes = [16, 64], strides = [1, 1]} : vector<16x384xf32> to vector<16x64xf32>
    %168 = vector.shape_cast %167 : vector<16x64xf32> to vector<2x8x4x16xf32>
    %169 = tpu.transpose %168, [0, 2, 1, 3] : vector<2x8x4x16xf32> -> vector<2x4x8x16xf32>
    %170 = vector.shape_cast %169 : vector<2x4x8x16xf32> to vector<8x8x16xf32>
    %171 = arith.truncf %170 : vector<8x8x16xf32> to vector<8x8x16xbf16>
    %172 = vector.extract_strided_slice %161 {offsets = [0, 256], sizes = [16, 64], strides = [1, 1]} : vector<16x384xf32> to vector<16x64xf32>
    %173 = vector.shape_cast %172 : vector<16x64xf32> to vector<2x8x4x16xf32>
    %174 = tpu.transpose %173, [0, 2, 1, 3] : vector<2x8x4x16xf32> -> vector<2x4x8x16xf32>
    %175 = vector.shape_cast %174 : vector<2x4x8x16xf32> to vector<8x8x16xf32>
    %176 = arith.truncf %175 : vector<8x8x16xf32> to vector<8x8x16xbf16>
    "tpu.trace_start"() <{level = 10 : i32, message = "bqd,bkd->bqk"}> : () -> ()
    %cst_67 = arith.constant dense<0.000000e+00> : vector<8x8x8xf32>
    %177 = tpu.matmul %166, %171, %cst_67 {dimension_numbers = #tpu.dot_dimension_numbers<[2], [2], [1], [1], [0, 0, 0, 1, 1, 1], [0], [0]>} : vector<8x8x16xbf16>, vector<8x8x16xbf16>, vector<8x8x8xf32> -> vector<8x8x8xf32>
    "tpu.trace_stop"() : () -> ()
    %178 = vector.shape_cast %24 : vector<8x8xf32> to vector<8x1x8xf32>
    %179 = vector.broadcast %178 : vector<8x1x8xf32> to vector<8x8x8xf32>
    %180 = arith.addf %177, %179 : vector<8x8x8xf32>
    %cst_68 = arith.constant dense<0xFF800000> : vector<8x8xf32>
    %181 = vector.multi_reduction <maximumf>, %180, %cst_68 [2] : vector<8x8x8xf32> to vector<8x8xf32>
    %182 = vector.shape_cast %181 : vector<8x8xf32> to vector<8x8x1xf32>
    %183 = vector.broadcast %182 : vector<8x8x1xf32> to vector<8x8x8xf32>
    %184 = arith.subf %180, %183 : vector<8x8x8xf32>
    %185 = math.exp %184 : vector<8x8x8xf32>
    %cst_69 = arith.constant dense<0.000000e+00> : vector<8x8xf32>
    %186 = vector.multi_reduction <add>, %185, %cst_69 [2] : vector<8x8x8xf32> to vector<8x8xf32>
    %187 = vector.shape_cast %186 : vector<8x8xf32> to vector<8x8x1xf32>
    %188 = tpu.reciprocal %187 {approx = true} : vector<8x8x1xf32> -> vector<8x8x1xf32>
    %189 = vector.broadcast %188 : vector<8x8x1xf32> to vector<8x8x8xf32>
    %190 = arith.mulf %185, %189 : vector<8x8x8xf32>
    %191 = arith.truncf %190 : vector<8x8x8xf32> to vector<8x8x8xbf16>
    "tpu.trace_start"() <{level = 10 : i32, message = "bqk,bkd->bqd"}> : () -> ()
    %cst_70 = arith.constant dense<0.000000e+00> : vector<8x8x16xf32>
    %192 = tpu.matmul %191, %176, %cst_70 {dimension_numbers = #tpu.dot_dimension_numbers<[2], [1], [1], [2], [0, 0, 0, 1, 1, 2], [0], [0]>} : vector<8x8x8xbf16>, vector<8x8x16xbf16>, vector<8x8x16xf32> -> vector<8x8x16xf32>
    "tpu.trace_stop"() : () -> ()
    %193 = vector.shape_cast %192 : vector<8x8x16xf32> to vector<2x4x8x16xf32>
    %194 = tpu.transpose %193, [0, 2, 1, 3] : vector<2x4x8x16xf32> -> vector<2x8x4x16xf32>
    %195 = vector.shape_cast %194 : vector<2x8x4x16xf32> to vector<16x64xf32>
    %196 = arith.truncf %195 : vector<16x64xf32> to vector<16x64xbf16>
    %c1_71 = arith.constant 1 : index
    %c0_72 = arith.constant 0 : index
    %c384_73 = arith.constant 384 : index
    %197 = vector.load %arg3[%c1_71, %c0_72, %c384_73] : memref<2x64x768xbf16, #tpu.memory_space<vmem>>, vector<1x64x64xbf16>
    %198 = vector.shape_cast %197 : vector<1x64x64xbf16> to vector<64x64xbf16>
    %cst_74 = arith.constant dense<0.000000e+00> : vector<16x64xf32>
    %199 = tpu.matmul %196, %198, %cst_74 {dimension_numbers = #tpu.dot_dimension_numbers<[1], [0], [0], [1], [0, 0, 1, 1], [], []>} : vector<16x64xbf16>, vector<64x64xbf16>, vector<16x64xf32> -> vector<16x64xf32>
    %c1_75 = arith.constant 1 : index
    %c0_76 = arith.constant 0 : index
    %c384_77 = arith.constant 384 : index
    %200 = vector.load %arg4[%c1_75, %c0_76, %c384_77] : memref<2x1x1280xf32, #tpu.memory_space<vmem>>, vector<1x1x64xf32>
    %201 = vector.shape_cast %200 : vector<1x1x64xf32> to vector<1x64xf32>
    %202 = vector.broadcast %201 : vector<1x64xf32> to vector<16x64xf32>
    %203 = arith.addf %199, %202 : vector<16x64xf32>
    %204 = arith.addf %203, %153 : vector<16x64xf32>
    %c1_78 = arith.constant 1 : index
    %c0_79 = arith.constant 0 : index
    %c768_80 = arith.constant 768 : index
    %205 = vector.load %arg4[%c1_78, %c0_79, %c768_80] : memref<2x1x1280xf32, #tpu.memory_space<vmem>>, vector<1x1x64xf32>
    %206 = vector.shape_cast %205 : vector<1x1x64xf32> to vector<1x64xf32>
    %c1_81 = arith.constant 1 : index
    %c0_82 = arith.constant 0 : index
    %c896_83 = arith.constant 896 : index
    %207 = vector.load %arg4[%c1_81, %c0_82, %c896_83] : memref<2x1x1280xf32, #tpu.memory_space<vmem>>, vector<1x1x64xf32>
    %208 = vector.shape_cast %207 : vector<1x1x64xf32> to vector<1x64xf32>
    %cst_84 = arith.constant dense<0.000000e+00> : vector<16xf32>
    %209 = vector.multi_reduction <add>, %204, %cst_84 [1] : vector<16x64xf32> to vector<16xf32>
    %210 = vector.shape_cast %209 : vector<16xf32> to vector<16x1xf32>
    %cst_85 = arith.constant 6.400000e+01 : f32
    %211 = vector.broadcast %cst_85 : f32 to vector<16x1xf32>
    %212 = arith.divf %210, %211 : vector<16x1xf32>
    %213 = vector.broadcast %212 : vector<16x1xf32> to vector<16x64xf32>
    %214 = arith.subf %204, %213 : vector<16x64xf32>
    %215 = arith.mulf %214, %214 : vector<16x64xf32>
    %cst_86 = arith.constant dense<0.000000e+00> : vector<16xf32>
    %216 = vector.multi_reduction <add>, %215, %cst_86 [1] : vector<16x64xf32> to vector<16xf32>
    %217 = vector.shape_cast %216 : vector<16xf32> to vector<16x1xf32>
    %cst_87 = arith.constant 6.400000e+01 : f32
    %218 = vector.broadcast %cst_87 : f32 to vector<16x1xf32>
    %219 = arith.divf %217, %218 : vector<16x1xf32>
    %cst_88 = arith.constant 9.99999974E-6 : f32
    %220 = vector.broadcast %cst_88 : f32 to vector<16x1xf32>
    %221 = arith.addf %219, %220 : vector<16x1xf32>
    %222 = math.rsqrt %221 : vector<16x1xf32>
    %223 = vector.broadcast %222 : vector<16x1xf32> to vector<16x64xf32>
    %224 = arith.mulf %214, %223 : vector<16x64xf32>
    %225 = vector.broadcast %206 : vector<1x64xf32> to vector<16x64xf32>
    %226 = arith.mulf %224, %225 : vector<16x64xf32>
    %227 = vector.broadcast %208 : vector<1x64xf32> to vector<16x64xf32>
    %228 = arith.addf %226, %227 : vector<16x64xf32>
    %229 = arith.truncf %228 : vector<16x64xf32> to vector<16x64xbf16>
    %c1_89 = arith.constant 1 : index
    %c0_90 = arith.constant 0 : index
    %c512_91 = arith.constant 512 : index
    %230 = vector.load %arg3[%c1_89, %c0_90, %c512_91] : memref<2x64x768xbf16, #tpu.memory_space<vmem>>, vector<1x64x128xbf16>
    %231 = vector.shape_cast %230 : vector<1x64x128xbf16> to vector<64x128xbf16>
    %cst_92 = arith.constant dense<0.000000e+00> : vector<16x128xf32>
    %232 = tpu.matmul %229, %231, %cst_92 {dimension_numbers = #tpu.dot_dimension_numbers<[1], [0], [0], [1], [0, 0, 1, 1], [], []>} : vector<16x64xbf16>, vector<64x128xbf16>, vector<16x128xf32> -> vector<16x128xf32>
    %c1_93 = arith.constant 1 : index
    %c0_94 = arith.constant 0 : index
    %c512_95 = arith.constant 512 : index
    %233 = vector.load %arg4[%c1_93, %c0_94, %c512_95] : memref<2x1x1280xf32, #tpu.memory_space<vmem>>, vector<1x1x128xf32>
    %234 = vector.shape_cast %233 : vector<1x1x128xf32> to vector<1x128xf32>
    %235 = vector.broadcast %234 : vector<1x128xf32> to vector<16x128xf32>
    %236 = arith.addf %232, %235 : vector<16x128xf32>
    %cst_96 = arith.constant 5.000000e-01 : f32
    %237 = vector.broadcast %cst_96 : f32 to vector<16x128xf32>
    %238 = arith.mulf %237, %236 : vector<16x128xf32>
    %cst_97 = arith.constant 4.471500e-02 : f32
    %239 = vector.broadcast %cst_97 : f32 to vector<16x128xf32>
    %240 = arith.mulf %239, %236 : vector<16x128xf32>
    %241 = arith.mulf %240, %236 : vector<16x128xf32>
    %242 = arith.mulf %241, %236 : vector<16x128xf32>
    %243 = arith.addf %236, %242 : vector<16x128xf32>
    %cst_98 = arith.constant 0.797884583 : f32
    %244 = vector.broadcast %cst_98 : f32 to vector<16x128xf32>
    %245 = arith.mulf %244, %243 : vector<16x128xf32>
    %246 = math.tanh %245 : vector<16x128xf32>
    %cst_99 = arith.constant 1.000000e+00 : f32
    %247 = vector.broadcast %cst_99 : f32 to vector<16x128xf32>
    %248 = arith.addf %247, %246 : vector<16x128xf32>
    %249 = arith.mulf %238, %248 : vector<16x128xf32>
    %250 = arith.truncf %249 : vector<16x128xf32> to vector<16x128xbf16>
    %c1_100 = arith.constant 1 : index
    %c0_101 = arith.constant 0 : index
    %c640_102 = arith.constant 640 : index
    %251 = vector.load %arg3[%c1_100, %c0_101, %c640_102] : memref<2x64x768xbf16, #tpu.memory_space<vmem>>, vector<1x64x128xbf16>
    %252 = vector.shape_cast %251 : vector<1x64x128xbf16> to vector<64x128xbf16>
    %cst_103 = arith.constant dense<0.000000e+00> : vector<16x64xf32>
    %253 = tpu.matmul %250, %252, %cst_103 {dimension_numbers = #tpu.dot_dimension_numbers<[1], [1], [0], [0], [0, 0, 1, 0], [], []>} : vector<16x128xbf16>, vector<64x128xbf16>, vector<16x64xf32> -> vector<16x64xf32>
    %c1_104 = arith.constant 1 : index
    %c0_105 = arith.constant 0 : index
    %c640_106 = arith.constant 640 : index
    %254 = vector.load %arg4[%c1_104, %c0_105, %c640_106] : memref<2x1x1280xf32, #tpu.memory_space<vmem>>, vector<1x1x64xf32>
    %255 = vector.shape_cast %254 : vector<1x1x64xf32> to vector<1x64xf32>
    %256 = vector.broadcast %255 : vector<1x64xf32> to vector<16x64xf32>
    %257 = arith.addf %253, %256 : vector<16x64xf32>
    %258 = arith.addf %257, %228 : vector<16x64xf32>
    %c1_107 = arith.constant 1 : index
    %c0_108 = arith.constant 0 : index
    %c1024_109 = arith.constant 1024 : index
    %259 = vector.load %arg4[%c1_107, %c0_108, %c1024_109] : memref<2x1x1280xf32, #tpu.memory_space<vmem>>, vector<1x1x64xf32>
    %260 = vector.shape_cast %259 : vector<1x1x64xf32> to vector<1x64xf32>
    %c1_110 = arith.constant 1 : index
    %c0_111 = arith.constant 0 : index
    %c1152_112 = arith.constant 1152 : index
    %261 = vector.load %arg4[%c1_110, %c0_111, %c1152_112] : memref<2x1x1280xf32, #tpu.memory_space<vmem>>, vector<1x1x64xf32>
    %262 = vector.shape_cast %261 : vector<1x1x64xf32> to vector<1x64xf32>
    %cst_113 = arith.constant dense<0.000000e+00> : vector<16xf32>
    %263 = vector.multi_reduction <add>, %258, %cst_113 [1] : vector<16x64xf32> to vector<16xf32>
    %264 = vector.shape_cast %263 : vector<16xf32> to vector<16x1xf32>
    %cst_114 = arith.constant 6.400000e+01 : f32
    %265 = vector.broadcast %cst_114 : f32 to vector<16x1xf32>
    %266 = arith.divf %264, %265 : vector<16x1xf32>
    %267 = vector.broadcast %266 : vector<16x1xf32> to vector<16x64xf32>
    %268 = arith.subf %258, %267 : vector<16x64xf32>
    %269 = arith.mulf %268, %268 : vector<16x64xf32>
    %cst_115 = arith.constant dense<0.000000e+00> : vector<16xf32>
    %270 = vector.multi_reduction <add>, %269, %cst_115 [1] : vector<16x64xf32> to vector<16xf32>
    %271 = vector.shape_cast %270 : vector<16xf32> to vector<16x1xf32>
    %cst_116 = arith.constant 6.400000e+01 : f32
    %272 = vector.broadcast %cst_116 : f32 to vector<16x1xf32>
    %273 = arith.divf %271, %272 : vector<16x1xf32>
    %cst_117 = arith.constant 9.99999974E-6 : f32
    %274 = vector.broadcast %cst_117 : f32 to vector<16x1xf32>
    %275 = arith.addf %273, %274 : vector<16x1xf32>
    %276 = math.rsqrt %275 : vector<16x1xf32>
    %277 = vector.broadcast %276 : vector<16x1xf32> to vector<16x64xf32>
    %278 = arith.mulf %268, %277 : vector<16x64xf32>
    %279 = vector.broadcast %260 : vector<1x64xf32> to vector<16x64xf32>
    %280 = arith.mulf %278, %279 : vector<16x64xf32>
    %281 = vector.broadcast %262 : vector<1x64xf32> to vector<16x64xf32>
    %282 = arith.addf %280, %281 : vector<16x64xf32>
    %283 = vector.shape_cast %282 : vector<16x64xf32> to vector<2x8x64xf32>
    %284 = vector.extract_strided_slice %283 {offsets = [0, 0, 0], sizes = [2, 1, 64], strides = [1, 1, 1]} : vector<2x8x64xf32> to vector<2x1x64xf32>
    %285 = vector.shape_cast %284 : vector<2x1x64xf32> to vector<2x64xf32>
    %286 = arith.truncf %285 : vector<2x64xf32> to vector<2x64xbf16>
    %c0_118 = arith.constant 0 : index
    %c0_119 = arith.constant 0 : index
    %287 = vector.load %arg5[%c0_118, %c0_119] : memref<64x384xbf16, #tpu.memory_space<vmem>>, vector<64x64xbf16>
    %cst_120 = arith.constant dense<0.000000e+00> : vector<2x64xf32>
    %288 = tpu.matmul %286, %287, %cst_120 {dimension_numbers = #tpu.dot_dimension_numbers<[1], [0], [0], [1], [0, 0, 1, 1], [], []>} : vector<2x64xbf16>, vector<64x64xbf16>, vector<2x64xf32> -> vector<2x64xf32>
    %c0_121 = arith.constant 0 : index
    %c256 = arith.constant 256 : index
    %289 = vector.load %arg6[%c0_121, %c256] : memref<1x640xf32, #tpu.memory_space<vmem>>, vector<1x64xf32>
    %290 = vector.broadcast %289 : vector<1x64xf32> to vector<2x64xf32>
    %291 = arith.addf %288, %290 : vector<2x64xf32>
    %292 = math.tanh %291 : vector<2x64xf32>
    %293 = arith.truncf %292 : vector<2x64xf32> to vector<2x64xbf16>
    %c0_122 = arith.constant 0 : index
    %c128_123 = arith.constant 128 : index
    %294 = vector.load %arg5[%c0_122, %c128_123] : memref<64x384xbf16, #tpu.memory_space<vmem>>, vector<64x64xbf16>
    %cst_124 = arith.constant dense<0.000000e+00> : vector<2x64xf32>
    %295 = tpu.matmul %293, %294, %cst_124 {dimension_numbers = #tpu.dot_dimension_numbers<[1], [0], [0], [1], [0, 0, 1, 1], [], []>} : vector<2x64xbf16>, vector<64x64xbf16>, vector<2x64xf32> -> vector<2x64xf32>
    %c0_125 = arith.constant 0 : index
    %c384_126 = arith.constant 384 : index
    %296 = vector.load %arg6[%c0_125, %c384_126] : memref<1x640xf32, #tpu.memory_space<vmem>>, vector<1x64xf32>
    %297 = vector.broadcast %296 : vector<1x64xf32> to vector<2x64xf32>
    %298 = arith.addf %295, %297 : vector<2x64xf32>
    %cst_127 = arith.constant 0.000000e+00 : f32
    %299 = vector.broadcast %cst_127 : f32 to vector<2x64xf32>
    %300 = arith.maximumf %298, %299 : vector<2x64xf32>
    %301 = arith.truncf %300 : vector<2x64xf32> to vector<2x64xbf16>
    %c0_128 = arith.constant 0 : index
    %c256_129 = arith.constant 256 : index
    %302 = vector.load %arg5[%c0_128, %c256_129] : memref<64x384xbf16, #tpu.memory_space<vmem>>, vector<64x32xbf16>
    %cst_130 = arith.constant dense<0.000000e+00> : vector<2x32xf32>
    %303 = tpu.matmul %301, %302, %cst_130 {dimension_numbers = #tpu.dot_dimension_numbers<[1], [0], [0], [1], [0, 0, 1, 1], [], []>} : vector<2x64xbf16>, vector<64x32xbf16>, vector<2x32xf32> -> vector<2x32xf32>
    %c0_131 = arith.constant 0 : index
    %c512_132 = arith.constant 512 : index
    %304 = vector.load %arg6[%c0_131, %c512_132] : memref<1x640xf32, #tpu.memory_space<vmem>>, vector<1x32xf32>
    %305 = vector.broadcast %304 : vector<1x32xf32> to vector<2x32xf32>
    %306 = arith.addf %303, %305 : vector<2x32xf32>
    %cst_133 = arith.constant 0.000000e+00 : f32
    %307 = vector.broadcast %cst_133 : f32 to vector<2x32xf32>
    %308 = tpu.concatenate %292, %306, %307 in 1 : vector<2x64xf32>, vector<2x32xf32>, vector<2x32xf32> -> vector<2x128xf32>
    %c0_134 = arith.constant 0 : index
    %c0_135 = arith.constant 0 : index
    %309 = vector.load %arg7[%c0_134, %c0_135] : memref<2x128xf32, #tpu.memory_space<vmem>>, vector<2x128xf32>
    tpu.vector_store %arg7[%c0_134, %c0_135], %308 {strides = array<i32>} : memref<2x128xf32, #tpu.memory_space<vmem>>, vector<2x128xf32>,
    return
  }
  func.func @transform_0(%arg0: i32) -> (i32, i32) {
    %c0_i32 = arith.constant 0 : i32
    %c0_i32_0 = arith.constant 0 : i32
    return %arg0, %c0_i32 : i32, i32
  }
  func.func @transform_1(%arg0: i32) -> (i32, i32) {
    %c0_i32 = arith.constant 0 : i32
    %c0_i32_0 = arith.constant 0 : i32
    return %arg0, %c0_i32 : i32, i32
  }
  func.func @transform_2(%arg0: i32) -> (i32, i32, i32) {
    %c0_i32 = arith.constant 0 : i32
    %c0_i32_0 = arith.constant 0 : i32
    %c0_i32_1 = arith.constant 0 : i32
    %c0_i32_2 = arith.constant 0 : i32
    return %c0_i32, %c0_i32_0, %c0_i32_1 : i32, i32, i32
  }
  func.func @transform_3(%arg0: i32) -> (i32, i32, i32) {
    %c0_i32 = arith.constant 0 : i32
    %c0_i32_0 = arith.constant 0 : i32
    %c0_i32_1 = arith.constant 0 : i32
    %c0_i32_2 = arith.constant 0 : i32
    return %c0_i32, %c0_i32_0, %c0_i32_1 : i32, i32, i32
  }
  func.func @transform_4(%arg0: i32) -> (i32, i32) {
    %c0_i32 = arith.constant 0 : i32
    %c0_i32_0 = arith.constant 0 : i32
    %c0_i32_1 = arith.constant 0 : i32
    return %c0_i32, %c0_i32_0 : i32, i32
  }
  func.func @transform_5(%arg0: i32) -> (i32, i32) {
    %c0_i32 = arith.constant 0 : i32
    %c0_i32_0 = arith.constant 0 : i32
    %c0_i32_1 = arith.constant 0 : i32
    return %c0_i32, %c0_i32_0 : i32, i32
  }
  func.func @transform_6(%arg0: i32) -> (i32, i32) {
    %c0_i32 = arith.constant 0 : i32
    %c0_i32_0 = arith.constant 0 : i32
    return %arg0, %c0_i32 : i32, i32
  }
}

</mosaic_0001>

<bundles_post_ra>
// kernel: roberta_embedding_model.1
= control target key start
LH: loop header
LB: loop body
LE: loop exit
PB: predicated region body
PF: predicated region fallthrough
CT: control target
= control target key end

     0   :  { %11 = vsyncpa [#allocation3], 0  ;;  %s6205_s0 = inlined_call_operand.vmem [shape: bf16[16,64], index: 0, kind: input, shape index: {}]   ;;  %s6206_s1 = inlined_call_operand.vmem [shape: f32[8,8], index: 1, kind: input, shape index: {}]   ;;  %s6207_s2 = inlined_call_operand.vmem [shape: bf16[2,64,768], index: 2, kind: input, shape index: {}]   ;;  %s6208_s3 = inlined_call_operand.hbm [shape: f32[2,1,1280], index: 3, kind: input, shape index: {}]   ;;  %s6209_s4 = inlined_call_operand.hbm [shape: bf16[64,384], index: 4, kind: input, shape index: {}]   ;;  %s6210_s5 = inlined_call_operand.vmem [shape: f32[1,640], index: 5, kind: input, shape index: {}]   ;;  %s6211_s6 = inlined_call_operand.vmem [shape: f32[2,128], index: 6, kind: output, shape index: {}]  }
   0x1   :  { %s23_s23 = sshll.u32 %s6208_s3, 4  ;;  %s24_s23 = int_to_ptr.hbm [resolvable:$true] %s23_s23 }
   0x2   :  { %12 = vsyncpa [#allocation5], 0  ;;  %s4620_s24 = smov [#allocation2]   ;;  %s36_s28 = sshll.u32 %s6209_s4, 4  ;;  %s37_s28 = int_to_ptr.hbm [resolvable:$true] %s36_s28 }
   0x3   :  { %s25_s25 = sshll.u32 %s4620_s24, 4  ;;  %s4621_s29 = smov 160   ;;  %s26_s25 = int_to_ptr.vmem [resolvable:$true] %s25_s25 }
   0x4   :  { %s4622_s30 = smov 10   ;;  %s4623_s7 = smov [#allocation4]  }
   0x5   :  { %31 = dma.hbm_to_vmem [thread:$0]  %s24_s23, 320, %s26_s25, [#allocation3], %s4621_s29, %s4621_s29, %s4622_s30  }
   0x6   :  { %s38_s8 = sshll.u32 %s4623_s7, 4  ;;  %s4624_s9 = smov 192   ;;  %s39_s8 = int_to_ptr.vmem [resolvable:$true] %s38_s8 }
   0x7   :  { %s4625_s10 = smov 12  }
   0x8   :  { %44 = dma.hbm_to_vmem [thread:$0]  %s37_s28, 1536, %s39_s8, [#allocation5], %s4624_s9, %s4624_s9, %s4625_s10  }
   0x9   :  { %4616 = dma.done.wait [#allocation3], 320  }
   0xa   :  { %4617 = vsyncadd [#allocation3], 4294966976 }
   0xb   :  { %4618 = dma.done.wait [#allocation5], 1536  }
   0xc   :  { %4619 = vsyncadd [#allocation5], 4294965760  ;;  %v4369_v0 = vld [vmem:[%s6205_s0] sm:$0xff]   ;;  %vm62_vm0 = vcmask 523264   ;;  %v4626_v5 = vmov 64.0   ;;  %s4627_s3 = smov 80  }
   0xd   :  { %v4370_v1 = vunpack.c.l.bf16 %v4369_v0  ;;  %v4371_v3 = vunpack.c.h.bf16 %v4369_v0  ;;  %4472 = vrcp.f32 %v4626_v5  ;;  %v4021_v22 = vld [vmem:[%s6207_s2 + $0x90] sm:$0xf]  ;;  %v4318_v23 = vld [vmem:[%s6207_s2 + $0xa4] sm:$0xf0]  ;;  %v4317_v24 = vld [vmem:[%s6207_s2 + $0x94] sm:$0xf] }
   0xe   :  { %v4022_v25 = vor.u32 %v4318_v23, %v4021_v22  ;;  %v4023_v26 = vld [vmem:[%s6207_s2 + $0xa8] sm:$0xf0]  ;;  %v4029_v27 = vld [vmem:[%s6207_s2 + $0x98] sm:$0xf]  ;;  %v4319_v28 = vld [vmem:[%s6207_s2 + $0xac] sm:$0xf0] }
   0xf   :  { %v63_v2 = vsel %vm62_vm0, %v4370_v1, 0.0  ;;  %v66_v4 = vsel %vm62_vm0, %v4371_v3, 0.0  ;;  %v4026_v29 = vor.u32 %v4317_v24, %v4023_v26  ;;  %v4030_v30 = vor.u32 %v4319_v28, %v4029_v27  ;;  %v4009_v31 = vld [vmem:[%s6207_s2 + $0x60] sm:$0xf]  ;;  %v4315_v32 = vld [vmem:[%s6207_s2 + $0x74] sm:$0xf0] }
  0x10   :  { %64 = vadd.xlane.f32.xlu0 %v63_v2  ;;  %221 = vmatpush.bf16.msra.mxu0 %v4022_v25  ;;  %v4314_v33 = vld [vmem:[%s6207_s2 + $0x64] sm:$0xf]  ;;  %v4010_v34 = vor.u32 %v4315_v32, %v4009_v31  ;;  %v4011_v35 = vld [vmem:[%s6207_s2 + $0x78] sm:$0xf0]  ;;  %v4017_v36 = vld [vmem:[%s6207_s2 + $0x68] sm:$0xf] }
  0x11   :  { %235 = vmatpush.bf16.msra.mxu1 %v4026_v29  ;;  %249 = vmatpush.bf16.msra.mxu2 %v4030_v30  ;;  %v4316_v37 = vld [vmem:[%s6207_s2 + $0x7c] sm:$0xf0]  ;;  %v4014_v38 = vor.u32 %v4314_v33, %v4011_v35  ;;  %v3997_v40 = vld [vmem:[%s6207_s2 + $0x30] sm:$0xf]  ;;  %v4312_v41 = vld [vmem:[%s6207_s2 + $0x44] sm:$0xf0] }
  0x12   :  { %v4018_v39 = vor.u32 %v4316_v37, %v4017_v36  ;;  %v4311_v42 = vld [vmem:[%s6207_s2 + $0x34] sm:$0xf]  ;;  %v3998_v43 = vor.u32 %v4312_v41, %v3997_v40  ;;  %v3999_v44 = vld [vmem:[%s6207_s2 + $0x48] sm:$0xf0]  ;;  %v4005_v45 = vld [vmem:[%s6207_s2 + $0x38] sm:$0xf] }
  0x13   :  { %v4473_v6 = vpop.eup %4472  ;;  %v4313_v46 = vld [vmem:[%s6207_s2 + $0x4c] sm:$0xf0]  ;;  %v4002_v47 = vor.u32 %v4311_v42, %v3999_v44  ;;  %v3985_v49 = vld [vmem:[%s6207_s2] sm:$0xf]  ;;  %v4309_v50 = vld [vmem:[%s6207_s2 + $0x14] sm:$0xf0] }
  0x14   :  { %v70_v7 = vmul.f32 64.0, %v4473_v6  ;;  %vm74_vm1 = vweird.f32 %v4473_v6  ;;  %222 = vmatpush.bf16.msra.mxu0 %v4010_v34  ;;  %v4006_v48 = vor.u32 %v4313_v46, %v4005_v45  ;;  %v4308_v51 = vld [vmem:[%s6207_s2 + $0x4] sm:$0xf]  ;;  %v3986_v53 = vor.u32 %v4309_v50, %v3985_v49  ;;  %v3987_v54 = vld [vmem:[%s6207_s2 + $0x18] sm:$0xf0]  ;;  %s4628_s11 = smov 112  }
  0x15   :  { %236 = vmatpush.bf16.msra.mxu1 %v4014_v38  ;;  %250 = vmatpush.bf16.msra.mxu2 %v4018_v39  ;;  %v3993_v55 = vld [vmem:[%s6207_s2 + $0x8] sm:$0xf]  ;;  %v4310_v56 = vld [vmem:[%s6207_s2 + $0x1c] sm:$0xf0]  ;;  %v3990_v58 = vor.u32 %v4308_v51, %v3987_v54  ;;  %s4629_s0 = smov 96   ;;  %vm280_vm8 = vcmask 1047556  }
  0x16   :  { %v71_v8 = vsub.f32 1.0, %v70_v7  ;;  %v3994_v59 = vor.u32 %v4310_v56, %v3993_v55  ;;  %v4630_v37 = vmov 1983009808   ;;  %v4631_v46 = vmov 1934713408   ;;  %s4633_s13 = smov 32  }
  0x17   :  { %v285_v38 = vunpack.c.l.s4 %v4630_v37  ;;  %vm1028_vm9 = vcmask 130048   ;;  %vm1181_vm10 = vcmask 64512   ;;  %vm1281_vm11 = vcmask 1043456   ;;  %s4634_s14 = smov 16   ;;  %s4635_s20 = smov 64  }
  0x18   :  { %67 = vadd.xlane.f32.xlu0 %v66_v4  ;;  %v72_v9 = vmul.f32 %v4473_v6, %v71_v8  ;;  %223 = vmatpush.bf16.msra.mxu0 %v3998_v43  ;;  %vm1677_vm12 = vcmask 261120   ;;  %vm1680_vm13 = vcmask 392192  }
  0x19   :  { %237 = vmatpush.bf16.msra.mxu1 %v4002_v47  ;;  %251 = vmatpush.bf16.msra.mxu2 %v4006_v48  ;;  %v4813_v42 = vunpack.c.0.s8 %v285_v38  ;;  %v309_v47 = vunpack.c.l.s4 %v4631_v46 }
  0x1a   :  { %v73_v10 = vadd.f32 %v4473_v6, %v72_v9 }
  0x1b   :  { %v4821_v56 = vunpack.c.0.s8 %v309_v47 }
  0x1c   :  { %v4682_v11 = vsel %vm74_vm1, %v4473_v6, %v73_v10  ;;  %224 = vmatpush.bf16.msra.mxu0 %v3986_v53 }
  0x1d   :  { %238 = vmatpush.bf16.msra.mxu1 %v3990_v58  ;;  %252 = vmatpush.bf16.msra.mxu2 %v3994_v59 }
  0x83   :  { %v65_v12 = vpop.xlane.xlu0 %64 }
  0x84   :  { %v76_v13 = vmul.f32 %v4682_v11, %v65_v12 }
  0x86   :  { %v4685_v14 = vsub.f32 %v4370_v1, %v76_v13 }
  0x88   :  { %v80_v15 = vmul.f32 %v4685_v14, %v4685_v14 }
  0x8a   :  { %v82_v16 = vsel %vm62_vm0, %v80_v15, 0.0  ;;  %v4453_v15 = vld [vmem:[%s6210_s5] ss:$0 sm:$0xff] }
  0x8b   :  { %83 = vadd.xlane.f32.xlu1 %v82_v16  ;;  %v68_v17 = vpop.xlane.xlu0 %67 }
  0x8c   :  { %v77_v18 = vmul.f32 %v4682_v11, %v68_v17 }
  0x8e   :  { %v4691_v19 = vsub.f32 %v4371_v3, %v77_v18 }
  0x90   :  { %v81_v20 = vmul.f32 %v4691_v19, %v4691_v19 }
  0x92   :  { %v85_v21 = vsel %vm62_vm0, %v81_v20, 0.0 }
  0x93   :  { %86 = vadd.xlane.f32.xlu1 %v85_v21  ;;  %v4454_v21 = vld [vmem:[%s6210_s5 + $0x1] ss:$0 sm:$0xff] }
  0xfe   :  { %v84_v52 = vpop.xlane.xlu1 %83 }
  0xff   :  { %v88_v57 = vmul.f32 %v84_v52, %v4682_v11 }
 0x101   :  { %v90_v60 = vadd.f32 1e-05, %v88_v57 }
 0x103   :  { %4474 = vrsqrt.f32 %v90_v60  ;;  %vm98_vm3 = vweird.f32 %v90_v60 }
 0x106   :  { %v87_v61 = vpop.xlane.xlu1 %86 }
 0x107   :  { %v89_v62 = vmul.f32 %v87_v61, %v4682_v11 }
 0x109   :  { %v4475_v63 = vpop.eup %4474  ;;  %v91_v0 = vadd.f32 1e-05, %v89_v62 }
 0x10a   :  { %v93_v1 = vmul.f32 %v4475_v63, %v90_v60  ;;  %vm99_vm2 = vweird.f32 %v4475_v63 }
 0x10b   :  { %4476 = vrsqrt.f32 %v91_v0  ;;  %vm100_vm4 = vmor %vm98_vm3, %vm99_vm2  ;;  %vm108_vm6 = vweird.f32 %v91_v0 }
 0x10c   :  { %v94_v2 = vmul.f32 %v4475_v63, %v93_v1 }
 0x10e   :  { %v95_v3 = vmul.f32 0.5, %v94_v2 }
 0x110   :  { %v96_v4 = vsub.f32 1.5, %v95_v3 }
 0x111   :  { %v4477_v5 = vpop.eup %4476 }
 0x112   :  { %v97_v6 = vmul.f32 %v4475_v63, %v96_v4  ;;  %v103_v7 = vmul.f32 %v4477_v5, %v91_v0  ;;  %vm109_vm5 = vweird.f32 %v4477_v5 }
 0x113   :  { %vm110_vm7 = vmor %vm108_vm6, %vm109_vm5 }
 0x114   :  { %v104_v8 = vmul.f32 %v4477_v5, %v103_v7  ;;  %v101_v9 = vsel %vm100_vm4, %v4475_v63, %v97_v6 }
 0x115   :  { %v112_v13 = vmul.f32 %v101_v9, %v4685_v14 }
 0x116   :  { %v105_v10 = vmul.f32 0.5, %v104_v8 }
 0x117   :  { %v117_v20 = vmul.f32 %v4453_v15, %v112_v13 }
 0x118   :  { %v106_v12 = vsub.f32 1.5, %v105_v10 }
 0x119   :  { %v4778_v23 = vadd.f32 %v4454_v21, %v117_v20 }
 0x11a   :  { %v107_v16 = vmul.f32 %v4477_v5, %v106_v12 }
 0x11c   :  { %v111_v17 = vsel %vm110_vm7, %v4477_v5, %v107_v16 }
 0x11d   :  { %v113_v18 = vmul.f32 %v111_v17, %v4691_v19  ;;  %v4787_v19 = vld [vmem:[#allocation2] sm:$0x7] }
 0x11e   :  { %v144_v25 = vperm.slane %v4787_v19, 0  ;;  %v145_v26 = vperm.slane %v4787_v19, 1 }
 0x11f   :  { %v118_v22 = vmul.f32 %v4453_v15, %v113_v18 }
 0x121   :  { %v4780_v24 = vadd.f32 %v4454_v21, %v118_v22 }
 0x123   :  { %v125_v14 = vpack.c.bf16 %v4780_v24, %v4778_v23 }
 0x125   :  { %4031 = vmatmul.msk.bf16.vlgmr.msra.gmra.mxu0 %vm62_vm0, %v125_v14  ;;  %4032 = vmatmul.msk.bf16.vlgmr.msra.gmra.mxu1 %vm62_vm0, %v125_v14 }
 0x126   :  { %4033 = vmatmul.msk.bf16.vlgmr.msra.gmra.mxu2 %vm62_vm0, %v125_v14 }
 0x1a2   :  { %v226_v27 = vpop.f32.mrf.mxu0  ;;  %v240_v28 = vpop.f32.mrf.mxu1 }
 0x1a3   :  { %v227_v29 = vadd.f32 %v226_v27, %v144_v25  ;;  %v241_v30 = vadd.f32 %v240_v28, %v145_v26 }
 0x1a5   :  { %522 = vrot.lane.b32.xlu0 %v241_v30, %s4627_s3  ;;  %510 = vrot.lane.b32.xlu2 %v241_v30, %s4628_s11  ;;  %v530_v41 = vrot.slane %v241_v30, 4  ;;  %v282_v49 = vrot.slane %v227_v29, 4 }
 0x1a6   :  { %261 = vrot.lane.b32.xlu1 %v227_v29, %s4628_s11 }
 0x1aa   :  { %v228_v31 = vpop.f32.mrf.mxu0  ;;  %v242_v32 = vpop.f32.mrf.mxu1 }
 0x1ab   :  { %v4794_v33 = vadd.f32 %v228_v31, %v144_v25  ;;  %v4796_v34 = vadd.f32 %v242_v32, %v145_v26 }
 0x1ad   :  { %518 = vrot.lane.b32.xlu0 %v4796_v34, %s4629_s0  ;;  %516 = vrot.lane.b32.xlu2 %v241_v30, %s4629_s0 }
 0x1ae   :  { %263 = vrot.lane.b32.xlu1 %v4794_v33, %s4628_s11 }
 0x1b5   :  { %269 = vrot.lane.b32.xlu0 %v4794_v33, %s4629_s0  ;;  %267 = vrot.lane.b32.xlu2 %v227_v29, %s4629_s0 }
 0x1bd   :  { %273 = vrot.lane.b32.xlu2 %v227_v29, %s4627_s3 }
 0x1c5   :  { %512 = vrot.lane.b32.xlu2 %v4796_v34, %s4628_s11 }
 0x1cd   :  { %524 = vrot.lane.b32.xlu2 %v4796_v34, %s4627_s3 }
 0x1d5   :  { %275 = vrot.lane.b32.xlu2 %v4794_v33, %s4627_s3 }
 0x1ff   :  { %v511_v35 = vpop.permute.xlu2 %510 }
 0x200   :  { %v542_v50 = vrot.slane %v511_v35, 4 }
 0x207   :  { %v517_v36 = vpop.permute.xlu2 %516 }
 0x208   :  { %v528_v39 = vrot.slane %v517_v36, 4  ;;  %v531_v43 = vsel %vm280_vm8, %v517_v36, %v530_v41 }
 0x209   :  { %v539_v48 = vperm.slane %v531_v43, %v4813_v42 }
 0x20a   :  { %v529_v45 = vsel %vm280_vm8, %v528_v39, %v241_v30  ;;  %v586_v39 = vrot.slane %v4796_v34, 4 }
 0x20b   :  { %v535_v51 = vperm.slane %v529_v45, %v4813_v42  ;;  %v566_v61 = vrot.slane %v539_v48, 4 }
 0x20d   :  { %v554_v1 = vrot.slane %v535_v51, 4 }
 0x20f   :  { %v268_v40 = vpop.permute.xlu2 %267 }
 0x210   :  { %v279_v44 = vrot.slane %v268_v40, 4  ;;  %v283_v53 = vsel %vm280_vm8, %v268_v40, %v282_v49 }
 0x211   :  { %v291_v2 = vperm.slane %v283_v53, %v4813_v42 }
 0x212   :  { %v281_v52 = vsel %vm280_vm8, %v279_v44, %v227_v29  ;;  %v338_v44 = vrot.slane %v4794_v33, 4 }
 0x213   :  { %v287_v62 = vperm.slane %v281_v52, %v4813_v42  ;;  %v318_v14 = vrot.slane %v291_v2, 4 }
 0x215   :  { %v306_v13 = vrot.slane %v287_v62, 4 }
 0x217   :  { %v523_v54 = vpop.permute.xlu0 %522  ;;  %v274_v55 = vpop.permute.xlu2 %273 }
 0x218   :  { %v540_v57 = vrot.slane %v523_v54, 4  ;;  %v543_v58 = vsel %vm280_vm8, %v523_v54, %v542_v50  ;;  %v292_v59 = vrot.slane %v274_v55, 4  ;;  %v262_v60 = vpop.permute.xlu1 %261 }
 0x219   :  { %v551_v63 = vperm.slane %v543_v58, %v4813_v42  ;;  %v294_v0 = vrot.slane %v262_v60, 4 }
 0x21a   :  { %v541_v3 = vsel %vm280_vm8, %v540_v57, %v511_v35  ;;  %v293_v4 = vsel %vm280_vm8, %v292_v59, %v262_v60 }
 0x21b   :  { %v547_v5 = vperm.slane %v541_v3, %v4813_v42  ;;  %v564_v6 = vrot.slane %v551_v63, 4  ;;  %v567_v7 = vsel %vm280_vm8, %v551_v63, %v566_v61  ;;  %v295_v8 = vsel %vm280_vm8, %v274_v55, %v294_v0 }
 0x21c   :  { %v575_v9 = vperm.slane %v567_v7, %v4821_v56  ;;  %v299_v10 = vperm.slane %v293_v4, %v4813_v42  ;;  %v303_v12 = vperm.slane %v295_v8, %v4813_v42 }
 0x21d   :  { %v552_v15 = vrot.slane %v547_v5, 4  ;;  %v555_v16 = vsel %vm280_vm8, %v547_v5, %v554_v1  ;;  %v565_v17 = vsel %vm280_vm8, %v564_v6, %v539_v48 }
 0x21e   :  { %v563_v18 = vperm.slane %v555_v16, %v4821_v56  ;;  %v571_v20 = vperm.slane %v565_v17, %v4821_v56  ;;  %v582_v21 = vrot.slane %v575_v9, 4  ;;  %v304_v22 = vrot.slane %v299_v10, 4 }
 0x21f   :  { %v553_v25 = vsel %vm280_vm8, %v552_v15, %v535_v51  ;;  %v307_v26 = vsel %vm280_vm8, %v299_v10, %v306_v13  ;;  %v316_v27 = vrot.slane %v303_v12, 4  ;;  %v519_v28 = vpop.permute.xlu0 %518  ;;  %v513_v29 = vpop.permute.xlu2 %512  ;;  %v319_v38 = vsel %vm280_vm8, %v303_v12, %v318_v14 }
 0x220   :  { %v559_v30 = vperm.slane %v553_v25, %v4821_v56  ;;  %v578_v31 = vrot.slane %v563_v18, 4  ;;  %v580_v32 = vrot.slane %v571_v20, 4  ;;  %v583_v35 = vsel %vm280_vm8, 0.0, %v582_v21 }
 0x221   :  { %v305_v36 = vsel %vm280_vm8, %v304_v22, %v287_v62  ;;  %v315_v37 = vperm.slane %v307_v26, %v4821_v56  ;;  %v651_v41 = vsel %vm280_vm8, %v582_v21, %v571_v20  ;;  %v656_v43 = vrot.slane %v583_v35, 4  ;;  %v4861_v62 = vpop.permute.xlu1 %263 }
 0x222   :  { %v579_v40 = vsel %vm280_vm8, 0.0, %v578_v31  ;;  %v576_v45 = vrot.slane %v559_v30, 4  ;;  %v581_v46 = vsel %vm280_vm8, 0.0, %v580_v32  ;;  %v311_v47 = vperm.slane %v305_v36, %v4821_v56 }
 0x223   :  { %v317_v48 = vsel %vm280_vm8, %v316_v27, %v291_v2  ;;  %v327_v50 = vperm.slane %v319_v38, %v4821_v56  ;;  %v330_v51 = vrot.slane %v315_v37, 4  ;;  %v584_v52 = vrot.slane %v519_v28, 4 }
 0x224   :  { %v323_v49 = vperm.slane %v317_v48, %v4821_v56  ;;  %v645_v53 = vrot.slane %v579_v40, 4  ;;  %v4856_v54 = vperm.slane %v651_v41, %v4813_v42  ;;  %v328_v55 = vrot.slane %v311_v47, 4 }
 0x225   :  { %v587_v57 = vsel %vm280_vm8, %v519_v28, %v586_v39  ;;  %v331_v58 = vsel %vm280_vm8, 0.0, %v330_v51  ;;  %v334_v60 = vrot.slane %v327_v50, 4  ;;  %v392_v61 = vsel %vm280_vm8, %v330_v51, %v311_v47 }
 0x226   :  { %v332_v59 = vrot.slane %v323_v49, 4  ;;  %v329_v63 = vsel %vm280_vm8, 0.0, %v328_v55  ;;  %v4865_v0 = vperm.slane %v392_v61, %v4813_v42  ;;  %v397_v1 = vrot.slane %v331_v58, 4 }
 0x227   :  { %v585_v2 = vsel %vm280_vm8, %v584_v52, %v4796_v34  ;;  %v270_v3 = vpop.permute.xlu0 %269  ;;  %v525_v4 = vpop.permute.xlu2 %524  ;;  %v657_v5 = vsel %vm280_vm8, %v656_v43, %v581_v46  ;;  %v335_v6 = vsel %vm280_vm8, 0.0, %v334_v60  ;;  %v403_v7 = vsel %vm280_vm8, %v334_v60, %v323_v49 }
 0x228   :  { %v598_v8 = vrot.slane %v513_v29, 4  ;;  %v333_v9 = vsel %vm280_vm8, 0.0, %v332_v59  ;;  %v398_v10 = vsel %vm280_vm8, %v397_v1, %v329_v63  ;;  %v591_v12 = vperm.slane %v585_v2, %v4813_v42 }
 0x229   :  { %v350_v13 = vrot.slane %v4861_v62, 4  ;;  %v4877_v15 = vperm.slane %v403_v7, %v4813_v42  ;;  %v408_v34 = vrot.slane %v335_v6, 4  ;;  %v595_v16 = vperm.slane %v587_v57, %v4813_v42 }
 0x22a   :  { %v336_v17 = vrot.slane %v270_v3, 4  ;;  %v416_v18 = vrot.slane %v4865_v0, 4  ;;  %v339_v20 = vsel %vm280_vm8, %v270_v3, %v338_v44  ;;  %v596_v21 = vrot.slane %v525_v4, 4 }
 0x22b   :  { %v599_v22 = vsel %vm280_vm8, %v525_v4, %v598_v8  ;;  %v4884_v14 = vperm.slane %v398_v10, %v4813_v42  ;;  %v622_v25 = vrot.slane %v595_v16, 4  ;;  %v610_v28 = vrot.slane %v591_v12, 4 }
 0x22c   :  { %v337_v26 = vsel %vm280_vm8, %v336_v17, %v4794_v33  ;;  %v607_v27 = vperm.slane %v599_v22, %v4813_v42  ;;  %v597_v32 = vsel %vm280_vm8, %v596_v21, %v513_v29  ;;  %v577_v35 = vsel %vm280_vm8, 0.0, %v576_v45 }
 0x22d   :  { %v640_v36 = vsel %vm280_vm8, %v578_v31, %v559_v30  ;;  %v4893_v37 = vperm.slane %v339_v20, %v4813_v42  ;;  %v603_v38 = vperm.slane %v597_v32, %v4813_v42  ;;  %v343_v41 = vperm.slane %v337_v26, %v4813_v42 }
 0x22e   :  { %v620_v39 = vrot.slane %v607_v27, 4  ;;  %v623_v40 = vsel %vm280_vm8, %v607_v27, %v622_v25  ;;  %v644_v43 = vperm.slane %v640_v36, %v4813_v42  ;;  %v646_v29 = vsel %vm280_vm8, %v645_v53, %v577_v35 }
 0x22f   :  { %v631_v33 = vperm.slane %v623_v40, %v4821_v56  ;;  %v276_v44 = vpop.permute.xlu2 %275  ;;  %v608_v45 = vrot.slane %v603_v38, 4  ;;  %v611_v30 = vsel %vm280_vm8, %v603_v38, %v610_v28  ;;  %v650_v46 = vperm.slane %v646_v29, %v4813_v42 }
 0x230   :  { %v621_v31 = vsel %vm280_vm8, %v620_v39, %v595_v16  ;;  %v619_v47 = vperm.slane %v611_v30, %v4821_v56  ;;  %v661_v50 = vperm.slane %v657_v5, %v4813_v42  ;;  %v664_v52 = vrot.slane %v644_v43, 4 }
 0x231   :  { %v627_v48 = vperm.slane %v621_v31, %v4821_v56  ;;  %v638_v49 = vrot.slane %v631_v33, 4  ;;  %v609_v51 = vsel %vm280_vm8, %v608_v45, %v591_v12  ;;  %v676_v53 = vrot.slane %v4856_v54, 4 }
 0x232   :  { %v348_v55 = vrot.slane %v276_v44, 4  ;;  %v615_v57 = vperm.slane %v609_v51, %v4821_v56  ;;  %v634_v58 = vrot.slane %v619_v47, 4  ;;  %v665_v1 = vsel %vm280_vm8, %v650_v46, %v664_v52 }
 0x233   :  { %v636_v59 = vrot.slane %v627_v48, 4  ;;  %v639_v60 = vsel %vm280_vm8, 0.0, %v638_v49  ;;  %v705_v61 = vsel %vm280_vm8, %v638_v49, %v627_v48  ;;  %v677_v2 = vsel %vm280_vm8, %v661_v50, %v676_v53 }
 0x234   :  { %v710_v63 = vrot.slane %v639_v60, 4  ;;  %v409_v3 = vsel %vm280_vm8, %v408_v34, %v333_v9  ;;  %v632_v4 = vrot.slane %v615_v57, 4  ;;  %v4916_v5 = vsel %vm280_vm8, 0.0, %v634_v58 }
 0x235   :  { %v637_v6 = vsel %vm280_vm8, 0.0, %v636_v59  ;;  %v362_v7 = vrot.slane %v343_v41, 4  ;;  %v374_v8 = vrot.slane %v4893_v37, 4  ;;  %v4921_v10 = vsel %vm280_vm8, %v634_v58, %v615_v57 }
 0x236   :  { %v673_v12 = vperm.slane %v665_v1, %v4821_v56  ;;  %v699_v16 = vrot.slane %v4916_v5, 4  ;;  %v4926_v17 = vperm.slane %v705_v61, %v4813_v42  ;;  %v685_v9 = vperm.slane %v677_v2, %v4821_v56 }
 0x237   :  { %v349_v34 = vsel %vm280_vm8, %v348_v55, %v4861_v62  ;;  %v711_v20 = vsel %vm280_vm8, %v710_v63, %v637_v6  ;;  %v351_v21 = vsel %vm280_vm8, %v276_v44, %v350_v13  ;;  %v662_v25 = vrot.slane %v650_v46, 4 }
 0x238   :  { %v355_v22 = vperm.slane %v349_v34, %v4813_v42  ;;  %v4935_v26 = vsel %vm280_vm8, 0.0, %v632_v4  ;;  %v690_v27 = vrot.slane %v685_v9, 4  ;;  %v359_v28 = vperm.slane %v351_v21, %v4813_v42 }
 0x239   :  { %v674_v32 = vrot.slane %v661_v50, 4  ;;  %v663_v38 = vsel %vm280_vm8, %v662_v25, %v644_v43  ;;  %v692_v62 = vrot.slane %v673_v12, 4  ;;  %v715_v1 = vperm.slane %v711_v20, %v4813_v42 }
 0x23a   :  { %v360_v35 = vrot.slane %v355_v22, 4  ;;  %v363_v36 = vsel %vm280_vm8, %v355_v22, %v362_v7  ;;  %v691_v39 = vsel %vm280_vm8, %v690_v27, %v673_v12  ;;  %v372_v40 = vrot.slane %v359_v28, 4 }
 0x23b   :  { %v371_v13 = vperm.slane %v363_v36, %v4821_v56  ;;  %v375_v33 = vsel %vm280_vm8, %v359_v28, %v374_v8  ;;  %v750_v29 = vpack.c.bf16 %v691_v39, %v691_v39  ;;  %v669_v30 = vperm.slane %v663_v38, %v4821_v56 }
 0x23c   :  { %v361_v44 = vsel %vm280_vm8, %v360_v35, %v343_v41  ;;  %v383_v45 = vperm.slane %v375_v33, %v4821_v56  ;;  %v373_v43 = vsel %vm280_vm8, %v372_v40, %v4893_v37  ;;  %v675_v47 = vsel %vm280_vm8, %v674_v32, %v4856_v54 }
 0x23d   :  { %v367_v31 = vperm.slane %v361_v44, %v4821_v56  ;;  %v386_v46 = vrot.slane %v371_v13, 4  ;;  %v1071_v48 = vsel %vm1028_vm9, %v750_v29, 0  ;;  %v379_v49 = vperm.slane %v373_v43, %v4821_v56 }
 0x23e   :  { %v390_v50 = vrot.slane %v383_v45, 4  ;;  %v681_v41 = vperm.slane %v675_v47, %v4821_v56  ;;  %1080 = vmatpush.bf16.xpose.msrb.mxu0 %v1071_v48  ;;  %v693_v55 = vsel %vm280_vm8, %v685_v9, %v692_v62  ;;  %v730_v2 = vrot.slane %v4926_v17, 4 }
 0x23f   :  { %v384_v51 = vrot.slane %v367_v31, 4  ;;  %v387_v52 = vsel %vm280_vm8, 0.0, %v386_v46  ;;  %v446_v53 = vsel %vm280_vm8, %v386_v46, %v367_v31  ;;  %v388_v37 = vrot.slane %v379_v49, 4 }
 0x240   :  { %v391_v57 = vsel %vm280_vm8, 0.0, %v390_v50  ;;  %v4959_v54 = vperm.slane %v446_v53, %v4813_v42  ;;  %v451_v58 = vrot.slane %v387_v52, 4  ;;  %v457_v60 = vsel %vm280_vm8, %v390_v50, %v379_v49 }
 0x241   :  { %v385_v59 = vsel %vm280_vm8, 0.0, %v384_v51  ;;  %v462_v61 = vrot.slane %v391_v57, 4  ;;  %v686_v63 = vrot.slane %v681_v41, 4  ;;  %v389_v4 = vsel %vm280_vm8, 0.0, %v388_v37 }
 0x242   :  { %v413_v6 = vperm.slane %v409_v3, %v4813_v42  ;;  %v452_v7 = vsel %vm280_vm8, %v451_v58, %v385_v59  ;;  %v4969_v8 = vperm.slane %v457_v60, %v4813_v42  ;;  %v751_v9 = vpack.c.bf16 %v693_v55, %v693_v55 }
 0x243   :  { %v687_v12 = vsel %vm280_vm8, %v686_v63, %v669_v30  ;;  %v463_v34 = vsel %vm280_vm8, %v462_v61, %v389_v4  ;;  %v470_v21 = vrot.slane %v4959_v54, 4  ;;  %v688_v20 = vrot.slane %v669_v30, 4 }
 0x244   :  { %v748_v22 = vpack.c.bf16 %v687_v12, %v687_v12  ;;  %v1090_v25 = vsel %vm1028_vm9, %v751_v9, 0  ;;  %v417_v3 = vsel %vm280_vm8, %v4884_v14, %v416_v18  ;;  %v428_v27 = vrot.slane %v4877_v15, 4 }
 0x245   :  { %v414_v28 = vrot.slane %v4884_v14, 4  ;;  %v456_v32 = vperm.slane %v452_v7, %v4813_v42  ;;  %1099 = vmatpush.bf16.xpose.msrb.mxu1 %v1090_v25  ;;  %v689_v36 = vsel %vm280_vm8, %v681_v41, %v688_v20  ;;  %v425_v38 = vperm.slane %v417_v3, %v4821_v56 }
 0x246   :  { %v1033_v35 = vsel %vm1028_vm9, %v748_v22, 0  ;;  %v4986_v62 = vperm.slane %v463_v34, %v4813_v42  ;;  %v749_v39 = vpack.c.bf16 %v689_v36, %v689_v36  ;;  %v429_v18 = vsel %vm280_vm8, %v413_v6, %v428_v27 }
 0x247   :  { %1042 = vmatpush.bf16.xpose.msra.mxu3 %v1033_v35  ;;  %v426_v13 = vrot.slane %v413_v6, 4  ;;  %v437_v40 = vperm.slane %v429_v18, %v4821_v56  ;;  %v415_v14 = vsel %vm280_vm8, %v414_v28, %v4865_v0  ;;  %v444_v33 = vrot.slane %v425_v38, 4 }
 0x248   :  { %v698_v29 = vperm.slane %v4921_v10, %v4813_v42  ;;  %v1052_v44 = vsel %vm1028_vm9, %v749_v39, 0  ;;  %v700_v30 = vsel %vm280_vm8, %v699_v16, %v4935_v26  ;;  %v731_v31 = vsel %vm280_vm8, %v715_v1, %v730_v2 }
 0x249   :  { %v427_v45 = vsel %vm280_vm8, %v426_v13, %v4877_v15  ;;  %v482_v43 = vrot.slane %v4969_v8, 4  ;;  %v442_v0 = vrot.slane %v437_v40, 4  ;;  %v445_v10 = vsel %vm280_vm8, %v437_v40, %v444_v33 }
 0x24a   :  { %v5004_v46 = vperm.slane %v427_v45, %v4821_v56  ;;  %v503_v47 = vpack.c.bf16 %v445_v10, %v445_v10  ;;  %v704_v48 = vperm.slane %v700_v30, %v4813_v42  ;;  %v718_v15 = vrot.slane %v698_v29, 4 }
 0x24b   :  { %v739_v49 = vperm.slane %v731_v31, %v4821_v56  ;;  %v443_v5 = vsel %vm280_vm8, %v442_v0, %v425_v38  ;;  %v421_v16 = vperm.slane %v415_v14, %v4821_v56  ;;  %v728_v50 = vrot.slane %v715_v1, 4 }
 0x24c   :  { %v438_v26 = vrot.slane %v5004_v46, 4  ;;  %v502_v41 = vpack.c.bf16 %v443_v5, %v443_v5  ;;  %4037 = vmatmul.msk.bf16.vlgmr.msrb.gmra.mxu1 %vm1028_vm9, %v503_v47  ;;  %v719_v51 = vsel %vm280_vm8, %v704_v48, %v718_v15  ;;  %v716_v53 = vrot.slane %v704_v48, 4  ;;  %v5057_v15 = vld [vmem:[%s6206_s1] sm:$0xff]  ;;  %s4632_s1 = smov 48  }
 0x24d   :  { %v744_v52 = vrot.slane %v739_v49, 4  ;;  %v727_v37 = vperm.slane %v719_v51, %v4821_v56  ;;  %v729_v57 = vsel %vm280_vm8, %v728_v50, %v4926_v17  ;;  %v471_v58 = vsel %vm280_vm8, %v456_v32, %v470_v21 }
 0x24e   :  { %v439_v55 = vsel %vm280_vm8, %v438_v26, %v421_v16  ;;  %4036 = vmatmul.msk.bf16.vlgmr.msrb.gmra.mxu0 %vm1028_vm9, %v502_v41  ;;  %v717_v60 = vsel %vm280_vm8, %v716_v53, %v698_v29  ;;  %v735_v61 = vperm.slane %v729_v57, %v4821_v56  ;;  %v483_v63 = vsel %vm280_vm8, %v4986_v62, %v482_v43  ;;  %v254_v53 = vpop.f32.mrf.mxu2 }
 0x24f   :  { %1061 = vmatpush.bf16.xpose.msrb.mxu3 %v1052_v44  ;;  %v500_v59 = vpack.c.bf16 %v439_v55, %v439_v55  ;;  %v745_v1 = vsel %vm280_vm8, %v744_v52, %v727_v37  ;;  %v723_v2 = vperm.slane %v717_v60, %v4821_v56  ;;  %v746_v4 = vrot.slane %v727_v37, 4 }
 0x250   :  { %v491_v6 = vperm.slane %v483_v63, %v4821_v56  ;;  %v480_v17 = vrot.slane %v4986_v62, 4  ;;  %v754_v7 = vpack.c.bf16 %v745_v1, %v745_v1  ;;  %v740_v12 = vrot.slane %v735_v61, 4 }
 0x251   :  { %4034 = vmatmul.msk.bf16.vlgmr.msra.gmra.mxu3 %vm1028_vm9, %v500_v59  ;;  %v468_v9 = vrot.slane %v456_v32, 4  ;;  %v742_v34 = vrot.slane %v723_v2, 4  ;;  %v747_v21 = vsel %vm280_vm8, %v739_v49, %v746_v4  ;;  %v479_v22 = vperm.slane %v471_v58, %v4821_v56 }
 0x252   :  { %v1147_v20 = vsel %vm1028_vm9, %v754_v7, 0  ;;  %v741_v25 = vsel %vm280_vm8, %v740_v12, %v723_v2  ;;  %v755_v3 = vpack.c.bf16 %v747_v21, %v747_v21  ;;  %v496_v36 = vrot.slane %v491_v6, 4 }
 0x253   :  { %v469_v27 = vsel %vm280_vm8, %v468_v9, %v4959_v54  ;;  %1156 = vmatpush.bf16.xpose.msra.mxu0 %v1147_v20  ;;  %v752_v28 = vpack.c.bf16 %v741_v25, %v741_v25  ;;  %v743_v35 = vsel %vm280_vm8, %v735_v61, %v742_v34  ;;  %v481_v62 = vsel %vm280_vm8, %v480_v17, %v4969_v8 }
 0x254   :  { %v1166_v32 = vsel %vm1028_vm9, %v755_v3, 0  ;;  %v753_v38 = vpack.c.bf16 %v743_v35, %v743_v35  ;;  %v475_v18 = vperm.slane %v469_v27, %v4821_v56  ;;  %v487_v13 = vperm.slane %v481_v62, %v4821_v56 }
 0x255   :  { %v1109_v39 = vsel %vm1028_vm9, %v752_v28, 0  ;;  %1175 = vmatpush.bf16.xpose.msra.mxu1 %v1166_v32  ;;  %v498_v40 = vrot.slane %v479_v22, 4  ;;  %v440_v14 = vrot.slane %v421_v16, 4  ;;  %v497_v33 = vsel %vm280_vm8, %v496_v36, %v479_v22 }
 0x256   :  { %1118 = vmatpush.bf16.xpose.msrb.mxu2 %v1109_v39  ;;  %v1128_v54 = vsel %vm1028_vm9, %v753_v38, 0  ;;  %v492_v29 = vrot.slane %v487_v13, 4  ;;  %v506_v30 = vpack.c.bf16 %v497_v33, %v497_v33  ;;  %v494_v10 = vrot.slane %v475_v18, 4  ;;  %v256_v1 = vpop.f32.mrf.mxu2 }
 0x257   :  { %1137 = vmatpush.bf16.xpose.msra.mxu3 %v1128_v54  ;;  %v499_v44 = vsel %vm280_vm8, %v491_v6, %v498_v40  ;;  %v441_v43 = vsel %vm280_vm8, %v5004_v46, %v440_v14  ;;  %v1007_v46 = vrot.slane %v5057_v15, 3  ;;  %v1006_v49 = vrot.slane %v5057_v15, 2 }
 0x258   :  { %v507_v45 = vpack.c.bf16 %v499_v44, %v499_v44  ;;  %v493_v8 = vsel %vm280_vm8, %v492_v29, %v475_v18  ;;  %v501_v0 = vpack.c.bf16 %v441_v43, %v441_v43  ;;  %v495_v47 = vsel %vm280_vm8, %v487_v13, %v494_v10 }
 0x259   :  { %v504_v31 = vpack.c.bf16 %v493_v8, %v493_v8  ;;  %v505_v48 = vpack.c.bf16 %v495_v47, %v495_v47  ;;  %v5061_v5 = vperm.slane %v1007_v46, 0  ;;  %v5063_v16 = vperm.slane %v1006_v49, 0 }
 0x25a   :  { %v1012_v37 = vperm.slane %v5057_v15, 0  ;;  %v1010_v61 = vrot.slane %v5057_v15, 6  ;;  %v1008_v6 = vrot.slane %v5057_v15, 4  ;;  %v1011_v21 = vrot.slane %v5057_v15, 7 }
 0x25b   :  { %v1005_v32 = vrot.slane %v5057_v15, 1  ;;  %v1009_v13 = vrot.slane %v5057_v15, 5  ;;  %v146_v54 = vperm.slane %v4787_v19, 2 }
 0x25c   :  { %4041 = vmatmul.msk.bf16.vlgmr.msra.gmra.mxu1 %vm1028_vm9, %v507_v45  ;;  %v5077_v2 = vperm.slane %v1010_v61, 0  ;;  %v5081_v9 = vperm.slane %v1008_v6, 0  ;;  %v5088_v3 = vperm.slane %v1011_v21, 0 }
 0x25d   :  { %4038 = vmatmul.msk.bf16.vlgmr.msrb.gmra.mxu2 %vm1028_vm9, %v504_v31  ;;  %v5096_v62 = vperm.slane %v1005_v32, 0  ;;  %v5103_v14 = vperm.slane %v1009_v13, 0  ;;  %v5105_v33 = vadd.f32 %v256_v1, %v146_v54  ;;  %v5108_v45 = vadd.f32 %v254_v53, %v146_v54 }
 0x25e   :  { %4040 = vmatmul.msk.bf16.vlgmr.msra.gmra.mxu0 %vm1028_vm9, %v506_v30 }
 0x25f   :  { %v4393_v31 = vpack.i.bf16 %v5105_v33, %v5108_v45  ;;  %v834_v13 = vrot.slane %v5105_v33, 4 }
 0x261   :  { %4035 = vmatmul.msk.bf16.vlgmr.msrb.gmra.mxu3 %vm1028_vm9, %v501_v0 }
 0x271   :  { %4039 = vmatmul.msk.bf16.vlgmr.msra.gmra.mxu3 %vm1028_vm9, %v505_v48 }
 0x2c9   :  { %v1101_v26 = vpop.f32.mrf.mxu1 }
 0x2ca   :  { %v5066_v50 = vadd.f32 %v1101_v26, %v5061_v5 }
 0x2cb   :  { %v1082_v41 = vpop.f32.mrf.mxu0 }
 0x2cc   :  { %v1083_v51 = vadd.f32 %v1082_v41, %v5063_v16  ;;  %v1191_v52 = vsel %vm1181_vm10, %v5066_v50, -inf }
 0x2cd   :  { %1192 = vmax.xlane.f32.xlu1 %v1191_v52 }
 0x2ce   :  { %v1188_v55 = vsel %vm1181_vm10, %v1083_v51, -inf }
 0x2cf   :  { %1189 = vmax.xlane.f32.xlu2 %v1188_v55 }
 0x2d1   :  { %v1103_v57 = vpop.f32.mrf.mxu1 }
 0x2d3   :  { %v1084_v59 = vpop.f32.mrf.mxu0 }
 0x2d4   :  { %v1044_v58 = vpop.f32.mrf.mxu3 }
 0x2d5   :  { %v1045_v60 = vadd.f32 %v1044_v58, %v1012_v37 }
 0x2d7   :  { %v1182_v63 = vsel %vm1181_vm10, %v1045_v60, -inf }
 0x2d8   :  { %1183 = vmax.xlane.f32.xlu1 %v1182_v63 }
 0x2d9   :  { %v1177_v4 = vpop.f32.mrf.mxu1 }
 0x2da   :  { %v5093_v36 = vadd.f32 %v1177_v4, %v5088_v3 }
 0x2db   :  { %v1158_v7 = vpop.f32.mrf.mxu0 }
 0x2dc   :  { %v1046_v17 = vpop.f32.mrf.mxu3  ;;  %v1159_v12 = vadd.f32 %v1158_v7, %v5077_v2  ;;  %v1203_v18 = vsel %vm1181_vm10, %v5093_v36, -inf }
 0x2de   :  { %v1200_v34 = vsel %vm1181_vm10, %v1159_v12, -inf }
 0x2e0   :  { %1201 = vmax.xlane.f32.xlu1 %v1200_v34  ;;  %v1120_v22 = vpop.f32.mrf.mxu2 }
 0x2e1   :  { %v5086_v20 = vadd.f32 %v1120_v22, %v5081_v9  ;;  %v1179_v25 = vpop.f32.mrf.mxu1 }
 0x2e3   :  { %v1160_v28 = vpop.f32.mrf.mxu0  ;;  %v1194_v35 = vsel %vm1181_vm10, %v5086_v20, -inf }
 0x2e4   :  { %v1063_v27 = vpop.f32.mrf.mxu3  ;;  %1195 = vmax.xlane.f32.xlu0 %v1194_v35 }
 0x2e5   :  { %v1064_v40 = vadd.f32 %v1063_v27, %v5096_v62 }
 0x2e7   :  { %v1185_v44 = vsel %vm1181_vm10, %v1064_v40, -inf }
 0x2e8   :  { %v1122_v38 = vpop.f32.mrf.mxu2 }
 0x2ec   :  { %v1065_v39 = vpop.f32.mrf.mxu3  ;;  %1204 = vmax.xlane.f32.xlu0 %v1203_v18 }
 0x2f4   :  { %v1139_v29 = vpop.f32.mrf.mxu3  ;;  %1186 = vmax.xlane.f32.xlu0 %v1185_v44 }
 0x2f5   :  { %v1140_v8 = vadd.f32 %v1139_v29, %v5103_v14  ;;  %v778_v29 = vrot.slane %v5108_v45, 4 }
 0x2f7   :  { %v1197_v30 = vsel %vm1181_vm10, %v1140_v8, -inf }
 0x2f8   :  { %1198 = vmax.xlane.f32.xlu2 %v1197_v30 }
 0x2f9   :  { %4394 = vrot.lane.b32.xlu1 %v4393_v31, %s4629_s0 }
 0x2fc   :  { %v1141_v19 = vpop.f32.mrf.mxu3 }
 0x308   :  { %4399 = vrot.lane.b32.xlu0 %v4393_v31, %s4627_s3 }
 0x310   :  { %4389 = vrot.lane.b32.xlu2 %v4393_v31, %s4628_s11 }
 0x340   :  { %v1193_v43 = vpop.xlane.xlu1 %1192 }
 0x341   :  { %v1209_v26 = vsub.f32 %v5066_v50, %v1193_v43 }
 0x342   :  { %v1190_v0 = vpop.xlane.xlu2 %1189 }
 0x343   :  { %v1208_v10 = vsub.f32 %v1083_v51, %v1190_v0  ;;  %v1220_v53 = vmul.f32 1.442695, %v1209_v26 }
 0x345   :  { %v1218_v47 = vmul.f32 1.442695, %v1208_v10 }
 0x347   :  { %4478 = vpow2.f32 %v1218_v47 }
 0x34b   :  { %v1184_v48 = vpop.xlane.xlu1 %1183 }
 0x34c   :  { %v1206_v46 = vsub.f32 %v1045_v60, %v1184_v48 }
 0x34d   :  { %v5117_v49 = vpop.eup %4478 }
 0x34e   :  { %v1214_v41 = vmul.f32 1.442695, %v1206_v46  ;;  %v1236_v52 = vsel %vm1181_vm10, %v5117_v49, 0.0 }
 0x34f   :  { %1237 = vadd.xlane.f32.xlu1 %v1236_v52 }
 0x350   :  { %4480 = vpow2.f32 %v1214_v41 }
 0x351   :  { %4482 = vpow2.f32 %v1220_v53 }
 0x353   :  { %v1202_v55 = vpop.xlane.xlu1 %1201 }
 0x354   :  { %v1212_v51 = vsub.f32 %v1159_v12, %v1202_v55 }
 0x356   :  { %v5122_v57 = vpop.eup %4480  ;;  %v1226_v60 = vmul.f32 1.442695, %v1212_v51 }
 0x357   :  { %v1230_v58 = vsel %vm1181_vm10, %v5122_v57, 0.0  ;;  %v1196_v59 = vpop.xlane.xlu0 %1195  ;;  %v5126_v61 = vpop.eup %4482 }
 0x358   :  { %1231 = vadd.xlane.f32.xlu2 %v1230_v58  ;;  %4484 = vpow2.f32 %v1226_v60  ;;  %v1239_v50 = vsel %vm1181_vm10, %v5126_v61, 0.0  ;;  %v1210_v7 = vsub.f32 %v5086_v20, %v1196_v59 }
 0x35a   :  { %v1222_v25 = vmul.f32 1.442695, %v1210_v7 }
 0x35e   :  { %v5130_v1 = vpop.eup %4484 }
 0x35f   :  { %v1205_v63 = vpop.xlane.xlu0 %1204  ;;  %v1248_v4 = vsel %vm1181_vm10, %v5130_v1, 0.0 }
 0x360   :  { %1240 = vadd.xlane.f32.xlu2 %v1239_v50  ;;  %v1213_v35 = vsub.f32 %v5093_v36, %v1205_v63 }
 0x362   :  { %v1228_v20 = vmul.f32 1.442695, %v1213_v35 }
 0x367   :  { %v1187_v6 = vpop.xlane.xlu0 %1186 }
 0x368   :  { %1249 = vadd.xlane.f32.xlu2 %v1248_v4  ;;  %v1207_v17 = vsub.f32 %v1064_v40, %v1187_v6 }
 0x36a   :  { %v1216_v34 = vmul.f32 1.442695, %v1207_v17 }
 0x36b   :  { %v1199_v12 = vpop.xlane.xlu2 %1198  ;;  %v4395_v22 = vpop.permute.xlu1 %4394 }
 0x36c   :  { %v1211_v21 = vsub.f32 %v1140_v8, %v1199_v12  ;;  %4486 = vpow2.f32 %v1216_v34  ;;  %v4396_v28 = vunpack.i.l.bf16 %v4395_v22  ;;  %v4397_v32 = vunpack.i.h.bf16 %v4395_v22 }
 0x36e   :  { %v1224_v27 = vmul.f32 1.442695, %v1211_v21  ;;  %v776_v39 = vrot.slane %v4396_v28, 4  ;;  %v832_v44 = vrot.slane %v4397_v32, 4  ;;  %v835_v36 = vsel %vm280_vm8, %v4397_v32, %v834_v13 }
 0x36f   :  { %v779_v19 = vsel %vm280_vm8, %v4396_v28, %v778_v29  ;;  %v843_v47 = vperm.slane %v835_v36, %v4813_v42 }
 0x370   :  { %4488 = vpow2.f32 %v1224_v27  ;;  %v777_v31 = vsel %vm280_vm8, %v776_v39, %v5108_v45  ;;  %v833_v10 = vsel %vm280_vm8, %v832_v44, %v5105_v33  ;;  %v787_v46 = vperm.slane %v779_v19, %v4813_v42 }
 0x371   :  { %4490 = vpow2.f32 %v1222_v25  ;;  %v783_v48 = vperm.slane %v777_v31, %v4813_v42  ;;  %v839_v51 = vperm.slane %v833_v10, %v4813_v42  ;;  %v870_v63 = vrot.slane %v843_v47, 4 }
 0x372   :  { %v5136_v38 = vpop.eup %4486  ;;  %4492 = vpow2.f32 %v1228_v20  ;;  %v814_v7 = vrot.slane %v787_v46, 4 }
 0x373   :  { %v1233_v18 = vsel %vm1181_vm10, %v5136_v38, 0.0  ;;  %v4390_v40 = vpop.permute.xlu2 %4389  ;;  %v802_v17 = vrot.slane %v783_v48, 4  ;;  %v858_v28 = vrot.slane %v839_v51, 4 }
 0x374   :  { %1234 = vadd.xlane.f32.xlu0 %v1233_v18  ;;  %v4392_v43 = vunpack.i.h.bf16 %v4390_v40  ;;  %v4391_v0 = vunpack.i.l.bf16 %v4390_v40 }
 0x376   :  { %v5141_v54 = vpop.eup %4488  ;;  %v846_v45 = vrot.slane %v4392_v43, 4  ;;  %v790_v52 = vrot.slane %v4391_v0, 4 }
 0x377   :  { %v1245_v8 = vsel %vm1181_vm10, %v5141_v54, 0.0  ;;  %v5147_v30 = vpop.eup %4490 }
 0x378   :  { %1246 = vadd.xlane.f32.xlu1 %v1245_v8  ;;  %v1242_v41 = vsel %vm1181_vm10, %v5147_v30, 0.0  ;;  %v5162_v50 = vpop.eup %4492 }
 0x379   :  { %v1251_v39 = vsel %vm1181_vm10, %v5162_v50, 0.0 }
 0x37a   :  { %v4400_v26 = vpop.permute.xlu0 %4399 }
 0x37b   :  { %v4402_v53 = vunpack.i.h.bf16 %v4400_v26  ;;  %v4401_v55 = vunpack.i.l.bf16 %v4400_v26 }
 0x37c   :  { %1243 = vadd.xlane.f32.xlu0 %v1242_v41 }
 0x37d   :  { %v844_v58 = vrot.slane %v4402_v53, 4  ;;  %v847_v33 = vsel %vm280_vm8, %v4402_v53, %v846_v45  ;;  %v788_v59 = vrot.slane %v4401_v55, 4  ;;  %v791_v60 = vsel %vm280_vm8, %v4401_v55, %v790_v52 }
 0x37e   :  { %v855_v4 = vperm.slane %v847_v33, %v4813_v42  ;;  %v799_v6 = vperm.slane %v791_v60, %v4813_v42 }
 0x37f   :  { %v845_v12 = vsel %vm280_vm8, %v844_v58, %v4392_v43  ;;  %v789_v34 = vsel %vm280_vm8, %v788_v59, %v4391_v0 }
 0x380   :  { %v851_v21 = vperm.slane %v845_v12, %v4813_v42  ;;  %v868_v22 = vrot.slane %v855_v4, 4  ;;  %v795_v25 = vperm.slane %v789_v34, %v4813_v42  ;;  %v812_v27 = vrot.slane %v799_v6, 4 }
 0x381   :  { %v815_v35 = vsel %vm280_vm8, %v799_v6, %v814_v7  ;;  %v871_v32 = vsel %vm280_vm8, %v855_v4, %v870_v63 }
 0x382   :  { %v856_v18 = vrot.slane %v851_v21, 4  ;;  %v800_v20 = vrot.slane %v795_v25, 4  ;;  %v803_v13 = vsel %vm280_vm8, %v795_v25, %v802_v17  ;;  %v813_v40 = vsel %vm280_vm8, %v812_v27, %v787_v46 }
 0x383   :  { %v811_v29 = vperm.slane %v803_v13, %v4821_v56  ;;  %v819_v44 = vperm.slane %v813_v40, %v4821_v56  ;;  %v823_v36 = vperm.slane %v815_v35, %v4821_v56  ;;  %v859_v8 = vsel %vm280_vm8, %v851_v21, %v858_v28 }
 0x384   :  { %v801_v31 = vsel %vm280_vm8, %v800_v20, %v783_v48  ;;  %v857_v19 = vsel %vm280_vm8, %v856_v18, %v839_v51  ;;  %v867_v43 = vperm.slane %v859_v8, %v4821_v56  ;;  %v869_v0 = vsel %vm280_vm8, %v868_v22, %v843_v47  ;;  %1252 = vadd.xlane.f32.xlu0 %v1251_v39 }
 0x385   :  { %v807_v10 = vperm.slane %v801_v31, %v4821_v56  ;;  %v826_v46 = vrot.slane %v811_v29, 4  ;;  %v828_v26 = vrot.slane %v819_v44, 4  ;;  %v830_v41 = vrot.slane %v823_v36, 4 }
 0x386   :  { %v863_v45 = vperm.slane %v857_v19, %v4821_v56  ;;  %v875_v52 = vperm.slane %v869_v0, %v4821_v56  ;;  %v879_v53 = vperm.slane %v871_v32, %v4821_v56  ;;  %v882_v55 = vrot.slane %v867_v43, 4 }
 0x387   :  { %v824_v48 = vrot.slane %v807_v10, 4  ;;  %v827_v51 = vsel %vm280_vm8, 0.0, %v826_v46  ;;  %v829_v58 = vsel %vm280_vm8, 0.0, %v828_v26  ;;  %v831_v47 = vsel %vm280_vm8, 0.0, %v830_v41 }
 0x388   :  { %v880_v33 = vrot.slane %v863_v45, 4  ;;  %v883_v59 = vsel %vm280_vm8, 0.0, %v882_v55  ;;  %v884_v60 = vrot.slane %v875_v52, 4  ;;  %v886_v63 = vrot.slane %v879_v53, 4 }
 0x389   :  { %v893_v4 = vrot.slane %v827_v51, 4  ;;  %v899_v6 = vsel %vm280_vm8, %v830_v41, %v819_v44  ;;  %v904_v17 = vrot.slane %v831_v47, 4  ;;  %v947_v7 = vrot.slane %v883_v59, 4 }
 0x38a   :  { %v885_v12 = vsel %vm280_vm8, 0.0, %v884_v60  ;;  %v887_v34 = vsel %vm280_vm8, 0.0, %v886_v63  ;;  %v903_v21 = vperm.slane %v899_v6, %v4813_v42  ;;  %v953_v22 = vsel %vm280_vm8, %v886_v63, %v875_v52 }
 0x38b   :  { %v957_v25 = vperm.slane %v953_v22, %v4813_v42  ;;  %v958_v27 = vrot.slane %v887_v34, 4  ;;  %v825_v28 = vsel %vm280_vm8, 0.0, %v824_v48  ;;  %v888_v35 = vsel %vm280_vm8, %v826_v46, %v807_v10 }
 0x38c   :  { %v892_v32 = vperm.slane %v888_v35, %v4813_v42  ;;  %v894_v39 = vsel %vm280_vm8, %v893_v4, %v825_v28  ;;  %v905_v18 = vsel %vm280_vm8, %v904_v17, %v829_v58  ;;  %v924_v20 = vrot.slane %v903_v21, 4 }
 0x38d   :  { %v898_v13 = vperm.slane %v894_v39, %v4813_v42  ;;  %v909_v40 = vperm.slane %v905_v18, %v4813_v42  ;;  %v881_v29 = vsel %vm280_vm8, 0.0, %v880_v33  ;;  %v942_v44 = vsel %vm280_vm8, %v882_v55, %v863_v45 }
 0x38e   :  { %v912_v36 = vrot.slane %v892_v32, 4  ;;  %v946_v8 = vperm.slane %v942_v44, %v4813_v42  ;;  %v948_v31 = vsel %vm280_vm8, %v947_v7, %v881_v29  ;;  %v959_v19 = vsel %vm280_vm8, %v958_v27, %v885_v12 }
 0x38f   :  { %v925_v43 = vsel %vm280_vm8, %v909_v40, %v924_v20  ;;  %v952_v0 = vperm.slane %v948_v31, %v4813_v42  ;;  %v963_v10 = vperm.slane %v959_v19, %v4813_v42  ;;  %v978_v46 = vrot.slane %v957_v25, 4 }
 0x390   :  { %v913_v26 = vsel %vm280_vm8, %v898_v13, %v912_v36  ;;  %v933_v41 = vperm.slane %v925_v43, %v4821_v56  ;;  %v966_v52 = vrot.slane %v946_v8, 4  ;;  %v910_v45 = vrot.slane %v898_v13, 4 }
 0x391   :  { %v921_v53 = vperm.slane %v913_v26, %v4821_v56  ;;  %v979_v55 = vsel %vm280_vm8, %v963_v10, %v978_v46  ;;  %v922_v48 = vrot.slane %v909_v40, 4  ;;  %v964_v51 = vrot.slane %v952_v0, 4 }
 0x392   :  { %v938_v58 = vrot.slane %v933_v41, 4  ;;  %v967_v47 = vsel %vm280_vm8, %v952_v0, %v966_v52  ;;  %v987_v33 = vperm.slane %v979_v55, %v4821_v56  ;;  %v911_v59 = vsel %vm280_vm8, %v910_v45, %v892_v32 }
 0x393   :  { %v975_v60 = vperm.slane %v967_v47, %v4821_v56  ;;  %v917_v63 = vperm.slane %v911_v59, %v4821_v56  ;;  %v923_v4 = vsel %vm280_vm8, %v922_v48, %v903_v21  ;;  %v940_v6 = vrot.slane %v921_v53, 4 }
 0x394   :  { %v939_v17 = vsel %vm280_vm8, %v938_v58, %v921_v53  ;;  %v992_v7 = vrot.slane %v987_v33, 4  ;;  %v929_v12 = vperm.slane %v923_v4, %v4821_v56  ;;  %v965_v34 = vsel %vm280_vm8, %v964_v51, %v946_v8 }
 0x395   :  { %v998_v22 = vpack.c.bf16 %v939_v17, %v939_v17  ;;  %v941_v27 = vsel %vm280_vm8, %v933_v41, %v940_v6  ;;  %v971_v28 = vperm.slane %v965_v34, %v4821_v56  ;;  %v976_v35 = vrot.slane %v963_v10, 4 }
 0x396   :  { %v993_v32 = vsel %vm280_vm8, %v992_v7, %v975_v60  ;;  %v934_v39 = vrot.slane %v929_v12, 4  ;;  %v999_v18 = vpack.c.bf16 %v941_v27, %v941_v27  ;;  %v994_v20 = vrot.slane %v975_v60, 4 }
 0x397   :  { %v1321_v21 = vsel %vm1281_vm11, %v998_v22, 0  ;;  %v1002_v13 = vpack.c.bf16 %v993_v32, %v993_v32  ;;  %v977_v40 = vsel %vm280_vm8, %v976_v35, %v957_v25  ;;  %v936_v29 = vrot.slane %v917_v63, 4 }
 0x398   :  { %1330 = vmatpush.bf16.msrb.mxu0 %v1321_v21  ;;  %v935_v44 = vsel %vm280_vm8, %v934_v39, %v917_v63  ;;  %v1340_v36 = vsel %vm1281_vm11, %v999_v18, 0  ;;  %v983_v8 = vperm.slane %v977_v40, %v4821_v56  ;;  %v995_v31 = vsel %vm280_vm8, %v987_v33, %v994_v20 }
 0x399   :  { %v1397_v19 = vsel %vm1281_vm11, %v1002_v13, 0  ;;  %v996_v43 = vpack.c.bf16 %v935_v44, %v935_v44  ;;  %1349 = vmatpush.bf16.msrb.mxu1 %v1340_v36  ;;  %v1003_v0 = vpack.c.bf16 %v995_v31, %v995_v31  ;;  %v937_v10 = vsel %vm280_vm8, %v929_v12, %v936_v29 }
 0x39a   :  { %v988_v46 = vrot.slane %v983_v8, 4  ;;  %v997_v25 = vpack.c.bf16 %v937_v10, %v937_v10  ;;  %v990_v26 = vrot.slane %v971_v28, 4 }
 0x39b   :  { %v1283_v41 = vsel %vm1281_vm11, %v996_v43, 0  ;;  %v1416_v52 = vsel %vm1281_vm11, %v1003_v0, 0 }
 0x39c   :  { %1406 = vmatpush.bf16.msra.mxu0 %v1397_v19  ;;  %1292 = vmatpush.bf16.msra.mxu2 %v1283_v41  ;;  %v989_v45 = vsel %vm280_vm8, %v988_v46, %v971_v28  ;;  %v1302_v53 = vsel %vm1281_vm11, %v997_v25, 0  ;;  %v991_v55 = vsel %vm280_vm8, %v983_v8, %v990_v26 }
 0x39d   :  { %1425 = vmatpush.bf16.msra.mxu1 %v1416_v52  ;;  %v1000_v48 = vpack.c.bf16 %v989_v45, %v989_v45  ;;  %1311 = vmatpush.bf16.msrb.mxu3 %v1302_v53  ;;  %v1001_v51 = vpack.c.bf16 %v991_v55, %v991_v55 }
 0x39f   :  { %v1359_v58 = vsel %vm1281_vm11, %v1000_v48, 0  ;;  %v1378_v47 = vsel %vm1281_vm11, %v1001_v51, 0 }
 0x3a0   :  { %1368 = vmatpush.bf16.msrb.mxu2 %v1359_v58 }
 0x3a1   :  { %1387 = vmatpush.bf16.msra.mxu3 %v1378_v47 }
 0x3c2   :  { %v1238_v33 = vpop.xlane.xlu1 %1237 }
 0x3c3   :  { %4494 = vrcp.f32 %v1238_v33 }
 0x3c9   :  { %v4495_v59 = vpop.eup %4494 }
 0x3ca   :  { %v1264_v60 = vmul.f32 %v4495_v59, %v5117_v49 }
 0x3cb   :  { %v1232_v63 = vpop.xlane.xlu2 %1231 }
 0x3cc   :  { %4496 = vrcp.f32 %v1232_v63  ;;  %v1272_v4 = vpack.c.bf16 %v1264_v60, %v1264_v60 }
 0x3ce   :  { %4044 = vmatmul.msk.bf16.vlgmr.msrb.gmra.mxu0 %vm1181_vm10, %v1272_v4 }
 0x3d2   :  { %v4497_v6 = vpop.eup %4496 }
 0x3d3   :  { %v1262_v17 = vmul.f32 %v4497_v6, %v5122_v57  ;;  %v1241_v7 = vpop.xlane.xlu2 %1240 }
 0x3d4   :  { %4498 = vrcp.f32 %v1241_v7 }
 0x3d5   :  { %v1270_v12 = vpack.c.bf16 %v1262_v17, %v1262_v17 }
 0x3d7   :  { %4042 = vmatmul.msk.bf16.vlgmr.msra.gmra.mxu2 %vm1181_vm10, %v1270_v12 }
 0x3da   :  { %v4499_v34 = vpop.eup %4498 }
 0x3db   :  { %v1265_v22 = vmul.f32 %v4499_v34, %v5126_v61  ;;  %v1250_v27 = vpop.xlane.xlu2 %1249 }
 0x3dc   :  { %4500 = vrcp.f32 %v1250_v27 }
 0x3dd   :  { %v1273_v28 = vpack.c.bf16 %v1265_v22, %v1265_v22 }
 0x3df   :  { %4045 = vmatmul.msk.bf16.vlgmr.msrb.gmra.mxu1 %vm1181_vm10, %v1273_v28 }
 0x3e2   :  { %v4501_v49 = vpop.eup %4500 }
 0x3e3   :  { %v1268_v35 = vmul.f32 %v4501_v49, %v5130_v1 }
 0x3e5   :  { %v1276_v32 = vpack.c.bf16 %v1268_v35, %v1268_v35 }
 0x3e7   :  { %4048 = vmatmul.msk.bf16.vlgmr.msra.gmra.mxu0 %vm1181_vm10, %v1276_v32  ;;  %v1235_v57 = vpop.xlane.xlu0 %1234 }
 0x3e8   :  { %4502 = vrcp.f32 %v1235_v57 }
 0x3eb   :  { %v1247_v61 = vpop.xlane.xlu1 %1246 }
 0x3ee   :  { %v4503_v39 = vpop.eup %4502 }
 0x3ef   :  { %v1263_v18 = vmul.f32 %v4503_v39, %v5136_v38  ;;  %v1244_v20 = vpop.xlane.xlu0 %1243 }
 0x3f0   :  { %4504 = vrcp.f32 %v1244_v20 }
 0x3f1   :  { %v1271_v21 = vpack.c.bf16 %v1263_v18, %v1263_v18  ;;  %4506 = vrcp.f32 %v1247_v61 }
 0x3f3   :  { %4043 = vmatmul.msk.bf16.vlgmr.msrb.gmra.mxu3 %vm1181_vm10, %v1271_v21 }
 0x3f6   :  { %v4505_v13 = vpop.eup %4504 }
 0x3f7   :  { %v1266_v40 = vmul.f32 %v4505_v13, %v5147_v30  ;;  %v1253_v29 = vpop.xlane.xlu0 %1252  ;;  %v4507_v44 = vpop.eup %4506 }
 0x3f8   :  { %4508 = vrcp.f32 %v1253_v29  ;;  %v1267_v36 = vmul.f32 %v4507_v44, %v5141_v54 }
 0x3f9   :  { %v1274_v1 = vpack.c.bf16 %v1266_v40, %v1266_v40 }
 0x3fa   :  { %v1275_v31 = vpack.c.bf16 %v1267_v36, %v1267_v36 }
 0x3fb   :  { %4046 = vmatmul.msk.bf16.vlgmr.msrb.gmra.mxu2 %vm1181_vm10, %v1274_v1 }
 0x3fe   :  { %v4509_v8 = vpop.eup %4508 }
 0x3ff   :  { %v1269_v38 = vmul.f32 %v4509_v8, %v5162_v50 }
 0x401   :  { %v1277_v19 = vpack.c.bf16 %v1269_v38, %v1269_v38 }
 0x403   :  { %4047 = vmatmul.msk.bf16.vlgmr.msra.gmra.mxu3 %vm1181_vm10, %v1275_v31  ;;  %4049 = vmatmul.msk.bf16.vlgmr.msra.gmra.mxu1 %vm1181_vm10, %v1277_v19 }
 0x44b   :  { %v1332_v43 = vpop.f32.mrf.mxu0 }
 0x44c   :  { %v1431_v52 = vrot.slane %v1332_v43, 4 }
 0x453   :  { %v1334_v0 = vpop.f32.mrf.mxu0 }
 0x45a   :  { %v1294_v30 = vpop.f32.mrf.mxu2 }
 0x45b   :  { %v1433_v45 = vrot.slane %v1294_v30, 4  ;;  %v1432_v54 = vsel %vm280_vm8, %v1431_v52, %v1294_v30 }
 0x45c   :  { %v1351_v10 = vpop.f32.mrf.mxu1  ;;  %v1438_v53 = vperm.slane %v1432_v54, %v4813_v42 }
 0x45d   :  { %v1434_v50 = vsel %vm280_vm8, %v1332_v43, %v1433_v45  ;;  %v1443_v55 = vrot.slane %v1351_v10, 4 }
 0x45e   :  { %v1442_v48 = vperm.slane %v1434_v50, %v4813_v42  ;;  %v1457_v33 = vrot.slane %v1438_v53, 4 }
 0x460   :  { %v1469_v63 = vrot.slane %v1442_v48, 4 }
 0x462   :  { %v1296_v46 = vpop.f32.mrf.mxu2 }
 0x464   :  { %v1353_v25 = vpop.f32.mrf.mxu1  ;;  %v1408_v26 = vpop.f32.mrf.mxu0 }
 0x465   :  { %v1487_v35 = vrot.slane %v1408_v26, 4 }
 0x46c   :  { %v1410_v41 = vpop.f32.mrf.mxu0 }
 0x476   :  { %v1313_v51 = vpop.f32.mrf.mxu3 }
 0x477   :  { %v1444_v58 = vsel %vm280_vm8, %v1443_v55, %v1313_v51  ;;  %v1445_v47 = vrot.slane %v1313_v51, 4 }
 0x478   :  { %v1450_v59 = vperm.slane %v1444_v58, %v4813_v42 }
 0x479   :  { %v1446_v60 = vsel %vm280_vm8, %v1351_v10, %v1445_v47 }
 0x47a   :  { %v1454_v4 = vperm.slane %v1446_v60, %v4813_v42  ;;  %v1455_v6 = vrot.slane %v1450_v59, 4  ;;  %v1458_v17 = vsel %vm280_vm8, %v1450_v59, %v1457_v33 }
 0x47b   :  { %v1466_v7 = vperm.slane %v1458_v17, %v4821_v56 }
 0x47c   :  { %v1456_v12 = vsel %vm280_vm8, %v1455_v6, %v1438_v53  ;;  %v1467_v34 = vrot.slane %v1454_v4, 4  ;;  %v1470_v22 = vsel %vm280_vm8, %v1454_v4, %v1469_v63 }
 0x47d   :  { %v1462_v27 = vperm.slane %v1456_v12, %v4821_v56  ;;  %v1478_v28 = vperm.slane %v1470_v22, %v4821_v56  ;;  %v1481_v49 = vrot.slane %v1466_v7, 4 }
 0x47e   :  { %v1468_v32 = vsel %vm280_vm8, %v1467_v34, %v1442_v48  ;;  %v1315_v57 = vpop.f32.mrf.mxu3  ;;  %v1370_v39 = vpop.f32.mrf.mxu2 }
 0x47f   :  { %v1474_v18 = vperm.slane %v1468_v32, %v4821_v56  ;;  %v1479_v20 = vrot.slane %v1462_v27, 4  ;;  %v1482_v21 = vsel %vm280_vm8, 0.0, %v1481_v49  ;;  %v1485_v61 = vrot.slane %v1478_v28, 4 }
 0x480   :  { %v1548_v13 = vrot.slane %v1482_v21, 4  ;;  %v1489_v40 = vrot.slane %v1370_v39, 4  ;;  %v1427_v29 = vpop.f32.mrf.mxu1  ;;  %v1488_v8 = vsel %vm280_vm8, %v1487_v35, %v1370_v39  ;;  %v1543_v38 = vsel %vm280_vm8, %v1481_v49, %v1462_v27 }
 0x481   :  { %v1480_v1 = vsel %vm280_vm8, 0.0, %v1479_v20  ;;  %v1483_v44 = vrot.slane %v1474_v18, 4  ;;  %v1486_v36 = vsel %vm280_vm8, 0.0, %v1485_v61  ;;  %v1554_v30 = vsel %vm280_vm8, %v1485_v61, %v1474_v18 }
 0x482   :  { %v1549_v31 = vsel %vm280_vm8, %v1548_v13, %v1480_v1  ;;  %v1559_v19 = vrot.slane %v1486_v36, 4  ;;  %v1490_v43 = vsel %vm280_vm8, %v1408_v26, %v1489_v40  ;;  %v1494_v10 = vperm.slane %v1488_v8, %v4813_v42 }
 0x483   :  { %v1553_v0 = vperm.slane %v1549_v31, %v4813_v42  ;;  %v1484_v46 = vsel %vm280_vm8, 0.0, %v1483_v44  ;;  %v1547_v25 = vperm.slane %v1543_v38, %v4813_v42  ;;  %v1498_v41 = vperm.slane %v1490_v43, %v4813_v42 }
 0x484   :  { %v1499_v52 = vrot.slane %v1427_v29, 4  ;;  %v1560_v45 = vsel %vm280_vm8, %v1559_v19, %v1484_v46  ;;  %v1558_v53 = vperm.slane %v1554_v30, %v4813_v42  ;;  %v1513_v58 = vrot.slane %v1494_v10, 4 }
 0x485   :  { %v1564_v26 = vperm.slane %v1560_v45, %v4813_v42  ;;  %v1565_v51 = vrot.slane %v1553_v0, 4  ;;  %v1567_v59 = vrot.slane %v1547_v25, 4  ;;  %v1525_v60 = vrot.slane %v1498_v41, 4 }
 0x486   :  { %v1372_v54 = vpop.f32.mrf.mxu2  ;;  %v1389_v50 = vpop.f32.mrf.mxu3  ;;  %v1579_v12 = vrot.slane %v1558_v53, 4 }
 0x487   :  { %v1500_v55 = vsel %vm280_vm8, %v1499_v52, %v1389_v50  ;;  %v1501_v48 = vrot.slane %v1389_v50, 4  ;;  %v1577_v4 = vrot.slane %v1564_v26, 4  ;;  %v1566_v22 = vsel %vm280_vm8, %v1565_v51, %v1547_v25 }
 0x488   :  { %v1506_v47 = vperm.slane %v1500_v55, %v4813_v42  ;;  %v1429_v33 = vpop.f32.mrf.mxu1  ;;  %v1568_v20 = vsel %vm280_vm8, %v1553_v0, %v1567_v59  ;;  %v1580_v13 = vsel %vm280_vm8, %v1564_v26, %v1579_v12  ;;  %v1572_v40 = vperm.slane %v1566_v22, %v4821_v56 }
 0x489   :  { %v1502_v63 = vsel %vm280_vm8, %v1427_v29, %v1501_v48  ;;  %v1578_v27 = vsel %vm280_vm8, %v1577_v4, %v1558_v53  ;;  %v1576_v19 = vperm.slane %v1568_v20, %v4821_v56  ;;  %v1588_v45 = vperm.slane %v1580_v13, %v4821_v56 }
 0x48a   :  { %v1510_v6 = vperm.slane %v1502_v63, %v4813_v42  ;;  %v1511_v17 = vrot.slane %v1506_v47, 4  ;;  %v1514_v7 = vsel %vm280_vm8, %v1506_v47, %v1513_v58  ;;  %v1584_v32 = vperm.slane %v1578_v27, %v4821_v56 }
 0x48b   :  { %v1522_v34 = vperm.slane %v1514_v7, %v4821_v56  ;;  %v1595_v55 = vrot.slane %v1576_v19, 4  ;;  %v1593_v63 = vrot.slane %v1588_v45, 4  ;;  %v1591_v12 = vrot.slane %v1572_v40, 4 }
 0x48c   :  { %v1512_v28 = vsel %vm280_vm8, %v1511_v17, %v1494_v10  ;;  %v1523_v49 = vrot.slane %v1510_v6, 4  ;;  %v1526_v35 = vsel %vm280_vm8, %v1510_v6, %v1525_v60  ;;  %v1589_v29 = vrot.slane %v1584_v32, 4 }
 0x48d   :  { %v1518_v57 = vperm.slane %v1512_v28, %v4821_v56  ;;  %v1534_v39 = vperm.slane %v1526_v35, %v4821_v56  ;;  %v1537_v18 = vrot.slane %v1522_v34, 4  ;;  %v1596_v22 = vsel %vm280_vm8, %v1588_v45, %v1595_v55 }
 0x48e   :  { %v1524_v21 = vsel %vm280_vm8, %v1523_v49, %v1498_v41  ;;  %v1391_v61 = vpop.f32.mrf.mxu3  ;;  %v5314_v43 = vsel %vm280_vm8, %v1589_v29, %v1572_v40 }
 0x48f   :  { %v1530_v1 = vperm.slane %v1524_v21, %v4821_v56  ;;  %v1535_v44 = vrot.slane %v1518_v57, 4  ;;  %v1538_v36 = vsel %vm280_vm8, 0.0, %v1537_v18  ;;  %v1541_v8 = vrot.slane %v1534_v39, 4 }
 0x490   :  { %v1597_v38 = vsel %vm280_vm8, %v1537_v18, %v1518_v57  ;;  %v1602_v31 = vrot.slane %v1538_v36, 4  ;;  %v1594_v18 = vsel %vm280_vm8, %v1593_v63, %v1576_v19  ;;  %v1592_v21 = vsel %vm280_vm8, %v1584_v32, %v1591_v12  ;;  %v4064_v32 = vld [vmem:[%s6207_s2 + $0x9c] sm:$0xf]  ;;  %v4060_v36 = vld [vmem:[%s6207_s2 + $0x6c] sm:$0xf] }
 0x491   :  { %v1536_v0 = vsel %vm280_vm8, 0.0, %v1535_v44  ;;  %v1539_v30 = vrot.slane %v1530_v1, 4  ;;  %v1542_v10 = vsel %vm280_vm8, 0.0, %v1541_v8  ;;  %v1601_v46 = vperm.slane %v1597_v38, %v4813_v42  ;;  %v4323_v44 = vld [vmem:[%s6207_s2 + $0xb0] sm:$0xf0] }
 0x492   :  { %v1603_v25 = vsel %vm280_vm8, %v1602_v31, %v1536_v0  ;;  %v1608_v41 = vsel %vm280_vm8, %v1541_v8, %v1530_v1  ;;  %v1613_v52 = vrot.slane %v1542_v10, 4  ;;  %v4065_v8 = vor.u32 %v4323_v44, %v4064_v32  ;;  %v4322_v38 = vld [vmem:[%s6207_s2 + $0x80] sm:$0xf0]  ;;  %v4056_v19 = vld [vmem:[%s6207_s2 + $0x3c] sm:$0xf] }
 0x493   :  { %v1607_v54 = vperm.slane %v1603_v25, %v4813_v42  ;;  %v1621_v50 = vrot.slane %v1601_v46, 4  ;;  %v1540_v53 = vsel %vm280_vm8, 0.0, %v1539_v30  ;;  %v1612_v26 = vperm.slane %v1608_v41, %v4813_v42  ;;  %v4321_v0 = vld [vmem:[%s6207_s2 + $0x50] sm:$0xf0]  ;;  %v4052_v30 = vld [vmem:[%s6207_s2 + $0xc] sm:$0xf] }
 0x494   :  { %v1614_v48 = vsel %vm280_vm8, %v1613_v52, %v1540_v53  ;;  %1727 = vmatpush.bf16.msra.mxu2 %v4065_v8  ;;  %v4061_v31 = vor.u32 %v4322_v38, %v4060_v36  ;;  %v4057_v10 = vor.u32 %v4321_v0, %v4056_v19  ;;  %v4077_v44 = vld [vmem:[%s6207_s2 + $0x70] sm:$0xf]  ;;  %v4326_v36 = vld [vmem:[%s6207_s2 + $0x84] sm:$0xf0]  ;;  %v4073_v38 = vld [vmem:[%s6207_s2 + $0x40] sm:$0xf] }
 0x495   :  { %v1618_v51 = vperm.slane %v1614_v48, %v4813_v42  ;;  %v1622_v58 = vsel %vm280_vm8, %v1607_v54, %v1621_v50  ;;  %v1633_v47 = vrot.slane %v1612_v26, 4  ;;  %v1619_v33 = vrot.slane %v1607_v54, 4 }
 0x496   :  { %v1630_v59 = vperm.slane %v1622_v58, %v4821_v56  ;;  %v4078_v8 = vor.u32 %v4326_v36, %v4077_v44 }
 0x497   :  { %v1634_v60 = vsel %vm280_vm8, %v1618_v51, %v1633_v47  ;;  %v1620_v4 = vsel %vm280_vm8, %v1619_v33, %v1601_v46  ;;  %v1631_v6 = vrot.slane %v1618_v51, 4  ;;  %v4320_v46 = vld [vmem:[%s6207_s2 + $0x20] sm:$0xf0] }
 0x498   :  { %v1642_v17 = vperm.slane %v1634_v60, %v4821_v56  ;;  %v1649_v7 = vrot.slane %v1630_v59, 4  ;;  %v1626_v34 = vperm.slane %v1620_v4, %v4821_v56  ;;  %1728 = vmatpush.bf16.msra.mxu2 %v4061_v31  ;;  %v4053_v25 = vor.u32 %v4320_v46, %v4052_v30  ;;  %v4455_v4 = vld [vmem:[#allocation2 + $0x3] ss:$0 sm:$0xff]  ;;  %v4325_v31 = vld [vmem:[%s6207_s2 + $0x54] sm:$0xf0] }
 0x499   :  { %v1632_v27 = vsel %vm280_vm8, %v1631_v6, %v1612_v26  ;;  %v4074_v0 = vor.u32 %v4325_v31, %v4073_v38  ;;  %v4324_v46 = vld [vmem:[%s6207_s2 + $0x24] sm:$0xf0] }
 0x49a   :  { %v1650_v28 = vsel %vm280_vm8, %v1642_v17, %v1649_v7  ;;  %v1647_v49 = vrot.slane %v1642_v17, 4  ;;  %v1638_v35 = vperm.slane %v1632_v27, %v4821_v56  ;;  %v1645_v57 = vrot.slane %v1626_v34, 4 }
 0x49b   :  { %v4413_v39 = vpack.i.bf16 %v1650_v28, %v1596_v22 }
 0x49c   :  { %v1648_v20 = vsel %vm280_vm8, %v1647_v49, %v1630_v59  ;;  %v1643_v61 = vrot.slane %v1638_v35, 4  ;;  %v1646_v13 = vsel %vm280_vm8, %v1638_v35, %v1645_v57  ;;  %1729 = vmatpush.bf16.msra.mxu2 %v4057_v10  ;;  %v4069_v10 = vld [vmem:[%s6207_s2 + $0x10] sm:$0xf] }
 0x49d   :  { %4414 = vrot.lane.b32.xlu0 %v4413_v39, %s4632_s1  ;;  %v4408_v40 = vpack.i.bf16 %v1648_v20, %v1594_v18  ;;  %v4403_v29 = vpack.i.bf16 %v1646_v13, %v1592_v21 }
 0x49e   :  { %v1644_v1 = vsel %vm280_vm8, %v1643_v61, %v1626_v34 }
 0x49f   :  { %4409 = vrot.lane.b32.xlu2 %v4408_v40, %s4633_s13  ;;  %4404 = vrot.lane.b32.xlu1 %v4403_v29, %s4634_s14  ;;  %v4081_v40 = vld [vmem:[%s6207_s2 + $0xa0] sm:$0xf]  ;;  %v4327_v29 = vld [vmem:[%s6207_s2 + $0xb4] sm:$0xf0] }
 0x4a0   :  { %1730 = vmatpush.bf16.msra.mxu2 %v4053_v25 }
 0x4f9   :  { %v4410_v41 = vpop.permute.xlu2 %4409 }
 0x4fa   :  { %v4412_v53 = vunpack.i.h.bf16 %v4410_v41  ;;  %v4411_v26 = vunpack.i.l.bf16 %v4410_v41 }
 0x50f   :  { %v4415_v52 = vpop.permute.xlu0 %4414 }
 0x510   :  { %v4417_v55 = vunpack.i.h.bf16 %v4415_v52  ;;  %v4416_v48 = vunpack.i.l.bf16 %v4415_v52 }
 0x511   :  { %v4405_v45 = vpop.permute.xlu1 %4404 }
 0x512   :  { %v4407_v54 = vunpack.i.h.bf16 %v4405_v45  ;;  %v4406_v50 = vunpack.i.l.bf16 %v4405_v45  ;;  %v4070_v45 = vor.u32 %v4324_v46, %v4069_v10 }
 0x514   :  { %v1675_v51 = vsel %vm1028_vm9, %v5314_v43, %v4406_v50  ;;  %v1676_v58 = vsel %vm1028_vm9, %v1644_v1, %v4407_v54  ;;  %v4082_v1 = vor.u32 %v4327_v29, %v4081_v40 }
 0x515   :  { %v1678_v47 = vsel %vm1677_vm12, %v1675_v51, %v4411_v26  ;;  %v1679_v33 = vsel %vm1677_vm12, %v1676_v58, %v4412_v53 }
 0x516   :  { %v1681_v59 = vsel %vm1680_vm13, %v1678_v47, %v4416_v48  ;;  %v1682_v60 = vsel %vm1680_vm13, %v1679_v33, %v4417_v55  ;;  %1839 = vmatpush.bf16.msrb.mxu3 %v4082_v1 }
 0x517   :  { %v1683_v63 = vpack.c.bf16 %v1682_v60, %v1681_v59  ;;  %v4456_v59 = vld [vmem:[#allocation2 + $0x6] ss:$0 sm:$0xff] }
 0x519   :  { %4066 = vmatmul.msk.bf16.vlgmr.msra.gmra.mxu2 %vm62_vm0, %v1683_v63 }
 0x51a   :  { %1840 = vmatpush.bf16.msrb.mxu3 %v4078_v8 }
 0x51e   :  { %1841 = vmatpush.bf16.msrb.mxu3 %v4074_v0 }
 0x522   :  { %1842 = vmatpush.bf16.msrb.mxu3 %v4070_v45 }
 0x59c   :  { %v1732_v6 = vpop.f32.mrf.mxu2 }
 0x59d   :  { %v1733_v17 = vadd.f32 %v4455_v4, %v1732_v6  ;;  %v4457_v6 = vld [vmem:[#allocation2 + $0x7] ss:$0 sm:$0xff] }
 0x59f   :  { %v1737_v7 = vadd.f32 %v1733_v17, %v4778_v23 }
 0x5a1   :  { %v1741_v43 = vsel %vm62_vm0, %v1737_v7, 0.0 }
 0x5a2   :  { %1742 = vadd.xlane.f32.xlu1 %v1741_v43 }
 0x5a4   :  { %v1734_v12 = vpop.f32.mrf.mxu2 }
 0x5a5   :  { %v1735_v34 = vadd.f32 %v4455_v4, %v1734_v12 }
 0x5a7   :  { %v1738_v22 = vadd.f32 %v1735_v34, %v4780_v24 }
 0x5a9   :  { %v1744_v27 = vsel %vm62_vm0, %v1738_v22, 0.0 }
 0x5aa   :  { %1745 = vadd.xlane.f32.xlu0 %v1744_v27  ;;  %v4098_v27 = vld [vmem:[%s6207_s2 + $0xa4] sm:$0xf] }
 0x615   :  { %v1743_v28 = vpop.xlane.xlu1 %1742 }
 0x616   :  { %v1747_v49 = vmul.f32 %v1743_v28, %v4682_v11  ;;  %v4331_v28 = vld [vmem:[%s6207_s2 + $0xb8] sm:$0xf0] }
 0x618   :  { %v1749_v35 = vsub.f32 %v1737_v7, %v1747_v49  ;;  %v4099_v49 = vor.u32 %v4331_v28, %v4098_v27 }
 0x61a   :  { %v1751_v57 = vmul.f32 %v1749_v35, %v1749_v35  ;;  %1908 = vmatpush.bf16.xpose.msrb.mxu0 %v4099_v49 }
 0x61c   :  { %v1753_v39 = vsel %vm62_vm0, %v1751_v57, 0.0  ;;  %v4330_v57 = vld [vmem:[%s6207_s2 + $0x88] sm:$0xf0] }
 0x61d   :  { %v1746_v18 = vpop.xlane.xlu0 %1745  ;;  %1754 = vadd.xlane.f32.xlu2 %v1753_v39 }
 0x61e   :  { %v1748_v23 = vmul.f32 %v1746_v18, %v4682_v11  ;;  %v4090_v18 = vld [vmem:[%s6207_s2 + $0x44] sm:$0xf] }
 0x620   :  { %v1750_v20 = vsub.f32 %v1738_v22, %v1748_v23  ;;  %v4329_v23 = vld [vmem:[%s6207_s2 + $0x58] sm:$0xf0] }
 0x622   :  { %v1752_v21 = vmul.f32 %v1750_v20, %v1750_v20 }
 0x624   :  { %v1756_v61 = vsel %vm62_vm0, %v1752_v21, 0.0  ;;  %v4458_v21 = vld [vmem:[#allocation2 + $0x4] ss:$0 sm:$0xff] }
 0x625   :  { %1757 = vadd.xlane.f32.xlu1 %v1756_v61  ;;  %v4086_v61 = vld [vmem:[%s6207_s2 + $0x14] sm:$0xf] }
 0x690   :  { %v1755_v24 = vpop.xlane.xlu2 %1754 }
 0x691   :  { %v1759_v13 = vmul.f32 %v1755_v24, %v4682_v11  ;;  %v4328_v24 = vld [vmem:[%s6207_s2 + $0x28] sm:$0xf0] }
 0x692   :  { %v4087_v29 = vor.u32 %v4328_v24, %v4086_v61  ;;  %v4162_v61 = vld [vmem:[%s6207_s2 + $0x158] sm:$0xf]  ;;  %v4343_v24 = vld [vmem:[%s6207_s2 + $0x16c] sm:$0xf0] }
 0x693   :  { %v1761_v32 = vadd.f32 1e-05, %v1759_v13 }
 0x695   :  { %4510 = vrsqrt.f32 %v1761_v32  ;;  %vm1769_vm15 = vweird.f32 %v1761_v32 }
 0x698   :  { %v1758_v19 = vpop.xlane.xlu1 %1757 }
 0x699   :  { %v1760_v30 = vmul.f32 %v1758_v19, %v4682_v11 }
 0x69b   :  { %v4511_v25 = vpop.eup %4510  ;;  %v1762_v41 = vadd.f32 1e-05, %v1760_v30 }
 0x69c   :  { %v1764_v52 = vmul.f32 %v4511_v25, %v1761_v32  ;;  %vm1770_vm14 = vweird.f32 %v4511_v25 }
 0x69d   :  { %4512 = vrsqrt.f32 %v1762_v41  ;;  %vm1771_vm1 = vmor %vm1769_vm15, %vm1770_vm14  ;;  %vm1779_vm3 = vweird.f32 %v1762_v41 }
 0x69e   :  { %v1765_v54 = vmul.f32 %v4511_v25, %v1764_v52 }
 0x6a0   :  { %v1766_v50 = vmul.f32 0.5, %v1765_v54 }
 0x6a2   :  { %v1767_v53 = vsub.f32 1.5, %v1766_v50 }
 0x6a3   :  { %v4513_v26 = vpop.eup %4512 }
 0x6a4   :  { %v1768_v55 = vmul.f32 %v4511_v25, %v1767_v53  ;;  %v1774_v48 = vmul.f32 %v4513_v26, %v1762_v41  ;;  %vm1780_vm2 = vweird.f32 %v4513_v26 }
 0x6a5   :  { %vm1781_vm4 = vmor %vm1779_vm3, %vm1780_vm2 }
 0x6a6   :  { %v1775_v51 = vmul.f32 %v4513_v26, %v1774_v48  ;;  %v1772_v58 = vsel %vm1771_vm1, %v4511_v25, %v1768_v55  ;;  %v4459_v48 = vld [vmem:[#allocation2 + $0x5] ss:$0 sm:$0xff] }
 0x6a7   :  { %v1783_v60 = vmul.f32 %v1772_v58, %v1749_v35  ;;  %v4094_v35 = vld [vmem:[%s6207_s2 + $0x74] sm:$0xf] }
 0x6a8   :  { %v1776_v47 = vmul.f32 0.5, %v1775_v51  ;;  %v4095_v39 = vor.u32 %v4330_v57, %v4094_v35 }
 0x6a9   :  { %v1788_v17 = vmul.f32 %v4456_v59, %v1783_v60 }
 0x6aa   :  { %v1777_v33 = vsub.f32 1.5, %v1776_v47  ;;  %1909 = vmatpush.bf16.xpose.msrb.mxu0 %v4095_v39  ;;  %v4154_v39 = vld [vmem:[%s6207_s2 + $0x150] sm:$0xf] }
 0x6ab   :  { %v1793_v12 = vadd.f32 %v4457_v6, %v1788_v17 }
 0x6ac   :  { %v1778_v63 = vmul.f32 %v4513_v26, %v1777_v33 }
 0x6ae   :  { %v1782_v4 = vsel %vm1781_vm4, %v4513_v26, %v1778_v63 }
 0x6af   :  { %v1784_v7 = vmul.f32 %v1782_v4, %v1750_v20  ;;  %v4091_v20 = vor.u32 %v4329_v23, %v4090_v18  ;;  %v4342_v18 = vld [vmem:[%s6207_s2 + $0x164] sm:$0xf0]  ;;  %v4341_v23 = vld [vmem:[%s6207_s2 + $0x154] sm:$0xf] }
 0x6b1   :  { %v1789_v43 = vmul.f32 %v4456_v59, %v1784_v7 }
 0x6b2   :  { %1910 = vmatpush.bf16.xpose.msrb.mxu0 %v4091_v20  ;;  %v4155_v20 = vor.u32 %v4342_v18, %v4154_v39 }
 0x6b3   :  { %v1794_v34 = vadd.f32 %v4457_v6, %v1789_v43 }
 0x6b4   :  { %2074 = vmatpush.bf16.msrb.mxu1 %v4155_v20 }
 0x6b5   :  { %v1795_v22 = vpack.c.bf16 %v1794_v34, %v1793_v12 }
 0x6b7   :  { %4083 = vmatmul.msk.bf16.vlgmr.msrb.gmra.mxu3 %vm62_vm0, %v1795_v22 }
 0x6ba   :  { %1911 = vmatpush.bf16.xpose.msrb.mxu0 %v4087_v29  ;;  %v4163_v29 = vor.u32 %v4343_v24, %v4162_v61  ;;  %v4461_v24 = vld [vmem:[#allocation2 + $0x9] ss:$0 sm:$0xff] }
 0x6bc   :  { %2102 = vmatpush.bf16.msra.mxu3 %v4163_v29 }
 0x73a   :  { %v1844_v13 = vpop.f32.mrf.mxu3 }
 0x73b   :  { %v1845_v40 = vadd.f32 %v4458_v21, %v1844_v13 }
 0x73d   :  { %v1851_v1 = vmul.f32 0.044715, %v1845_v40  ;;  %v1849_v45 = vmul.f32 0.5, %v1845_v40 }
 0x73f   :  { %v1853_v32 = vmul.f32 %v1851_v1, %v1845_v40  ;;  %v4142_v1 = vld [vmem:[%s6207_s2 + $0x120] sm:$0xf] }
 0x741   :  { %v1855_v44 = vmul.f32 %v1853_v32, %v1845_v40  ;;  %v4339_v32 = vld [vmem:[%s6207_s2 + $0x134] sm:$0xf0] }
 0x742   :  { %v1846_v36 = vpop.f32.mrf.mxu3 }
 0x743   :  { %v1857_v8 = vadd.f32 %v1855_v44, %v1845_v40  ;;  %v1847_v38 = vadd.f32 %v4458_v21, %v1846_v36  ;;  %v4156_v21 = vld [vmem:[%s6207_s2 + $0x168] sm:$0xf0]  ;;  %v4143_v44 = vor.u32 %v4339_v32, %v4142_v1  ;;  %v4338_v36 = vld [vmem:[%s6207_s2 + $0x124] sm:$0xf] }
 0x744   :  { %v4159_v40 = vor.u32 %v4341_v23, %v4156_v21  ;;  %v4460_v23 = vld [vmem:[#allocation2 + $0x8] ss:$0 sm:$0xff] }
 0x745   :  { %v1852_v31 = vmul.f32 0.044715, %v1847_v38  ;;  %v1859_v19 = vmul.f32 0.7978846, %v1857_v8  ;;  %v1850_v54 = vmul.f32 0.5, %v1847_v38  ;;  %2075 = vmatpush.bf16.msrb.mxu1 %v4143_v44 }
 0x746   :  { %v4144_v8 = vld [vmem:[%s6207_s2 + $0x138] sm:$0xf0]  ;;  %2088 = vmatpush.bf16.msrb.mxu2 %v4159_v40 }
 0x747   :  { %v1854_v0 = vmul.f32 %v1852_v31, %v1847_v38  ;;  %4514 = vtanh.f32 %v1859_v19  ;;  %v4147_v31 = vor.u32 %v4338_v36, %v4144_v8  ;;  %v4340_v19 = vld [vmem:[%s6207_s2 + $0x13c] sm:$0xf0] }
 0x749   :  { %v1856_v30 = vmul.f32 %v1854_v0, %v1847_v38  ;;  %v4130_v0 = vld [vmem:[%s6207_s2 + $0xf0] sm:$0xf] }
 0x74a   :  { %2089 = vmatpush.bf16.msrb.mxu2 %v4147_v31 }
 0x74b   :  { %v1858_v10 = vadd.f32 %v1856_v30, %v1847_v38  ;;  %v4150_v38 = vld [vmem:[%s6207_s2 + $0x128] sm:$0xf] }
 0x74c   :  { %v4336_v30 = vld [vmem:[%s6207_s2 + $0x104] sm:$0xf0] }
 0x74d   :  { %v1860_v46 = vmul.f32 0.7978846, %v1858_v10  ;;  %v4515_v25 = vpop.eup %4514  ;;  %v4151_v10 = vor.u32 %v4340_v19, %v4150_v38 }
 0x74e   :  { %v1863_v41 = vadd.f32 1.0, %v4515_v25  ;;  %v4132_v25 = vld [vmem:[%s6207_s2 + $0x108] sm:$0xf0] }
 0x74f   :  { %4516 = vtanh.f32 %v1860_v46  ;;  %v4335_v46 = vld [vmem:[%s6207_s2 + $0xf4] sm:$0xf]  ;;  %2103 = vmatpush.bf16.msra.mxu3 %v4151_v10 }
 0x750   :  { %v1865_v53 = vmul.f32 %v1863_v41, %v1849_v45  ;;  %v4138_v41 = vld [vmem:[%s6207_s2 + $0xf8] sm:$0xf] }
 0x755   :  { %v4517_v52 = vpop.eup %4516 }
 0x756   :  { %v1864_v50 = vadd.f32 1.0, %v4517_v52  ;;  %v4337_v52 = vld [vmem:[%s6207_s2 + $0x10c] sm:$0xf0] }
 0x758   :  { %v1866_v26 = vmul.f32 %v1864_v50, %v1850_v54  ;;  %v4131_v54 = vor.u32 %v4336_v30, %v4130_v0 }
 0x75a   :  { %v1867_v55 = vpack.c.bf16 %v1866_v26, %v1865_v53  ;;  %v4135_v53 = vor.u32 %v4335_v46, %v4132_v25  ;;  %v4139_v26 = vor.u32 %v4337_v52, %v4138_v41  ;;  %2076 = vmatpush.bf16.msrb.mxu1 %v4131_v54 }
 0x75c   :  { %1912 = vmatmul.bf16.vlgmr.msrb.gmra.mxu0 %v1867_v55  ;;  %v4118_v55 = vld [vmem:[%s6207_s2 + $0xc0] sm:$0xf]  ;;  %2090 = vmatpush.bf16.msrb.mxu2 %v4135_v53 }
 0x75d   :  { %2104 = vmatpush.bf16.msra.mxu3 %v4139_v26 }
 0x7d9   :  { %v1913_v51 = vpop.f32.mrf.mxu0 }
 0x7da   :  { %v1914_v58 = vadd.f32 %v4459_v48, %v1913_v51  ;;  %v4332_v51 = vld [vmem:[%s6207_s2 + $0xc4] sm:$0xf] }
 0x7dc   :  { %v1918_v47 = vadd.f32 %v1914_v58, %v1793_v12  ;;  %v4120_v58 = vld [vmem:[%s6207_s2 + $0xd8] sm:$0xf0] }
 0x7de   :  { %v1922_v33 = vsel %vm62_vm0, %v1918_v47, 0.0 }
 0x7df   :  { %1923 = vadd.xlane.f32.xlu0 %v1922_v33  ;;  %v4334_v33 = vld [vmem:[%s6207_s2 + $0xdc] sm:$0xf0] }
 0x7e1   :  { %v1915_v59 = vpop.f32.mrf.mxu0 }
 0x7e2   :  { %v1916_v60 = vadd.f32 %v4459_v48, %v1915_v59  ;;  %v4333_v48 = vld [vmem:[%s6207_s2 + $0xd4] sm:$0xf0] }
 0x7e4   :  { %v1919_v63 = vadd.f32 %v1916_v60, %v1794_v34 }
 0x7e6   :  { %v1925_v4 = vsel %vm62_vm0, %v1919_v63, 0.0 }
 0x7e7   :  { %1926 = vadd.xlane.f32.xlu2 %v1925_v4  ;;  %v4119_v4 = vor.u32 %v4333_v48, %v4118_v55 }
 0x7e9   :  { %2077 = vmatpush.bf16.msrb.mxu1 %v4119_v4 }
 0x852   :  { %v1924_v6 = vpop.xlane.xlu0 %1923 }
 0x853   :  { %v1928_v17 = vmul.f32 %v1924_v6, %v4682_v11  ;;  %v4123_v6 = vor.u32 %v4332_v51, %v4120_v58 }
 0x855   :  { %v5439_v7 = vsub.f32 %v1918_v47, %v1928_v17  ;;  %v4126_v47 = vld [vmem:[%s6207_s2 + $0xc8] sm:$0xf]  ;;  %2091 = vmatpush.bf16.msrb.mxu2 %v4123_v6 }
 0x856   :  { %v4127_v17 = vor.u32 %v4334_v33, %v4126_v47 }
 0x857   :  { %v1932_v43 = vmul.f32 %v5439_v7, %v5439_v7 }
 0x858   :  { %2105 = vmatpush.bf16.msra.mxu3 %v4127_v17 }
 0x859   :  { %v1934_v22 = vsel %vm62_vm0, %v1932_v43, 0.0 }
 0x85a   :  { %v1927_v12 = vpop.xlane.xlu2 %1926  ;;  %1935 = vadd.xlane.f32.xlu1 %v1934_v22 }
 0x85b   :  { %v1929_v27 = vmul.f32 %v1927_v12, %v4682_v11 }
 0x85d   :  { %v5445_v28 = vsub.f32 %v1919_v63, %v1929_v27 }
 0x85f   :  { %v1933_v34 = vmul.f32 %v5445_v28, %v5445_v28 }
 0x861   :  { %v1937_v49 = vsel %vm62_vm0, %v1933_v34, 0.0 }
 0x862   :  { %1938 = vadd.xlane.f32.xlu0 %v1937_v49 }
 0x8cd   :  { %v1936_v35 = vpop.xlane.xlu1 %1935 }
 0x8ce   :  { %v1940_v57 = vmul.f32 %v1936_v35, %v4682_v11 }
 0x8d0   :  { %v1942_v13 = vadd.f32 1e-05, %v1940_v57 }
 0x8d2   :  { %4518 = vrsqrt.f32 %v1942_v13  ;;  %vm1950_vm6 = vweird.f32 %v1942_v13 }
 0x8d5   :  { %v1939_v45 = vpop.xlane.xlu0 %1938 }
 0x8d6   :  { %v1941_v50 = vmul.f32 %v1939_v45, %v4682_v11 }
 0x8d8   :  { %v4519_v59 = vpop.eup %4518  ;;  %v1943_v60 = vadd.f32 1e-05, %v1941_v50 }
 0x8d9   :  { %v1945_v63 = vmul.f32 %v4519_v59, %v1942_v13  ;;  %vm1951_vm5 = vweird.f32 %v4519_v59 }
 0x8da   :  { %4520 = vrsqrt.f32 %v1943_v60  ;;  %vm1952_vm7 = vmor %vm1950_vm6, %vm1951_vm5  ;;  %vm1960_vm15 = vweird.f32 %v1943_v60 }
 0x8db   :  { %v1946_v43 = vmul.f32 %v4519_v59, %v1945_v63 }
 0x8dd   :  { %v1947_v22 = vmul.f32 0.5, %v1946_v43 }
 0x8df   :  { %v1948_v12 = vsub.f32 1.5, %v1947_v22 }
 0x8e0   :  { %v4521_v27 = vpop.eup %4520 }
 0x8e1   :  { %v1949_v34 = vmul.f32 %v4519_v59, %v1948_v12  ;;  %v1955_v49 = vmul.f32 %v4521_v27, %v1943_v60  ;;  %vm1961_vm14 = vweird.f32 %v4521_v27 }
 0x8e2   :  { %vm1962_vm1 = vmor %vm1960_vm15, %vm1961_vm14  ;;  %vm3818_vm14 = vcmask 1041409   ;;  %vm3974_vm15 = vcmask 785408  }
 0x8e3   :  { %v1956_v35 = vmul.f32 %v4521_v27, %v1955_v49  ;;  %v1953_v57 = vsel %vm1952_vm7, %v4519_v59, %v1949_v34 }
 0x8e4   :  { %v1964_v20 = vmul.f32 %v1953_v57, %v5439_v7  ;;  %v5535_v7 = vld [vmem:[#allocation2 + $0xa] sm:$0x7] }
 0x8e5   :  { %v1957_v39 = vmul.f32 0.5, %v1956_v35  ;;  %v1997_v36 = vperm.slane %v5535_v7, 0 }
 0x8e6   :  { %v1969_v40 = vmul.f32 %v4460_v23, %v1964_v20 }
 0x8e7   :  { %v1958_v18 = vsub.f32 1.5, %v1957_v39 }
 0x8e8   :  { %v5526_v32 = vadd.f32 %v4461_v24, %v1969_v40 }
 0x8e9   :  { %v1959_v21 = vmul.f32 %v4521_v27, %v1958_v18 }
 0x8eb   :  { %v1963_v61 = vsel %vm1962_vm1, %v4521_v27, %v1959_v21 }
 0x8ec   :  { %v1965_v29 = vmul.f32 %v1963_v61, %v5445_v28  ;;  %v1998_v28 = vperm.slane %v5535_v7, 1 }
 0x8ee   :  { %v1970_v1 = vmul.f32 %v4460_v23, %v1965_v29 }
 0x8f0   :  { %v5528_v13 = vadd.f32 %v4461_v24, %v1970_v1 }
 0x8f2   :  { %v1976_v44 = vpack.c.bf16 %v5528_v13, %v5526_v32 }
 0x8f4   :  { %4164 = vmatmul.msk.bf16.vlgmr.msrb.gmra.mxu1 %vm62_vm0, %v1976_v44  ;;  %4165 = vmatmul.msk.bf16.vlgmr.msrb.gmra.mxu2 %vm62_vm0, %v1976_v44 }
 0x8f5   :  { %4166 = vmatmul.msk.bf16.vlgmr.msra.gmra.mxu3 %vm62_vm0, %v1976_v44 }
 0x971   :  { %v2079_v8 = vpop.f32.mrf.mxu1 }
 0x972   :  { %v2080_v31 = vadd.f32 %v2079_v8, %v1997_v36 }
 0x974   :  { %v2134_v53 = vrot.slane %v2080_v31, 4 }
 0x977   :  { %v2093_v38 = vpop.f32.mrf.mxu2 }
 0x978   :  { %v2094_v19 = vadd.f32 %v2093_v38, %v1998_v28 }
 0x979   :  { %v2081_v46 = vpop.f32.mrf.mxu1 }
 0x97a   :  { %2374 = vrot.lane.b32.xlu0 %v2094_v19, %s4627_s3  ;;  %2368 = vrot.lane.b32.xlu1 %v2094_v19, %s4629_s0  ;;  %v4418_v0 = vpack.i.bf16 %v2080_v31, %v2094_v19  ;;  %v2082_v25 = vadd.f32 %v2081_v46, %v1997_v36  ;;  %v2382_v33 = vrot.slane %v2094_v19, 4 }
 0x97c   :  { %4419 = vrot.lane.b32.xlu2 %v4418_v0, %s4628_s11  ;;  %v2190_v17 = vrot.slane %v2082_v25, 4 }
 0x97f   :  { %v2095_v30 = vpop.f32.mrf.mxu2 }
 0x980   :  { %v2096_v10 = vadd.f32 %v2095_v30, %v1998_v28 }
 0x982   :  { %2364 = vrot.lane.b32.xlu1 %v2096_v10, %s4628_s11  ;;  %2126 = vrot.lane.b32.xlu0 %v2080_v31, %s4627_s3  ;;  %v2438_v48 = vrot.slane %v2096_v10, 4 }
 0x984   :  { %2120 = vrot.lane.b32.xlu2 %v2080_v31, %s4629_s0 }
 0x98a   :  { %2116 = vrot.lane.b32.xlu1 %v2082_v25, %s4628_s11  ;;  %2376 = vrot.lane.b32.xlu0 %v2096_v10, %s4627_s3 }
 0x98c   :  { %2370 = vrot.lane.b32.xlu2 %v2096_v10, %s4629_s0 }
 0x992   :  { %2128 = vrot.lane.b32.xlu0 %v2082_v25, %s4627_s3 }
 0x994   :  { %2122 = vrot.lane.b32.xlu2 %v2082_v25, %s4629_s0 }
 0x9d6   :  { %v5550_v41 = vpop.permute.xlu2 %4419 }
 0x9d7   :  { %v4421_v50 = vunpack.i.l.bf16 %v5550_v41  ;;  %v4422_v59 = vunpack.i.h.bf16 %v5550_v41 }
 0x9d9   :  { %v2394_v58 = vrot.slane %v4421_v50, 4  ;;  %v2146_v1 = vrot.slane %v4422_v59, 4 }
 0x9de   :  { %v2121_v52 = vpop.permute.xlu2 %2120 }
 0x9df   :  { %v2132_v45 = vrot.slane %v2121_v52, 4  ;;  %v2135_v55 = vsel %vm280_vm8, %v2121_v52, %v2134_v53 }
 0x9e0   :  { %v5561_v63 = vperm.slane %v2135_v55, %v4813_v42 }
 0x9e1   :  { %v2133_v26 = vsel %vm280_vm8, %v2132_v45, %v2080_v31 }
 0x9e2   :  { %v5558_v60 = vperm.slane %v2133_v26, %v4813_v42  ;;  %v2170_v0 = vrot.slane %v5561_v63, 4 }
 0x9e6   :  { %v2371_v54 = vpop.permute.xlu2 %2370 }
 0x9e7   :  { %v2436_v51 = vrot.slane %v2371_v54, 4  ;;  %v2439_v47 = vsel %vm280_vm8, %v2371_v54, %v2438_v48 }
 0x9e8   :  { %v5567_v49 = vperm.slane %v2439_v47, %v4813_v42 }
 0x9e9   :  { %v2437_v34 = vsel %vm280_vm8, %v2436_v51, %v2096_v10 }
 0x9ea   :  { %v5577_v44 = vperm.slane %v2437_v34, %v4813_v42  ;;  %v2474_v41 = vrot.slane %v5567_v49, 4 }
 0x9ec   :  { %v2375_v4 = vpop.permute.xlu0 %2374  ;;  %v2369_v6 = vpop.permute.xlu1 %2368  ;;  %v2462_v51 = vrot.slane %v5577_v44, 4 }
 0x9ed   :  { %v2392_v43 = vrot.slane %v2375_v4, 4  ;;  %v2395_v22 = vsel %vm280_vm8, %v2375_v4, %v2394_v58  ;;  %v2380_v12 = vrot.slane %v2369_v6, 4  ;;  %v2383_v27 = vsel %vm280_vm8, %v2369_v6, %v2382_v33 }
 0x9ee   :  { %v2403_v35 = vperm.slane %v2395_v22, %v4813_v42  ;;  %v2391_v57 = vperm.slane %v2383_v27, %v4813_v42  ;;  %v2123_v39 = vpop.permute.xlu2 %2122 }
 0x9ef   :  { %v2393_v18 = vsel %vm280_vm8, %v2392_v43, %v4421_v50  ;;  %v2381_v23 = vsel %vm280_vm8, %v2380_v12, %v2094_v19  ;;  %v2188_v20 = vrot.slane %v2123_v39, 4  ;;  %v2191_v21 = vsel %vm280_vm8, %v2123_v39, %v2190_v17 }
 0x9f0   :  { %v2399_v61 = vperm.slane %v2393_v18, %v4813_v42  ;;  %v2416_v24 = vrot.slane %v2403_v35, 4  ;;  %v2387_v40 = vperm.slane %v2381_v23, %v4813_v42  ;;  %v2418_v29 = vrot.slane %v2391_v57, 4 }
 0x9f1   :  { %v2189_v36 = vsel %vm280_vm8, %v2188_v20, %v2082_v25  ;;  %v5581_v28 = vperm.slane %v2191_v21, %v4813_v42  ;;  %v2158_v25 = vrot.slane %v5558_v60, 4 }
 0x9f2   :  { %v2404_v8 = vrot.slane %v2399_v61, 4  ;;  %v2406_v38 = vrot.slane %v2387_v40, 4  ;;  %v2417_v31 = vsel %vm280_vm8, %v2416_v24, %v2391_v57  ;;  %v2419_v19 = vsel %vm280_vm8, %v2403_v35, %v2418_v29 }
 0x9f3   :  { %v2423_v30 = vperm.slane %v2417_v31, %v4821_v56  ;;  %v2427_v10 = vperm.slane %v2419_v19, %v4821_v56  ;;  %v5589_v46 = vperm.slane %v2189_v36, %v4813_v42  ;;  %v2226_v58 = vrot.slane %v5581_v28, 4 }
 0x9f4   :  { %v2405_v52 = vsel %vm280_vm8, %v2404_v8, %v2387_v40  ;;  %v2407_v45 = vsel %vm280_vm8, %v2399_v61, %v2406_v38  ;;  %v2127_v54 = vpop.permute.xlu0 %2126  ;;  %v2365_v48 = vpop.permute.xlu1 %2364 }
 0x9f5   :  { %v2411_v50 = vperm.slane %v2405_v52, %v4821_v56  ;;  %v2415_v53 = vperm.slane %v2407_v45, %v4821_v56  ;;  %v2432_v26 = vrot.slane %v2423_v30, 4  ;;  %v2434_v55 = vrot.slane %v2427_v10, 4 }
 0x9f6   :  { %v2144_v47 = vrot.slane %v2127_v54, 4  ;;  %v2147_v33 = vsel %vm280_vm8, %v2127_v54, %v2146_v1  ;;  %v2214_v43 = vrot.slane %v5589_v46, 4  ;;  %v2450_v18 = vrot.slane %v2365_v48, 4 }
 0x9f7   :  { %v2428_v4 = vrot.slane %v2411_v50, 4  ;;  %v2430_v6 = vrot.slane %v2415_v53, 4  ;;  %v2435_v17 = vsel %vm280_vm8, 0.0, %v2434_v55  ;;  %v2503_v22 = vsel %vm280_vm8, %v2434_v55, %v2423_v30 }
 0x9f8   :  { %v2508_v12 = vrot.slane %v2435_v17, 4  ;;  %v2145_v27 = vsel %vm280_vm8, %v2144_v47, %v4422_v59  ;;  %v2155_v34 = vperm.slane %v2147_v33, %v4813_v42  ;;  %v2433_v57 = vsel %vm280_vm8, 0.0, %v2432_v26 }
 0x9f9   :  { %v2431_v35 = vsel %vm280_vm8, 0.0, %v2430_v6  ;;  %v5608_v39 = vperm.slane %v2503_v22, %v4813_v42  ;;  %v2492_v23 = vsel %vm280_vm8, %v2430_v6, %v2411_v50  ;;  %v2151_v21 = vperm.slane %v2145_v27, %v4813_v42 }
 0x9fa   :  { %v2509_v20 = vsel %vm280_vm8, %v2508_v12, %v2433_v57  ;;  %v2168_v61 = vrot.slane %v2155_v34, 4  ;;  %v2429_v24 = vsel %vm280_vm8, 0.0, %v2428_v4  ;;  %v2497_v59 = vrot.slane %v2431_v35, 4 }
 0x9fb   :  { %v5615_v40 = vperm.slane %v2509_v20, %v4813_v42  ;;  %v2171_v29 = vsel %vm280_vm8, %v2155_v34, %v2170_v0  ;;  %v2156_v1 = vrot.slane %v2151_v21, 4  ;;  %v2159_v36 = vsel %vm280_vm8, %v2151_v21, %v2158_v25 }
 0x9fc   :  { %v2169_v8 = vsel %vm280_vm8, %v2168_v61, %v5561_v63  ;;  %v2179_v38 = vperm.slane %v2171_v29, %v4821_v56  ;;  %v2377_v31 = vpop.permute.xlu0 %2376  ;;  %v2528_v19 = vrot.slane %v5608_v39, 4  ;;  %v2167_v30 = vperm.slane %v2159_v36, %v4821_v56  ;;  %v2117_v26 = vpop.permute.xlu1 %2116 }
 0x9fd   :  { %v2175_v10 = vperm.slane %v2169_v8, %v4821_v56  ;;  %v5626_v52 = vperm.slane %v2492_v23, %v4813_v42  ;;  %v2157_v0 = vsel %vm280_vm8, %v2156_v1, %v5558_v60  ;;  %v2448_v25 = vrot.slane %v2377_v31, 4 }
 0x9fe   :  { %v2186_v45 = vrot.slane %v2179_v38, 4  ;;  %v2451_v54 = vsel %vm280_vm8, %v2377_v31, %v2450_v18  ;;  %v2163_v63 = vperm.slane %v2157_v0, %v4821_v56  ;;  %v2182_v50 = vrot.slane %v2167_v30, 4 }
 0x9ff   :  { %v2184_v53 = vrot.slane %v2175_v10, 4  ;;  %v2459_v55 = vperm.slane %v2451_v54, %v4813_v42  ;;  %v2526_v47 = vrot.slane %v5615_v40, 4  ;;  %v2449_v6 = vsel %vm280_vm8, %v2448_v25, %v2365_v48 }
 0xa00   :  { %v2187_v33 = vsel %vm280_vm8, 0.0, %v2186_v45  ;;  %v2255_v4 = vsel %vm280_vm8, %v2186_v45, %v2175_v10  ;;  %v2180_v60 = vrot.slane %v2163_v63, 4  ;;  %v2183_v17 = vsel %vm280_vm8, 0.0, %v2182_v50 }
 0xa01   :  { %v2185_v22 = vsel %vm280_vm8, 0.0, %v2184_v53  ;;  %v2244_v12 = vsel %vm280_vm8, %v2182_v50, %v2163_v63  ;;  %v2249_v34 = vrot.slane %v2183_v17, 4  ;;  %v2260_v35 = vrot.slane %v2187_v33, 4 }
 0xa02   :  { %v5641_v27 = vperm.slane %v2244_v12, %v4813_v42  ;;  %v2202_v57 = vrot.slane %v2117_v26, 4  ;;  %v2181_v18 = vsel %vm280_vm8, 0.0, %v2180_v60  ;;  %v2455_v23 = vperm.slane %v2449_v6, %v4813_v42 }
 0xa03   :  { %v2472_v20 = vrot.slane %v2459_v55, 4  ;;  %v2475_v48 = vsel %vm280_vm8, %v2459_v55, %v2474_v41  ;;  %v2250_v21 = vsel %vm280_vm8, %v2249_v34, %v2181_v18  ;;  %v5650_v61 = vperm.slane %v2255_v4, %v4813_v42 }
 0xa04   :  { %v2261_v29 = vsel %vm280_vm8, %v2260_v35, %v2185_v22  ;;  %v2129_v1 = vpop.permute.xlu0 %2128  ;;  %v2498_v36 = vsel %vm280_vm8, %v2497_v59, %v2429_v24  ;;  %v2268_v38 = vrot.slane %v5641_v27, 4  ;;  %v2460_v31 = vrot.slane %v2455_v23, 4 }
 0xa05   :  { %v5655_v8 = vperm.slane %v2261_v29, %v4813_v42  ;;  %v2463_v41 = vsel %vm280_vm8, %v2455_v23, %v2462_v51  ;;  %v2473_v10 = vsel %vm280_vm8, %v2472_v20, %v5567_v49  ;;  %v2483_v0 = vperm.slane %v2475_v48, %v4821_v56 }
 0xa06   :  { %v2471_v30 = vperm.slane %v2463_v41, %v4821_v56  ;;  %v2200_v45 = vrot.slane %v2129_v1, 4  ;;  %v2461_v59 = vsel %vm280_vm8, %v2460_v31, %v5577_v44  ;;  %v2479_v25 = vperm.slane %v2473_v10, %v4821_v56 }
 0xa07   :  { %v2278_v24 = vrot.slane %v5655_v8, 4  ;;  %v2203_v54 = vsel %vm280_vm8, %v2129_v1, %v2202_v57  ;;  %v2467_v63 = vperm.slane %v2461_v59, %v4821_v56  ;;  %v2490_v50 = vrot.slane %v2483_v0, 4 }
 0xa08   :  { %v2486_v51 = vrot.slane %v2471_v30, 4  ;;  %v2201_v53 = vsel %vm280_vm8, %v2200_v45, %v2117_v26  ;;  %v2280_v49 = vrot.slane %v5650_v61, 4  ;;  %v2488_v55 = vrot.slane %v2479_v25, 4 }
 0xa09   :  { %v2207_v33 = vperm.slane %v2201_v53, %v4813_v42  ;;  %v2211_v4 = vperm.slane %v2203_v54, %v4813_v42  ;;  %v5676_v6 = vperm.slane %v2250_v21, %v4813_v42  ;;  %v2484_v44 = vrot.slane %v2467_v63, 4 }
 0xa0a   :  { %v5679_v60 = vsel %vm280_vm8, 0.0, %v2486_v51  ;;  %v2491_v17 = vsel %vm280_vm8, 0.0, %v2490_v50  ;;  %v5684_v22 = vsel %vm280_vm8, %v2278_v24, %v5650_v61  ;;  %v2489_v26 = vsel %vm280_vm8, 0.0, %v2488_v55 }
 0xa0b   :  { %v2557_v12 = vsel %vm280_vm8, %v2490_v50, %v2479_v25  ;;  %v2562_v34 = vrot.slane %v2491_v17, 4  ;;  %v5689_v35 = vsel %vm280_vm8, %v2486_v51, %v2467_v63  ;;  %v2551_v57 = vrot.slane %v5679_v60, 4 }
 0xa0c   :  { %v2212_v18 = vrot.slane %v2207_v33, 4  ;;  %v2215_v23 = vsel %vm280_vm8, %v2207_v33, %v2214_v43  ;;  %v5696_v20 = vsel %vm280_vm8, 0.0, %v2484_v44  ;;  %v2224_v21 = vrot.slane %v2211_v4, 4 }
 0xa0d   :  { %v2223_v48 = vperm.slane %v2215_v23, %v4821_v56  ;;  %v2227_v29 = vsel %vm280_vm8, %v2211_v4, %v2226_v58  ;;  %v5703_v1 = vperm.slane %v2557_v12, %v4813_v42  ;;  %v2563_v31 = vsel %vm280_vm8, %v2562_v34, %v2489_v26 }
 0xa0e   :  { %v2213_v41 = vsel %vm280_vm8, %v2212_v18, %v5589_v46  ;;  %v2235_v43 = vperm.slane %v2227_v29, %v4821_v56  ;;  %v2225_v10 = vsel %vm280_vm8, %v2224_v21, %v5581_v28  ;;  %v2502_v45 = vperm.slane %v2498_v36, %v4813_v42 }
 0xa0f   :  { %v2219_v30 = vperm.slane %v2213_v41, %v4821_v56  ;;  %v2238_v0 = vrot.slane %v2223_v48, 4  ;;  %v2231_v58 = vperm.slane %v2225_v10, %v4821_v56  ;;  %v2516_v59 = vrot.slane %v5626_v52, 4 }
 0xa10   :  { %v2242_v24 = vrot.slane %v2235_v43, 4  ;;  %v2529_v46 = vsel %vm280_vm8, %v5615_v40, %v2528_v19  ;;  %v5730_v44 = vperm.slane %v2563_v31, %v4813_v42  ;;  %v2582_v17 = vrot.slane %v5703_v1, 4 }
 0xa11   :  { %v2236_v25 = vrot.slane %v2219_v30, 4  ;;  %v2239_v54 = vsel %vm280_vm8, 0.0, %v2238_v0  ;;  %v2298_v63 = vsel %vm280_vm8, %v2238_v0, %v2219_v30  ;;  %v2537_v28 = vperm.slane %v2529_v46, %v4821_v56 }
 0xa12   :  { %v2240_v51 = vrot.slane %v2231_v58, 4  ;;  %v2243_v36 = vsel %vm280_vm8, 0.0, %v2242_v24  ;;  %v5724_v50 = vperm.slane %v2298_v63, %v4813_v42  ;;  %v2303_v53 = vrot.slane %v2239_v54, 4 }
 0xa13   :  { %v2237_v55 = vsel %vm280_vm8, 0.0, %v2236_v25  ;;  %v2309_v33 = vsel %vm280_vm8, %v2242_v24, %v2231_v58  ;;  %v2314_v4 = vrot.slane %v2243_v36, 4  ;;  %v2517_v19 = vsel %vm280_vm8, %v2502_v45, %v2516_v59 }
 0xa14   :  { %v2241_v26 = vsel %vm280_vm8, 0.0, %v2240_v51  ;;  %v5735_v12 = vperm.slane %v2309_v33, %v4813_v42  ;;  %v2304_v34 = vsel %vm280_vm8, %v2303_v53, %v2237_v55  ;;  %v2525_v23 = vperm.slane %v2517_v19, %v4821_v56 }
 0xa15   :  { %v2315_v18 = vsel %vm280_vm8, %v2314_v4, %v2241_v26  ;;  %v2542_v48 = vrot.slane %v2537_v28, 4  ;;  %v2322_v29 = vrot.slane %v5724_v50, 4  ;;  %v2514_v31 = vrot.slane %v2502_v45, 4 }
 0xa16   :  { %v2319_v21 = vperm.slane %v2315_v18, %v4813_v42  ;;  %v2527_v41 = vsel %vm280_vm8, %v2526_v47, %v5608_v39  ;;  %v2544_v10 = vrot.slane %v2525_v23, 4  ;;  %v2269_v0 = vsel %vm280_vm8, %v5676_v6, %v2268_v38 }
 0xa17   :  { %v2543_v43 = vsel %vm280_vm8, %v2542_v48, %v2525_v23  ;;  %v2533_v30 = vperm.slane %v2527_v41, %v4821_v56  ;;  %v2334_v58 = vrot.slane %v5735_v12, 4  ;;  %v2515_v45 = vsel %vm280_vm8, %v2514_v31, %v5626_v52 }
 0xa18   :  { %v2602_v24 = vpack.c.bf16 %v2543_v43, %v2543_v43  ;;  %v2277_v40 = vperm.slane %v2269_v0, %v4821_v56  ;;  %v2521_v39 = vperm.slane %v2515_v45, %v4821_v56  ;;  %v2545_v59 = vsel %vm280_vm8, %v2537_v28, %v2544_v10 }
 0xa19   :  { %v2538_v47 = vrot.slane %v2533_v30, 4  ;;  %v2281_v46 = vsel %vm280_vm8, %v5655_v8, %v2280_v49  ;;  %v2332_v25 = vrot.slane %v2319_v21, 4  ;;  %v2603_v54 = vpack.c.bf16 %v2545_v59, %v2545_v59 }
 0xa1a   :  { %v2898_v38 = vsel %vm1028_vm9, %v2602_v24, 0  ;;  %v2289_v63 = vperm.slane %v2281_v46, %v4821_v56  ;;  %v2540_v51 = vrot.slane %v2521_v39, 4  ;;  %v2266_v36 = vrot.slane %v5676_v6, 4 }
 0xa1b   :  { %2907 = vmatpush.bf16.xpose.msrb.mxu3 %v2898_v38  ;;  %v2539_v52 = vsel %vm280_vm8, %v2538_v47, %v2521_v39  ;;  %v2285_v28 = vperm.slane %v5684_v22, %v4821_v56  ;;  %v2917_v61 = vsel %vm1028_vm9, %v2603_v54, 0  ;;  %v2296_v8 = vrot.slane %v2277_v40, 4 }
 0xa1c   :  { %v2600_v53 = vpack.c.bf16 %v2539_v52, %v2539_v52  ;;  %v2294_v55 = vrot.slane %v2289_v63, 4  ;;  %2926 = vmatpush.bf16.xpose.msra.mxu0 %v2917_v61  ;;  %v2541_v49 = vsel %vm280_vm8, %v2533_v30, %v2540_v51  ;;  %v2267_v33 = vsel %vm280_vm8, %v2266_v36, %v5641_v27 }
 0xa1d   :  { %v2290_v4 = vrot.slane %v2285_v28, 4  ;;  %v2550_v19 = vperm.slane %v5689_v35, %v4813_v42  ;;  %v2601_v26 = vpack.c.bf16 %v2541_v49, %v2541_v49  ;;  %v2273_v18 = vperm.slane %v2267_v33, %v4821_v56 }
 0xa1e   :  { %v2860_v6 = vsel %vm1028_vm9, %v2600_v53, 0  ;;  %v2295_v22 = vsel %vm280_vm8, %v2294_v55, %v2277_v40  ;;  %v2308_v23 = vperm.slane %v2304_v34, %v4813_v42  ;;  %v2297_v48 = vsel %vm280_vm8, %v2289_v63, %v2296_v8 }
 0xa1f   :  { %2869 = vmatpush.bf16.xpose.msra.mxu1 %v2860_v6  ;;  %v2552_v27 = vsel %vm280_vm8, %v2551_v57, %v5696_v20  ;;  %v2570_v31 = vrot.slane %v2550_v19, 4  ;;  %v2879_v35 = vsel %vm1028_vm9, %v2601_v26, 0  ;;  %v2354_v41 = vpack.c.bf16 %v2295_v22, %v2295_v22 }
 0xa20   :  { %v2291_v43 = vsel %vm280_vm8, %v2290_v4, %v2273_v18  ;;  %v2292_v30 = vrot.slane %v2273_v18, 4  ;;  %v2333_v10 = vsel %vm280_vm8, %v2332_v25, %v5735_v12  ;;  %2888 = vmatpush.bf16.xpose.msra.mxu2 %v2879_v35  ;;  %v2556_v34 = vperm.slane %v2552_v27, %v4813_v42 }
 0xa21   :  { %v2583_v0 = vsel %vm280_vm8, %v5730_v44, %v2582_v17  ;;  %v2580_v60 = vrot.slane %v5730_v44, 4  ;;  %v2355_v57 = vpack.c.bf16 %v2297_v48, %v2297_v48  ;;  %v2335_v45 = vsel %vm280_vm8, %v2319_v21, %v2334_v58 }
 0xa22   :  { %4169 = vmatmul.msk.bf16.vlgmr.msrb.gmra.mxu3 %vm1028_vm9, %v2354_v41  ;;  %v2293_v20 = vsel %vm280_vm8, %v2285_v28, %v2292_v30  ;;  %v2591_v24 = vperm.slane %v2583_v0, %v4821_v56  ;;  %v2352_v40 = vpack.c.bf16 %v2291_v43, %v2291_v43  ;;  %v2571_v12 = vsel %vm280_vm8, %v2556_v34, %v2570_v31 }
 0xa23   :  { %v2568_v39 = vrot.slane %v2556_v34, 4  ;;  %v2581_v47 = vsel %vm280_vm8, %v2580_v60, %v5703_v1  ;;  %4170 = vmatmul.msk.bf16.vlgmr.msra.gmra.mxu0 %vm1028_vm9, %v2355_v57  ;;  %v2579_v44 = vperm.slane %v2571_v12, %v4821_v56  ;;  %v2323_v46 = vsel %vm280_vm8, %v2308_v23, %v2322_v29  ;;  %v2107_v60 = vpop.f32.mrf.mxu3 }
 0xa24   :  { %v2596_v17 = vrot.slane %v2591_v24, 4  ;;  %v2587_v59 = vperm.slane %v2581_v47, %v4821_v56  ;;  %v2353_v25 = vpack.c.bf16 %v2293_v20, %v2293_v20  ;;  %v2343_v58 = vperm.slane %v2335_v45, %v4821_v56 }
 0xa25   :  { %v2569_v21 = vsel %vm280_vm8, %v2568_v39, %v2550_v19  ;;  %v2320_v38 = vrot.slane %v2308_v23, 4  ;;  %v2598_v52 = vrot.slane %v2579_v44, 4  ;;  %v2331_v36 = vperm.slane %v2323_v46, %v4821_v56 }
 0xa26   :  { %4167 = vmatmul.msk.bf16.vlgmr.msra.gmra.mxu1 %vm1028_vm9, %v2352_v40  ;;  %v2597_v1 = vsel %vm280_vm8, %v2596_v17, %v2579_v44  ;;  %v2575_v54 = vperm.slane %v2569_v21, %v4821_v56  ;;  %v2592_v63 = vrot.slane %v2587_v59, 4  ;;  %v2339_v55 = vperm.slane %v2333_v10, %v4821_v56 }
 0xa27   :  { %v2606_v51 = vpack.c.bf16 %v2597_v1, %v2597_v1  ;;  %v2321_v29 = vsel %vm280_vm8, %v2320_v38, %v5724_v50  ;;  %4168 = vmatmul.msk.bf16.vlgmr.msra.gmra.mxu2 %vm1028_vm9, %v2353_v25  ;;  %v2599_v53 = vsel %vm280_vm8, %v2591_v24, %v2598_v52  ;;  %v2348_v4 = vrot.slane %v2343_v58, 4 }
 0xa28   :  { %v2593_v28 = vsel %vm280_vm8, %v2592_v63, %v2575_v54  ;;  %v2594_v61 = vrot.slane %v2575_v54, 4  ;;  %v2607_v33 = vpack.c.bf16 %v2599_v53, %v2599_v53  ;;  %v2327_v6 = vperm.slane %v2321_v29, %v4821_v56 }
 0xa29   :  { %v2974_v8 = vsel %vm1028_vm9, %v2606_v51, 0  ;;  %v2604_v49 = vpack.c.bf16 %v2593_v28, %v2593_v28  ;;  %v2350_v18 = vrot.slane %v2331_v36, 4  ;;  %v2349_v48 = vsel %vm280_vm8, %v2348_v4, %v2331_v36 }
 0xa2a   :  { %2983 = vmatpush.bf16.xpose.msra.mxu3 %v2974_v8  ;;  %v2595_v19 = vsel %vm280_vm8, %v2587_v59, %v2594_v61  ;;  %v2993_v26 = vsel %vm1028_vm9, %v2607_v33, 0  ;;  %v2344_v27 = vrot.slane %v2339_v55, 4  ;;  %v2346_v35 = vrot.slane %v2327_v6, 4 }
 0xa2b   :  { %v2936_v50 = vsel %vm1028_vm9, %v2604_v49, 0  ;;  %v2605_v22 = vpack.c.bf16 %v2595_v19, %v2595_v19  ;;  %3002 = vmatpush.bf16.xpose.msrb.mxu0 %v2993_v26  ;;  %v2351_v31 = vsel %vm280_vm8, %v2343_v58, %v2350_v18  ;;  %v2358_v41 = vpack.c.bf16 %v2349_v48, %v2349_v48  ;;  %v2109_v57 = vpop.f32.mrf.mxu3 }
 0xa2c   :  { %2945 = vmatpush.bf16.xpose.msrb.mxu1 %v2936_v50  ;;  %v2345_v43 = vsel %vm280_vm8, %v2344_v27, %v2327_v6  ;;  %v2359_v30 = vpack.c.bf16 %v2351_v31, %v2351_v31  ;;  %v2347_v10 = vsel %vm280_vm8, %v2339_v55, %v2346_v35  ;;  %v1999_v55 = vperm.slane %v5535_v7, 2 }
 0xa2d   :  { %v2955_v23 = vsel %vm1028_vm9, %v2605_v22, 0  ;;  %v2356_v34 = vpack.c.bf16 %v2345_v43, %v2345_v43  ;;  %v2357_v0 = vpack.c.bf16 %v2347_v10, %v2347_v10 }
 0xa2e   :  { %2964 = vmatpush.bf16.xpose.msrb.mxu2 %v2955_v23  ;;  %v5851_v8 = vadd.f32 %v2109_v57, %v1999_v55  ;;  %v5853_v49 = vadd.f32 %v2107_v60, %v1999_v55 }
 0xa32   :  { %4173 = vmatmul.msk.bf16.vlgmr.msra.gmra.mxu3 %vm1028_vm9, %v2358_v41 }
 0xa33   :  { %4174 = vmatmul.msk.bf16.vlgmr.msrb.gmra.mxu0 %vm1028_vm9, %v2359_v30 }
 0xa36   :  { %4171 = vmatmul.msk.bf16.vlgmr.msrb.gmra.mxu1 %vm1028_vm9, %v2356_v34 }
 0xa37   :  { %4172 = vmatmul.msk.bf16.vlgmr.msrb.gmra.mxu2 %vm1028_vm9, %v2357_v0 }
 0xaa0   :  { %v2928_v20 = vpop.f32.mrf.mxu0 }
 0xaa1   :  { %v2929_v24 = vadd.f32 %v2928_v20, %v5061_v5 }
 0xaa3   :  { %v2871_v45 = vpop.f32.mrf.mxu1  ;;  %v3017_v12 = vsel %vm1181_vm10, %v2929_v24, -inf }
 0xaa4   :  { %v2872_v40 = vadd.f32 %v2871_v45, %v1012_v37  ;;  %3018 = vmax.xlane.f32.xlu1 %v3017_v12 }
 0xaa5   :  { %v2909_v39 = vpop.f32.mrf.mxu3 }
 0xaa6   :  { %v3008_v47 = vsel %vm1181_vm10, %v2872_v40, -inf  ;;  %v2910_v44 = vadd.f32 %v2909_v39, %v5063_v16 }
 0xaa7   :  { %3009 = vmax.xlane.f32.xlu0 %v3008_v47 }
 0xaa8   :  { %v2930_v17 = vpop.f32.mrf.mxu0  ;;  %v3014_v5 = vsel %vm1181_vm10, %v2910_v44, -inf }
 0xaaa   :  { %v2890_v46 = vpop.f32.mrf.mxu2 }
 0xaab   :  { %v2873_v59 = vpop.f32.mrf.mxu1  ;;  %v2891_v25 = vadd.f32 %v2890_v46, %v5096_v62 }
 0xaac   :  { %3015 = vmax.xlane.f32.xlu1 %v3014_v5 }
 0xaad   :  { %v2911_v21 = vpop.f32.mrf.mxu3  ;;  %v3011_v15 = vsel %vm1181_vm10, %v2891_v25, -inf }
 0xaae   :  { %3012 = vmax.xlane.f32.xlu2 %v3011_v15 }
 0xab0   :  { %v3004_v37 = vpop.f32.mrf.mxu0 }
 0xab1   :  { %v5840_v58 = vadd.f32 %v3004_v37, %v5088_v3 }
 0xab2   :  { %v2892_v38 = vpop.f32.mrf.mxu2 }
 0xab3   :  { %v2947_v1 = vpop.f32.mrf.mxu1  ;;  %v3029_v54 = vsel %vm1181_vm10, %v5840_v58, -inf  ;;  %v2630_v38 = vrot.slane %v5853_v49, 4 }
 0xab4   :  { %v2948_v16 = vadd.f32 %v2947_v1, %v5081_v9 }
 0xab5   :  { %v2985_v63 = vpop.f32.mrf.mxu3 }
 0xab6   :  { %v3020_v62 = vsel %vm1181_vm10, %v2948_v16, -inf  ;;  %3030 = vmax.xlane.f32.xlu2 %v3029_v54  ;;  %v2986_v51 = vadd.f32 %v2985_v63, %v5077_v2  ;;  %v4428_v2 = vpack.i.bf16 %v5851_v8, %v5853_v49  ;;  %v2686_v63 = vrot.slane %v5851_v8, 4 }
 0xab7   :  { %3021 = vmax.xlane.f32.xlu1 %v3020_v62 }
 0xab8   :  { %v3006_v52 = vpop.f32.mrf.mxu0  ;;  %v3026_v53 = vsel %vm1181_vm10, %v2986_v51, -inf }
 0xaba   :  { %v2966_v29 = vpop.f32.mrf.mxu2 }
 0xabb   :  { %v2949_v36 = vpop.f32.mrf.mxu1  ;;  %v2967_v3 = vadd.f32 %v2966_v29, %v5103_v14 }
 0xabd   :  { %v2987_v28 = vpop.f32.mrf.mxu3  ;;  %v3023_v9 = vsel %vm1181_vm10, %v2967_v3, -inf }
 0xabe   :  { %3027 = vmax.xlane.f32.xlu2 %v3026_v53  ;;  %3024 = vmax.xlane.f32.xlu0 %v3023_v9 }
 0xac2   :  { %v2968_v61 = vpop.f32.mrf.mxu2 }
 0xad0   :  { %4429 = vrot.lane.b32.xlu1 %v4428_v2, %s4629_s0 }
 0xad2   :  { %4424 = vrot.lane.b32.xlu0 %v4428_v2, %s4628_s11 }
 0xad6   :  { %4434 = vrot.lane.b32.xlu2 %v4428_v2, %s4627_s3 }
 0xb17   :  { %v3019_v14 = vpop.xlane.xlu1 %3018 }
 0xb18   :  { %v3035_v26 = vsub.f32 %v2929_v24, %v3019_v14 }
 0xb1a   :  { %v3010_v33 = vpop.xlane.xlu0 %3009  ;;  %v3046_v31 = vmul.f32 1.442695, %v3035_v26 }
 0xb1b   :  { %v3032_v4 = vsub.f32 %v2872_v40, %v3010_v33 }
 0xb1d   :  { %v3040_v19 = vmul.f32 1.442695, %v3032_v4 }
 0xb1f   :  { %4522 = vpow2.f32 %v3040_v19  ;;  %v3016_v6 = vpop.xlane.xlu1 %3015 }
 0xb20   :  { %v3034_v7 = vsub.f32 %v2910_v44, %v3016_v6 }
 0xb21   :  { %v3013_v50 = vpop.xlane.xlu2 %3012 }
 0xb22   :  { %v3044_v22 = vmul.f32 1.442695, %v3034_v7  ;;  %v3033_v18 = vsub.f32 %v2891_v25, %v3013_v50 }
 0xb24   :  { %4524 = vpow2.f32 %v3044_v22  ;;  %v3042_v48 = vmul.f32 1.442695, %v3033_v18 }
 0xb25   :  { %v5860_v23 = vpop.eup %4522 }
 0xb26   :  { %v3056_v27 = vsel %vm1181_vm10, %v5860_v23, 0.0  ;;  %4526 = vpow2.f32 %v3042_v48 }
 0xb27   :  { %3057 = vadd.xlane.f32.xlu1 %v3056_v27  ;;  %4528 = vpow2.f32 %v3046_v31 }
 0xb29   :  { %v3031_v35 = vpop.xlane.xlu2 %3030 }
 0xb2a   :  { %v3022_v41 = vpop.xlane.xlu1 %3021  ;;  %v5864_v43 = vpop.eup %4524  ;;  %v3039_v39 = vsub.f32 %v5840_v58, %v3031_v35 }
 0xb2b   :  { %v3036_v30 = vsub.f32 %v2948_v16, %v3022_v41  ;;  %v3062_v10 = vsel %vm1181_vm10, %v5864_v43, 0.0 }
 0xb2c   :  { %v5868_v34 = vpop.eup %4526  ;;  %3063 = vadd.xlane.f32.xlu0 %v3062_v10  ;;  %v3054_v46 = vmul.f32 1.442695, %v3039_v39 }
 0xb2d   :  { %v3048_v0 = vmul.f32 1.442695, %v3036_v30  ;;  %v3059_v60 = vsel %vm1181_vm10, %v5868_v34, 0.0  ;;  %v5872_v57 = vpop.eup %4528 }
 0xb2e   :  { %3060 = vadd.xlane.f32.xlu2 %v3059_v60  ;;  %v3065_v12 = vsel %vm1181_vm10, %v5872_v57, 0.0 }
 0xb2f   :  { %4530 = vpow2.f32 %v3048_v0 }
 0xb31   :  { %v3028_v20 = vpop.xlane.xlu2 %3027  ;;  %v3025_v24 = vpop.xlane.xlu0 %3024 }
 0xb32   :  { %v3038_v45 = vsub.f32 %v2986_v51, %v3028_v20  ;;  %v3037_v40 = vsub.f32 %v2967_v3, %v3025_v24 }
 0xb34   :  { %v3052_v47 = vmul.f32 1.442695, %v3038_v45  ;;  %v3050_v44 = vmul.f32 1.442695, %v3037_v40  ;;  %3066 = vadd.xlane.f32.xlu0 %v3065_v12 }
 0xb35   :  { %v5877_v17 = vpop.eup %4530 }
 0xb36   :  { %4532 = vpow2.f32 %v3052_v47  ;;  %v3068_v59 = vsel %vm1181_vm10, %v5877_v17, 0.0 }
 0xb37   :  { %4534 = vpow2.f32 %v3050_v44  ;;  %3069 = vadd.xlane.f32.xlu1 %v3068_v59 }
 0xb38   :  { %4536 = vpow2.f32 %v3054_v46 }
 0xb39   :  { %v4435_v15 = vpop.permute.xlu2 %4434 }
 0xb3a   :  { %v4437_v58 = vunpack.i.h.bf16 %v4435_v15  ;;  %v4436_v54 = vunpack.i.l.bf16 %v4435_v15 }
 0xb3c   :  { %v5881_v25 = vpop.eup %4532  ;;  %v2696_v53 = vrot.slane %v4437_v58, 4  ;;  %v2640_v2 = vrot.slane %v4436_v54, 4 }
 0xb3d   :  { %v5883_v5 = vpop.eup %4534  ;;  %v3074_v21 = vsel %vm1181_vm10, %v5881_v25, 0.0 }
 0xb3e   :  { %3075 = vadd.xlane.f32.xlu2 %v3074_v21  ;;  %v3071_v37 = vsel %vm1181_vm10, %v5883_v5, 0.0  ;;  %v5890_v16 = vpop.eup %4536 }
 0xb3f   :  { %3072 = vadd.xlane.f32.xlu0 %v3071_v37  ;;  %v3077_v55 = vsel %vm1181_vm10, %v5890_v16, 0.0 }
 0xb42   :  { %v4430_v1 = vpop.permute.xlu1 %4429 }
 0xb43   :  { %v4432_v62 = vunpack.i.h.bf16 %v4430_v1  ;;  %v4431_v52 = vunpack.i.l.bf16 %v4430_v1 }
 0xb44   :  { %v4425_v28 = vpop.permute.xlu0 %4424 }
 0xb45   :  { %v2684_v51 = vrot.slane %v4432_v62, 4  ;;  %v2687_v36 = vsel %vm280_vm8, %v4432_v62, %v2686_v63  ;;  %v2628_v29 = vrot.slane %v4431_v52, 4  ;;  %v2631_v3 = vsel %vm280_vm8, %v4431_v52, %v2630_v38 }
 0xb46   :  { %v4427_v9 = vunpack.i.h.bf16 %v4425_v28  ;;  %v4426_v61 = vunpack.i.l.bf16 %v4425_v28  ;;  %v2695_v33 = vperm.slane %v2687_v36, %v4813_v42  ;;  %3078 = vadd.xlane.f32.xlu2 %v3077_v55  ;;  %v2639_v7 = vperm.slane %v2631_v3, %v4813_v42 }
 0xb47   :  { %v2685_v14 = vsel %vm280_vm8, %v2684_v51, %v5851_v8  ;;  %v2629_v4 = vsel %vm280_vm8, %v2628_v29, %v5853_v49 }
 0xb48   :  { %v2691_v19 = vperm.slane %v2685_v14, %v4813_v42  ;;  %v2635_v6 = vperm.slane %v2629_v4, %v4813_v42  ;;  %v2697_v50 = vsel %vm280_vm8, %v2696_v53, %v4427_v9  ;;  %v2698_v26 = vrot.slane %v4427_v9, 4 }
 0xb49   :  { %v2641_v22 = vsel %vm280_vm8, %v2640_v2, %v4426_v61  ;;  %v2642_v18 = vrot.slane %v4426_v61, 4  ;;  %v2703_v27 = vperm.slane %v2697_v50, %v4813_v42  ;;  %v2722_v49 = vrot.slane %v2695_v33, 4 }
 0xb4a   :  { %v2710_v48 = vrot.slane %v2691_v19, 4  ;;  %v2654_v8 = vrot.slane %v2635_v6, 4  ;;  %v2647_v31 = vperm.slane %v2641_v22, %v4813_v42  ;;  %v2699_v35 = vsel %vm280_vm8, %v4437_v58, %v2698_v26 }
 0xb4b   :  { %v2643_v41 = vsel %vm280_vm8, %v4436_v54, %v2642_v18  ;;  %v2707_v30 = vperm.slane %v2699_v35, %v4813_v42  ;;  %v2708_v10 = vrot.slane %v2703_v27, 4  ;;  %v2666_v20 = vrot.slane %v2639_v7, 4 }
 0xb4c   :  { %v2711_v0 = vsel %vm280_vm8, %v2703_v27, %v2710_v48  ;;  %v2651_v60 = vperm.slane %v2643_v41, %v4813_v42  ;;  %v2652_v45 = vrot.slane %v2647_v31, 4  ;;  %v2655_v40 = vsel %vm280_vm8, %v2647_v31, %v2654_v8 }
 0xb4d   :  { %v2719_v24 = vperm.slane %v2711_v0, %v4821_v56  ;;  %v2709_v12 = vsel %vm280_vm8, %v2708_v10, %v2691_v19  ;;  %v2720_v39 = vrot.slane %v2707_v30, 4  ;;  %v2723_v47 = vsel %vm280_vm8, %v2707_v30, %v2722_v49 }
 0xb4e   :  { %v2663_v44 = vperm.slane %v2655_v40, %v4821_v56  ;;  %v2715_v59 = vperm.slane %v2709_v12, %v4821_v56  ;;  %v2731_v46 = vperm.slane %v2723_v47, %v4821_v56  ;;  %v2653_v15 = vsel %vm280_vm8, %v2652_v45, %v2635_v6 }
 0xb4f   :  { %v2734_v21 = vrot.slane %v2719_v24, 4  ;;  %v2721_v37 = vsel %vm280_vm8, %v2720_v39, %v2695_v33  ;;  %v2659_v58 = vperm.slane %v2653_v15, %v4821_v56  ;;  %v2664_v38 = vrot.slane %v2651_v60, 4 }
 0xb50   :  { %v2667_v1 = vsel %vm280_vm8, %v2651_v60, %v2666_v20  ;;  %v2727_v54 = vperm.slane %v2721_v37, %v4821_v56  ;;  %v2732_v63 = vrot.slane %v2715_v59, 4  ;;  %v2738_v52 = vrot.slane %v2731_v46, 4 }
 0xb51   :  { %v2735_v62 = vsel %vm280_vm8, 0.0, %v2734_v21  ;;  %v2794_v51 = vsel %vm280_vm8, %v2734_v21, %v2715_v59  ;;  %v2665_v29 = vsel %vm280_vm8, %v2664_v38, %v2639_v7  ;;  %v2675_v3 = vperm.slane %v2667_v1, %v4821_v56 }
 0xb52   :  { %v2799_v36 = vrot.slane %v2735_v62, 4  ;;  %v2733_v28 = vsel %vm280_vm8, 0.0, %v2732_v63  ;;  %v2736_v53 = vrot.slane %v2727_v54, 4  ;;  %v2739_v9 = vsel %vm280_vm8, 0.0, %v2738_v52 }
 0xb53   :  { %v2798_v61 = vperm.slane %v2794_v51, %v4813_v42  ;;  %v2810_v55 = vrot.slane %v2739_v9, 4  ;;  %v2671_v2 = vperm.slane %v2665_v29, %v4821_v56  ;;  %v2676_v14 = vrot.slane %v2659_v58, 4 }
 0xb54   :  { %v2678_v33 = vrot.slane %v2663_v44, 4  ;;  %v2682_v4 = vrot.slane %v2675_v3, 4  ;;  %v2737_v19 = vsel %vm280_vm8, 0.0, %v2736_v53  ;;  %v2800_v6 = vsel %vm280_vm8, %v2799_v36, %v2733_v28 }
 0xb55   :  { %v2805_v7 = vsel %vm280_vm8, %v2738_v52, %v2727_v54  ;;  %v2677_v50 = vsel %vm280_vm8, 0.0, %v2676_v14  ;;  %v2680_v22 = vrot.slane %v2671_v2, 4  ;;  %v2804_v30 = vperm.slane %v2800_v6, %v4813_v42 }
 0xb56   :  { %v2679_v26 = vsel %vm280_vm8, 0.0, %v2678_v33  ;;  %v2740_v18 = vsel %vm280_vm8, %v2678_v33, %v2659_v58  ;;  %v2683_v48 = vsel %vm280_vm8, 0.0, %v2682_v4  ;;  %v2751_v31 = vsel %vm280_vm8, %v2682_v4, %v2671_v2 }
 0xb57   :  { %v2744_v8 = vperm.slane %v2740_v18, %v4813_v42  ;;  %v2745_v27 = vrot.slane %v2679_v26, 4  ;;  %v2756_v49 = vrot.slane %v2683_v48, 4  ;;  %v2681_v35 = vsel %vm280_vm8, 0.0, %v2680_v22 }
 0xb58   :  { %v2755_v41 = vperm.slane %v2751_v31, %v4813_v42  ;;  %v2809_v60 = vperm.slane %v2805_v7, %v4813_v42  ;;  %v2811_v20 = vsel %vm280_vm8, %v2810_v55, %v2737_v19  ;;  %v2818_v47 = vrot.slane %v2798_v61, 4 }
 0xb59   :  { %v2746_v10 = vsel %vm280_vm8, %v2745_v27, %v2677_v50  ;;  %v2764_v0 = vrot.slane %v2744_v8, 4  ;;  %v2757_v45 = vsel %vm280_vm8, %v2756_v49, %v2681_v35  ;;  %v2815_v12 = vperm.slane %v2811_v20, %v4813_v42 }
 0xb5a   :  { %v2750_v24 = vperm.slane %v2746_v10, %v4813_v42  ;;  %v2776_v40 = vrot.slane %v2755_v41, 4  ;;  %v2761_v39 = vperm.slane %v2757_v45, %v4813_v42  ;;  %v2830_v44 = vrot.slane %v2809_v60, 4 }
 0xb5b   :  { %v2816_v59 = vrot.slane %v2804_v30, 4  ;;  %v2828_v15 = vrot.slane %v2815_v12, 4  ;;  %v2819_v38 = vsel %vm280_vm8, %v2804_v30, %v2818_v47 }
 0xb5c   :  { %v2765_v46 = vsel %vm280_vm8, %v2750_v24, %v2764_v0  ;;  %v2762_v21 = vrot.slane %v2750_v24, 4  ;;  %v2777_v58 = vsel %vm280_vm8, %v2761_v39, %v2776_v40  ;;  %v2831_v1 = vsel %vm280_vm8, %v2815_v12, %v2830_v44 }
 0xb5d   :  { %v2773_v37 = vperm.slane %v2765_v46, %v4821_v56  ;;  %v2785_v54 = vperm.slane %v2777_v58, %v4821_v56  ;;  %v2827_v63 = vperm.slane %v2819_v38, %v4821_v56  ;;  %v2839_v62 = vperm.slane %v2831_v1, %v4821_v56 }
 0xb5e   :  { %v2763_v52 = vsel %vm280_vm8, %v2762_v21, %v2744_v8  ;;  %v2774_v29 = vrot.slane %v2761_v39, 4  ;;  %v2817_v3 = vsel %vm280_vm8, %v2816_v59, %v2798_v61  ;;  %v2829_v4 = vsel %vm280_vm8, %v2828_v15, %v2809_v60 }
 0xb5f   :  { %v2792_v51 = vrot.slane %v2773_v37, 4  ;;  %v2769_v36 = vperm.slane %v2763_v52, %v4821_v56  ;;  %v2790_v28 = vrot.slane %v2785_v54, 4  ;;  %v2846_v53 = vrot.slane %v2827_v63, 4 }
 0xb60   :  { %v2844_v9 = vrot.slane %v2839_v62, 4  ;;  %v2823_v55 = vperm.slane %v2817_v3, %v4821_v56  ;;  %v2775_v14 = vsel %vm280_vm8, %v2774_v29, %v2755_v41  ;;  %v2835_v18 = vperm.slane %v2829_v4, %v4821_v56 }
 0xb61   :  { %v2793_v2 = vsel %vm280_vm8, %v2785_v54, %v2792_v51  ;;  %v2788_v33 = vrot.slane %v2769_v36, 4  ;;  %v2791_v6 = vsel %vm280_vm8, %v2790_v28, %v2773_v37  ;;  %v2847_v7 = vsel %vm280_vm8, %v2839_v62, %v2846_v53 }
 0xb62   :  { %v2851_v19 = vpack.c.bf16 %v2793_v2, %v2793_v2  ;;  %v2781_v50 = vperm.slane %v2775_v14, %v4821_v56  ;;  %v2850_v61 = vpack.c.bf16 %v2791_v6, %v2791_v6  ;;  %v2855_v26 = vpack.c.bf16 %v2847_v7, %v2847_v7 }
 0xb63   :  { %v2845_v22 = vsel %vm280_vm8, %v2844_v9, %v2827_v63  ;;  %v2842_v30 = vrot.slane %v2823_v55, 4  ;;  %v2840_v60 = vrot.slane %v2835_v18, 4 }
 0xb64   :  { %v3165_v48 = vsel %vm1281_vm11, %v2851_v19, 0  ;;  %v2789_v8 = vsel %vm280_vm8, %v2781_v50, %v2788_v33  ;;  %v2854_v27 = vpack.c.bf16 %v2845_v22, %v2845_v22  ;;  %v2786_v31 = vrot.slane %v2781_v50, 4 }
 0xb65   :  { %3174 = vmatpush.bf16.msra.mxu0 %v3165_v48  ;;  %v3146_v49 = vsel %vm1281_vm11, %v2850_v61, 0  ;;  %v3241_v35 = vsel %vm1281_vm11, %v2855_v26, 0  ;;  %v2849_v41 = vpack.c.bf16 %v2789_v8, %v2789_v8  ;;  %v2843_v45 = vsel %vm280_vm8, %v2835_v18, %v2842_v30 }
 0xb66   :  { %3155 = vmatpush.bf16.msrb.mxu3 %v3146_v49  ;;  %v3222_v10 = vsel %vm1281_vm11, %v2854_v27, 0  ;;  %v2787_v0 = vsel %vm280_vm8, %v2786_v31, %v2769_v36  ;;  %v2853_v40 = vpack.c.bf16 %v2843_v45, %v2843_v45  ;;  %v2841_v12 = vsel %vm280_vm8, %v2840_v60, %v2823_v55 }
 0xb67   :  { %v3127_v20 = vsel %vm1281_vm11, %v2849_v41, 0  ;;  %v2848_v24 = vpack.c.bf16 %v2787_v0, %v2787_v0  ;;  %v2852_v47 = vpack.c.bf16 %v2841_v12, %v2841_v12 }
 0xb68   :  { %3136 = vmatpush.bf16.msra.mxu2 %v3127_v20  ;;  %v3203_v44 = vsel %vm1281_vm11, %v2853_v40, 0 }
 0xb69   :  { %3250 = vmatpush.bf16.msrb.mxu0 %v3241_v35  ;;  %v3108_v39 = vsel %vm1281_vm11, %v2848_v24, 0  ;;  %v3184_v59 = vsel %vm1281_vm11, %v2852_v47, 0 }
 0xb6a   :  { %3231 = vmatpush.bf16.msra.mxu3 %v3222_v10  ;;  %3117 = vmatpush.bf16.msra.mxu1 %v3108_v39 }
 0xb6c   :  { %3212 = vmatpush.bf16.msrb.mxu2 %v3203_v44 }
 0xb6e   :  { %3193 = vmatpush.bf16.msrb.mxu1 %v3184_v59 }
 0xb9a   :  { %v3058_v46 = vpop.xlane.xlu1 %3057 }
 0xb9b   :  { %4538 = vrcp.f32 %v3058_v46 }
 0xb9f   :  { %v3064_v21 = vpop.xlane.xlu0 %3063 }
 0xba0   :  { %4540 = vrcp.f32 %v3064_v21 }
 0xba1   :  { %v4539_v15 = vpop.eup %4538  ;;  %v3061_v58 = vpop.xlane.xlu2 %3060 }
 0xba2   :  { %v3088_v37 = vmul.f32 %v4539_v15, %v5860_v23  ;;  %4542 = vrcp.f32 %v3061_v58 }
 0xba4   :  { %v3096_v38 = vpack.c.bf16 %v3088_v37, %v3088_v37 }
 0xba6   :  { %4175 = vmatmul.msk.bf16.vlgmr.msra.gmra.mxu1 %vm1181_vm10, %v3096_v38  ;;  %v4541_v1 = vpop.eup %4540 }
 0xba7   :  { %v3090_v54 = vmul.f32 %v4541_v1, %v5864_v43  ;;  %v3067_v63 = vpop.xlane.xlu0 %3066 }
 0xba8   :  { %v4543_v62 = vpop.eup %4542  ;;  %4544 = vrcp.f32 %v3067_v63 }
 0xba9   :  { %v3089_v52 = vmul.f32 %v4543_v62, %v5868_v34  ;;  %v3098_v51 = vpack.c.bf16 %v3090_v54, %v3090_v54 }
 0xbaa   :  { %v3070_v36 = vpop.xlane.xlu1 %3069 }
 0xbab   :  { %v3097_v29 = vpack.c.bf16 %v3089_v52, %v3089_v52  ;;  %4546 = vrcp.f32 %v3070_v36  ;;  %4177 = vmatmul.msk.bf16.vlgmr.msrb.gmra.mxu3 %vm1181_vm10, %v3098_v51 }
 0xbad   :  { %4176 = vmatmul.msk.bf16.vlgmr.msra.gmra.mxu2 %vm1181_vm10, %v3097_v29 }
 0xbae   :  { %v4545_v23 = vpop.eup %4544 }
 0xbaf   :  { %v3091_v3 = vmul.f32 %v4545_v23, %v5872_v57 }
 0xbb1   :  { %v4547_v28 = vpop.eup %4546  ;;  %v3099_v53 = vpack.c.bf16 %v3091_v3, %v3091_v3  ;;  %v3076_v9 = vpop.xlane.xlu2 %3075 }
 0xbb2   :  { %v3092_v43 = vmul.f32 %v4547_v28, %v5877_v17  ;;  %4548 = vrcp.f32 %v3076_v9  ;;  %v3073_v55 = vpop.xlane.xlu0 %3072 }
 0xbb3   :  { %4550 = vrcp.f32 %v3073_v55  ;;  %4178 = vmatmul.msk.bf16.vlgmr.msra.gmra.mxu0 %vm1181_vm10, %v3099_v53 }
 0xbb4   :  { %v3100_v34 = vpack.c.bf16 %v3092_v43, %v3092_v43 }
 0xbb6   :  { %4179 = vmatmul.msk.bf16.vlgmr.msrb.gmra.mxu1 %vm1181_vm10, %v3100_v34 }
 0xbb8   :  { %v4549_v2 = vpop.eup %4548 }
 0xbb9   :  { %v4551_v14 = vpop.eup %4550  ;;  %v3094_v33 = vmul.f32 %v4549_v2, %v5881_v25  ;;  %v3079_v4 = vpop.xlane.xlu2 %3078 }
 0xbba   :  { %v3093_v57 = vmul.f32 %v4551_v14, %v5883_v5  ;;  %4552 = vrcp.f32 %v3079_v4 }
 0xbbb   :  { %v3102_v19 = vpack.c.bf16 %v3094_v33, %v3094_v33 }
 0xbbc   :  { %v3101_v6 = vpack.c.bf16 %v3093_v57, %v3093_v57 }
 0xbbd   :  { %4181 = vmatmul.msk.bf16.vlgmr.msra.gmra.mxu3 %vm1181_vm10, %v3102_v19 }
 0xbbe   :  { %4180 = vmatmul.msk.bf16.vlgmr.msrb.gmra.mxu2 %vm1181_vm10, %v3101_v6 }
 0xbc0   :  { %v4553_v17 = vpop.eup %4552 }
 0xbc1   :  { %v3095_v7 = vmul.f32 %v4553_v17, %v5890_v16 }
 0xbc3   :  { %v3103_v50 = vpack.c.bf16 %v3095_v7, %v3095_v7 }
 0xbc5   :  { %4182 = vmatmul.msk.bf16.vlgmr.msrb.gmra.mxu0 %vm1181_vm10, %v3103_v50 }
 0xc23   :  { %v3119_v61 = vpop.f32.mrf.mxu1 }
 0xc24   :  { %v3258_v22 = vrot.slane %v3119_v61, 4 }
 0xc2b   :  { %v3121_v26 = vpop.f32.mrf.mxu1 }
 0xc2e   :  { %v3157_v25 = vpop.f32.mrf.mxu3 }
 0xc2f   :  { %v3256_v18 = vrot.slane %v3157_v25, 4  ;;  %v3259_v5 = vsel %vm280_vm8, %v3157_v25, %v3258_v22 }
 0xc30   :  { %v3138_v48 = vpop.f32.mrf.mxu2  ;;  %v3267_v8 = vperm.slane %v3259_v5, %v4813_v42  ;;  %v3176_v27 = vpop.f32.mrf.mxu0 }
 0xc31   :  { %v3270_v31 = vrot.slane %v3138_v48, 4  ;;  %v3257_v49 = vsel %vm280_vm8, %v3256_v18, %v3119_v61  ;;  %v3268_v35 = vrot.slane %v3176_v27, 4 }
 0xc32   :  { %v3263_v16 = vperm.slane %v3257_v49, %v4813_v42  ;;  %v3294_v41 = vrot.slane %v3267_v8, 4 }
 0xc33   :  { %v3269_v30 = vsel %vm280_vm8, %v3268_v35, %v3138_v48  ;;  %v3271_v10 = vsel %vm280_vm8, %v3176_v27, %v3270_v31  ;;  %v3195_v0 = vpop.f32.mrf.mxu1 }
 0xc34   :  { %v3282_v60 = vrot.slane %v3263_v16, 4  ;;  %v3275_v20 = vperm.slane %v3269_v30, %v4813_v42  ;;  %v3279_v24 = vperm.slane %v3271_v10, %v4813_v42  ;;  %v3314_v33 = vrot.slane %v3195_v0, 4 }
 0xc36   :  { %v3280_v45 = vrot.slane %v3275_v20, 4  ;;  %v3283_v40 = vsel %vm280_vm8, %v3275_v20, %v3282_v60  ;;  %v3292_v12 = vrot.slane %v3279_v24, 4  ;;  %v3295_v39 = vsel %vm280_vm8, %v3279_v24, %v3294_v41  ;;  %v3159_v47 = vpop.f32.mrf.mxu3 }
 0xc37   :  { %v3291_v44 = vperm.slane %v3283_v40, %v4821_v56  ;;  %v3303_v59 = vperm.slane %v3295_v39, %v4821_v56 }
 0xc38   :  { %v3281_v46 = vsel %vm280_vm8, %v3280_v45, %v3263_v16  ;;  %v3293_v21 = vsel %vm280_vm8, %v3292_v12, %v3267_v8  ;;  %v3140_v15 = vpop.f32.mrf.mxu2  ;;  %v3178_v37 = vpop.f32.mrf.mxu0 }
 0xc39   :  { %v3287_v58 = vperm.slane %v3281_v46, %v4821_v56  ;;  %v3299_v38 = vperm.slane %v3293_v21, %v4821_v56  ;;  %v3306_v1 = vrot.slane %v3291_v44, 4  ;;  %v3310_v54 = vrot.slane %v3303_v59, 4 }
 0xc3b   :  { %v3304_v63 = vrot.slane %v3287_v58, 4  ;;  %v3307_v62 = vsel %vm280_vm8, 0.0, %v3306_v1  ;;  %v3308_v52 = vrot.slane %v3299_v38, 4  ;;  %v3311_v51 = vsel %vm280_vm8, 0.0, %v3310_v54  ;;  %v3197_v36 = vpop.f32.mrf.mxu1 }
 0xc3c   :  { %v3368_v29 = vsel %vm280_vm8, %v3306_v1, %v3287_v58  ;;  %v3373_v23 = vrot.slane %v3307_v62, 4  ;;  %v3379_v3 = vsel %vm280_vm8, %v3310_v54, %v3299_v38  ;;  %v3384_v28 = vrot.slane %v3311_v51, 4 }
 0xc3d   :  { %v3309_v53 = vsel %vm280_vm8, 0.0, %v3308_v52  ;;  %v3305_v9 = vsel %vm280_vm8, 0.0, %v3304_v63  ;;  %v3383_v43 = vperm.slane %v3379_v3, %v4813_v42  ;;  %v3372_v34 = vperm.slane %v3368_v29, %v4813_v42 }
 0xc3e   :  { %v3385_v55 = vsel %vm280_vm8, %v3384_v28, %v3309_v53  ;;  %v3374_v2 = vsel %vm280_vm8, %v3373_v23, %v3305_v9 }
 0xc3f   :  { %v3389_v14 = vperm.slane %v3385_v55, %v4813_v42  ;;  %v3378_v4 = vperm.slane %v3374_v2, %v4813_v42  ;;  %v3404_v7 = vrot.slane %v3383_v43, 4  ;;  %v3392_v22 = vrot.slane %v3372_v34, 4 }
 0xc40   :  { %v3233_v57 = vpop.f32.mrf.mxu3 }
 0xc41   :  { %v3214_v19 = vpop.f32.mrf.mxu2  ;;  %v3312_v6 = vrot.slane %v3233_v57, 4  ;;  %v3315_v17 = vsel %vm280_vm8, %v3233_v57, %v3314_v33  ;;  %v3390_v5 = vrot.slane %v3378_v4, 4  ;;  %v3402_v48 = vrot.slane %v3389_v14, 4 }
 0xc42   :  { %v3326_v50 = vrot.slane %v3214_v19, 4  ;;  %v3323_v61 = vperm.slane %v3315_v17, %v4813_v42  ;;  %v3252_v26 = vpop.f32.mrf.mxu0  ;;  %v3393_v10 = vsel %vm280_vm8, %v3378_v4, %v3392_v22 }
 0xc43   :  { %v3313_v25 = vsel %vm280_vm8, %v3312_v6, %v3195_v0  ;;  %v3324_v18 = vrot.slane %v3252_v26, 4  ;;  %v3391_v16 = vsel %vm280_vm8, %v3390_v5, %v3372_v34  ;;  %v3405_v0 = vsel %vm280_vm8, %v3389_v14, %v3404_v7 }
 0xc44   :  { %v3319_v8 = vperm.slane %v3313_v25, %v4813_v42  ;;  %v3350_v27 = vrot.slane %v3323_v61, 4  ;;  %v3327_v31 = vsel %vm280_vm8, %v3252_v26, %v3326_v50  ;;  %v6042_v24 = vperm.slane %v3391_v16, %v4821_v56 }
 0xc45   :  { %v3325_v49 = vsel %vm280_vm8, %v3324_v18, %v3214_v19  ;;  %v3335_v35 = vperm.slane %v3327_v31, %v4813_v42  ;;  %v3403_v45 = vsel %vm280_vm8, %v3402_v48, %v3383_v43  ;;  %v3401_v62 = vperm.slane %v3393_v10, %v4821_v56 }
 0xc46   :  { %v3338_v41 = vrot.slane %v3319_v8, 4  ;;  %v3331_v30 = vperm.slane %v3325_v49, %v4813_v42  ;;  %v3409_v44 = vperm.slane %v3403_v45, %v4821_v56  ;;  %v3413_v52 = vperm.slane %v3405_v0, %v4821_v56 }
 0xc47   :  { %v3348_v60 = vrot.slane %v3335_v35, 4  ;;  %v3351_v20 = vsel %vm280_vm8, %v3335_v35, %v3350_v27  ;;  %v3420_v50 = vrot.slane %v3401_v62, 4  ;;  %v3416_v48 = vrot.slane %v6042_v24, 4 }
 0xc48   :  { %v3336_v40 = vrot.slane %v3331_v30, 4  ;;  %v3339_v12 = vsel %vm280_vm8, %v3331_v30, %v3338_v41  ;;  %v3359_v39 = vperm.slane %v3351_v20, %v4821_v56  ;;  %v3235_v47 = vpop.f32.mrf.mxu3  ;;  %v3414_v1 = vrot.slane %v3409_v44, 4 }
 0xc49   :  { %v3347_v59 = vperm.slane %v3339_v12, %v4821_v56  ;;  %v3349_v46 = vsel %vm280_vm8, %v3348_v60, %v3323_v61  ;;  %v3216_v21 = vpop.f32.mrf.mxu2  ;;  %v3418_v7 = vrot.slane %v3413_v52, 4  ;;  %v3421_v41 = vsel %vm280_vm8, %v3413_v52, %v3420_v50  ;;  %v4347_v47 = vld [vmem:[%s6207_s2 + $0x170] sm:$0xf0] }
 0xc4a   :  { %v3337_v15 = vsel %vm280_vm8, %v3336_v40, %v3319_v8  ;;  %v3355_v37 = vperm.slane %v3349_v46, %v4821_v56  ;;  %v3366_v58 = vrot.slane %v3359_v39, 4  ;;  %v3254_v38 = vpop.f32.mrf.mxu0  ;;  %v6059_v23 = vsel %vm280_vm8, %v3414_v1, %v6042_v24  ;;  %v4205_v39 = vld [vmem:[%s6207_s2 + $0x15c] sm:$0xf]  ;;  %v4346_v46 = vld [vmem:[%s6207_s2 + $0x140] sm:$0xf0] }
 0xc4b   :  { %v3343_v54 = vperm.slane %v3337_v15, %v4821_v56  ;;  %v3362_v63 = vrot.slane %v3347_v59, 4  ;;  %v3419_v16 = vsel %vm280_vm8, %v3418_v7, %v3401_v62  ;;  %v3417_v45 = vsel %vm280_vm8, %v3409_v44, %v3416_v48  ;;  %v4201_v59 = vld [vmem:[%s6207_s2 + $0x12c] sm:$0xf]  ;;  %v4197_v15 = vld [vmem:[%s6207_s2 + $0xfc] sm:$0xf] }
 0xc4c   :  { %v3364_v51 = vrot.slane %v3355_v37, 4  ;;  %v3367_v36 = vsel %vm280_vm8, 0.0, %v3366_v58  ;;  %v3433_v29 = vsel %vm280_vm8, %v3366_v58, %v3355_v37  ;;  %v4206_v44 = vor.u32 %v4347_v47, %v4205_v39  ;;  %v4345_v37 = vld [vmem:[%s6207_s2 + $0x110] sm:$0xf0]  ;;  %v4193_v58 = vld [vmem:[%s6207_s2 + $0xcc] sm:$0xf] }
 0xc4d   :  { %v3360_v3 = vrot.slane %v3343_v54, 4  ;;  %v3363_v28 = vsel %vm280_vm8, 0.0, %v3362_v63  ;;  %v3422_v53 = vsel %vm280_vm8, %v3362_v63, %v3343_v54  ;;  %v3437_v9 = vperm.slane %v3433_v29, %v4813_v42  ;;  %v4344_v1 = vld [vmem:[%s6207_s2 + $0xe0] sm:$0xf0] }
 0xc4e   :  { %v3365_v43 = vsel %vm280_vm8, 0.0, %v3364_v51  ;;  %v3427_v55 = vrot.slane %v3363_v28, 4  ;;  %v3438_v34 = vrot.slane %v3367_v36, 4  ;;  %v3426_v2 = vperm.slane %v3422_v53, %v4813_v42  ;;  %3550 = vmatpush.bf16.msra.mxu1 %v4206_v44 }
 0xc4f   :  { %v3458_v14 = vrot.slane %v3437_v9, 4  ;;  %v3361_v33 = vsel %vm280_vm8, 0.0, %v3360_v3  ;;  %v4202_v21 = vor.u32 %v4346_v46, %v4201_v59  ;;  %v4198_v38 = vor.u32 %v4345_v37, %v4197_v15 }
 0xc50   :  { %v3439_v4 = vsel %vm280_vm8, %v3438_v34, %v3365_v43  ;;  %v3428_v57 = vsel %vm280_vm8, %v3427_v55, %v3361_v33  ;;  %v3446_v19 = vrot.slane %v3426_v2, 4  ;;  %v4194_v54 = vor.u32 %v4344_v1, %v4193_v58 }
 0xc51   :  { %v3443_v6 = vperm.slane %v3439_v4, %v4813_v42  ;;  %v3432_v17 = vperm.slane %v3428_v57, %v4813_v42  ;;  %v4462_v4 = vld [vmem:[#allocation2 + $0xd] ss:$0 sm:$0xff] }
 0xc52   :  { %3551 = vmatpush.bf16.msra.mxu1 %v4202_v21 }
 0xc53   :  { %v3447_v61 = vsel %vm280_vm8, %v3432_v17, %v3446_v19  ;;  %v3459_v26 = vsel %vm280_vm8, %v3443_v6, %v3458_v14  ;;  %v3444_v22 = vrot.slane %v3432_v17, 4  ;;  %v3456_v25 = vrot.slane %v3443_v6, 4 }
 0xc54   :  { %v3455_v18 = vperm.slane %v3447_v61, %v4821_v56  ;;  %v3467_v5 = vperm.slane %v3459_v26, %v4821_v56 }
 0xc55   :  { %v3445_v8 = vsel %vm280_vm8, %v3444_v22, %v3426_v2  ;;  %v3457_v27 = vsel %vm280_vm8, %v3456_v25, %v3437_v9 }
 0xc56   :  { %v3472_v31 = vrot.slane %v3467_v5, 4  ;;  %v3474_v42 = vrot.slane %v3455_v18, 4  ;;  %v3451_v49 = vperm.slane %v3445_v8, %v4821_v56  ;;  %v3463_v35 = vperm.slane %v3457_v27, %v4821_v56  ;;  %3552 = vmatpush.bf16.msra.mxu1 %v4198_v38 }
 0xc58   :  { %v3473_v30 = vsel %vm280_vm8, %v3472_v31, %v3455_v18  ;;  %v3475_v10 = vsel %vm280_vm8, %v3467_v5, %v3474_v42  ;;  %v3468_v0 = vrot.slane %v3463_v35, 4  ;;  %v3470_v60 = vrot.slane %v3451_v49, 4  ;;  %v4351_v42 = vld [vmem:[%s6207_s2 + $0x174] sm:$0xf0] }
 0xc59   :  { %v4443_v20 = vpack.i.bf16 %v3473_v30, %v3419_v16  ;;  %v4448_v24 = vpack.i.bf16 %v3475_v10, %v3421_v41  ;;  %v4226_v41 = vld [vmem:[%s6207_s2 + $0x130] sm:$0xf]  ;;  %v4350_v30 = vld [vmem:[%s6207_s2 + $0x144] sm:$0xf0] }
 0xc5a   :  { %v3471_v40 = vsel %vm280_vm8, %v3463_v35, %v3470_v60  ;;  %v3469_v12 = vsel %vm280_vm8, %v3468_v0, %v3451_v49  ;;  %3553 = vmatpush.bf16.msra.mxu1 %v4194_v54  ;;  %v4227_v0 = vor.u32 %v4350_v30, %v4226_v41  ;;  %v4222_v60 = vld [vmem:[%s6207_s2 + $0x100] sm:$0xf] }
 0xc5b   :  { %4444 = vrot.lane.b32.xlu1 %v4443_v20, %s4633_s13  ;;  %4449 = vrot.lane.b32.xlu2 %v4448_v24, %s4632_s1  ;;  %v4438_v56 = vpack.i.bf16 %v3471_v40, %v3417_v45  ;;  %v4349_v20 = vld [vmem:[%s6207_s2 + $0x114] sm:$0xf0]  ;;  %v4218_v45 = vld [vmem:[%s6207_s2 + $0xd0] sm:$0xf] }
 0xc5c   :  { %v4223_v24 = vor.u32 %v4349_v20, %v4222_v60  ;;  %v4348_v40 = vld [vmem:[%s6207_s2 + $0xe4] sm:$0xf0] }
 0xc5d   :  { %4439 = vrot.lane.b32.xlu0 %v4438_v56, %s4634_s14  ;;  %v4219_v39 = vor.u32 %v4348_v40, %v4218_v45 }
 0xcb5   :  { %v4450_v62 = vpop.permute.xlu2 %4449 }
 0xcb6   :  { %v4452_v28 = vunpack.i.h.bf16 %v4450_v62  ;;  %v4451_v53 = vunpack.i.l.bf16 %v4450_v62 }
 0xccd   :  { %v4445_v63 = vpop.permute.xlu1 %4444 }
 0xcce   :  { %v4447_v29 = vunpack.i.h.bf16 %v4445_v63  ;;  %v4446_v3 = vunpack.i.l.bf16 %v4445_v63 }
 0xccf   :  { %v4440_v52 = vpop.permute.xlu0 %4439 }
 0xcd0   :  { %v4442_v51 = vunpack.i.h.bf16 %v4440_v52  ;;  %v4441_v36 = vunpack.i.l.bf16 %v4440_v52  ;;  %v4463_v52 = vld [vmem:[#allocation2 + $0x10] ss:$0 sm:$0xff] }
 0xcd2   :  { %v3500_v9 = vsel %vm1028_vm9, %v6059_v23, %v4441_v36  ;;  %v3501_v43 = vsel %vm1028_vm9, %v3469_v12, %v4442_v51 }
 0xcd3   :  { %v3502_v55 = vsel %vm1677_vm12, %v3500_v9, %v4446_v3  ;;  %v3503_v34 = vsel %vm1677_vm12, %v3501_v43, %v4447_v29  ;;  %v4464_v3 = vld [vmem:[#allocation2 + $0x11] ss:$0 sm:$0xff] }
 0xcd4   :  { %v3504_v2 = vsel %vm1680_vm13, %v3502_v55, %v4451_v53  ;;  %v3505_v14 = vsel %vm1680_vm13, %v3503_v34, %v4452_v28 }
 0xcd5   :  { %v3506_v33 = vpack.c.bf16 %v3505_v14, %v3504_v2  ;;  %v4255_v2 = vld [vmem:[%s6207_s2 + $0x164] sm:$0xf]  ;;  %v4355_v14 = vld [vmem:[%s6207_s2 + $0x178] sm:$0xf0] }
 0xcd7   :  { %4207 = vmatmul.msk.bf16.vlgmr.msra.gmra.mxu1 %vm62_vm0, %v3506_v33  ;;  %v4256_v33 = vor.u32 %v4355_v14, %v4255_v2  ;;  %v4267_v2 = vld [vmem:[#allocation4 + $0x30] sm:$0xf]  ;;  %v4358_v14 = vld [vmem:[#allocation4 + $0x38] sm:$0xf0] }
 0xcd9   :  { %3731 = vmatpush.bf16.xpose.msrb.mxu3 %v4256_v33  ;;  %v4263_v33 = vld [vmem:[#allocation4 + $0x18] sm:$0xf] }
 0xd54   :  { %v3555_v57 = vpop.f32.mrf.mxu1 }
 0xd55   :  { %v3556_v19 = vadd.f32 %v4462_v4, %v3555_v57  ;;  %v4354_v57 = vld [vmem:[%s6207_s2 + $0x148] sm:$0xf0] }
 0xd57   :  { %v3560_v6 = vadd.f32 %v3556_v19, %v5526_v32 }
 0xd59   :  { %v3564_v23 = vsel %vm62_vm0, %v3560_v6, 0.0 }
 0xd5a   :  { %3565 = vadd.xlane.f32.xlu0 %v3564_v23  ;;  %v4353_v23 = vld [vmem:[%s6207_s2 + $0x118] sm:$0xf0] }
 0xd5c   :  { %v3557_v17 = vpop.f32.mrf.mxu1 }
 0xd5d   :  { %v3558_v7 = vadd.f32 %v4462_v4, %v3557_v17  ;;  %v4251_v4 = vld [vmem:[%s6207_s2 + $0x134] sm:$0xf] }
 0xd5e   :  { %v4252_v19 = vor.u32 %v4354_v57, %v4251_v4  ;;  %v4268_v4 = vor.u32 %v4358_v14, %v4267_v2  ;;  %v4357_v57 = vld [vmem:[#allocation4 + $0x20] sm:$0xf0]  ;;  %v4365_v2 = vld [vmem:[#allocation4 + $0x28] sm:$0xf0]  ;;  %v4293_v14 = vld [vmem:[#allocation4 + $0x8] sm:$0xf] }
 0xd5f   :  { %v3561_v50 = vadd.f32 %v3558_v7, %v5528_v13  ;;  %v4230_v13 = vld [vmem:[%s6207_s2 + $0x160] sm:$0xf]  ;;  %v4465_v7 = vld [vmem:[#allocation2 + $0xe] ss:$0 sm:$0xff] }
 0xd60   :  { %v4231_v49 = vor.u32 %v4351_v42, %v4230_v13  ;;  %3732 = vmatpush.bf16.xpose.msrb.mxu3 %v4252_v19 }
 0xd61   :  { %v3567_v61 = vsel %vm62_vm0, %v3561_v50, 0.0 }
 0xd62   :  { %3568 = vadd.xlane.f32.xlu1 %v3567_v61  ;;  %3662 = vmatpush.bf16.msra.mxu2 %v4231_v49  ;;  %v4352_v61 = vld [vmem:[%s6207_s2 + $0xe8] sm:$0xf0] }
 0xd66   :  { %3663 = vmatpush.bf16.msra.mxu2 %v4227_v0 }
 0xd6a   :  { %3664 = vmatpush.bf16.msra.mxu2 %v4223_v24 }
 0xd6e   :  { %3665 = vmatpush.bf16.msra.mxu2 %v4219_v39 }
 0xdcd   :  { %v3566_v26 = vpop.xlane.xlu0 %3565 }
 0xdce   :  { %v3570_v22 = vmul.f32 %v3566_v26, %v4682_v11 }
 0xdd0   :  { %v3572_v25 = vsub.f32 %v3560_v6, %v3570_v22  ;;  %v4247_v6 = vld [vmem:[%s6207_s2 + $0x104] sm:$0xf] }
 0xdd1   :  { %v4248_v17 = vor.u32 %v4353_v23, %v4247_v6 }
 0xdd2   :  { %v3574_v18 = vmul.f32 %v3572_v25, %v3572_v25 }
 0xdd3   :  { %3733 = vmatpush.bf16.xpose.msrb.mxu3 %v4248_v17  ;;  %v4264_v17 = vor.u32 %v4357_v57, %v4263_v33 }
 0xdd4   :  { %v3576_v5 = vsel %vm62_vm0, %v3574_v18, 0.0 }
 0xdd5   :  { %v3569_v48 = vpop.xlane.xlu1 %3568  ;;  %3577 = vadd.xlane.f32.xlu2 %v3576_v5 }
 0xdd6   :  { %v3571_v32 = vmul.f32 %v3569_v48, %v4682_v11 }
 0xdd8   :  { %v3573_v8 = vsub.f32 %v3561_v50, %v3571_v32  ;;  %v4243_v50 = vld [vmem:[%s6207_s2 + $0xd4] sm:$0xf] }
 0xdd9   :  { %v4244_v22 = vor.u32 %v4352_v61, %v4243_v50  ;;  %v4356_v50 = vld [vmem:[#allocation4 + $0x8] sm:$0xf0] }
 0xdda   :  { %v3575_v27 = vmul.f32 %v3573_v8, %v3573_v8 }
 0xddb   :  { %3734 = vmatpush.bf16.xpose.msrb.mxu3 %v4244_v22  ;;  %v4363_v22 = vld [vmem:[#allocation4 + $0x54] sm:$0xf0] }
 0xddc   :  { %v3579_v31 = vsel %vm62_vm0, %v3575_v27, 0.0 }
 0xddd   :  { %3580 = vadd.xlane.f32.xlu0 %v3579_v31 }
 0xe48   :  { %v3578_v35 = vpop.xlane.xlu2 %3577 }
 0xe49   :  { %v3582_v16 = vmul.f32 %v3578_v35, %v4682_v11 }
 0xe4b   :  { %v3584_v10 = vadd.f32 1e-05, %v3582_v16 }
 0xe4d   :  { %4554 = vrsqrt.f32 %v3584_v10  ;;  %vm3592_vm9 = vweird.f32 %v3584_v10 }
 0xe50   :  { %v3581_v12 = vpop.xlane.xlu0 %3580 }
 0xe51   :  { %v3583_v56 = vmul.f32 %v3581_v12, %v4682_v11  ;;  %v4466_v12 = vld [vmem:[#allocation2 + $0xf] ss:$0 sm:$0xff] }
 0xe53   :  { %v4555_v47 = vpop.eup %4554  ;;  %v3585_v44 = vadd.f32 1e-05, %v3583_v56 }
 0xe54   :  { %v3587_v59 = vmul.f32 %v4555_v47, %v3584_v10  ;;  %vm3593_vm8 = vweird.f32 %v4555_v47 }
 0xe55   :  { %4556 = vrsqrt.f32 %v3585_v44  ;;  %vm3594_vm10 = vmor %vm3592_vm9, %vm3593_vm8  ;;  %vm3602_vm12 = vweird.f32 %v3585_v44 }
 0xe56   :  { %v3588_v46 = vmul.f32 %v4555_v47, %v3587_v59 }
 0xe58   :  { %v3589_v21 = vmul.f32 0.5, %v3588_v46 }
 0xe5a   :  { %v3590_v15 = vsub.f32 1.5, %v3589_v21 }
 0xe5b   :  { %v4557_v37 = vpop.eup %4556 }
 0xe5c   :  { %v3591_v58 = vmul.f32 %v4555_v47, %v3590_v15  ;;  %v3597_v38 = vmul.f32 %v4557_v37, %v3585_v44  ;;  %vm3603_vm11 = vweird.f32 %v4557_v37 }
 0xe5d   :  { %vm3604_vm13 = vmor %vm3602_vm12, %vm3603_vm11 }
 0xe5e   :  { %v3598_v1 = vmul.f32 %v4557_v37, %v3597_v38  ;;  %v3595_v54 = vsel %vm3594_vm10, %v4555_v47, %v3591_v58 }
 0xe5f   :  { %v3606_v51 = vmul.f32 %v3595_v54, %v3572_v25 }
 0xe60   :  { %v3599_v63 = vmul.f32 0.5, %v3598_v1 }
 0xe61   :  { %v3611_v28 = vmul.f32 %v4463_v52, %v3606_v51 }
 0xe62   :  { %v3600_v62 = vsub.f32 1.5, %v3599_v63 }
 0xe63   :  { %v3616_v43 = vadd.f32 %v4464_v3, %v3611_v28 }
 0xe64   :  { %v3601_v36 = vmul.f32 %v4557_v37, %v3600_v62 }
 0xe66   :  { %v3605_v29 = vsel %vm3604_vm13, %v4557_v37, %v3601_v36 }
 0xe67   :  { %v3607_v53 = vmul.f32 %v3605_v29, %v3573_v8 }
 0xe69   :  { %v3612_v9 = vmul.f32 %v4463_v52, %v3607_v53  ;;  %v4271_v53 = vld [vmem:[#allocation4 + $0x48] sm:$0xf] }
 0xe6b   :  { %v3617_v55 = vadd.f32 %v4464_v3, %v3612_v9  ;;  %v4359_v9 = vld [vmem:[#allocation4 + $0x50] sm:$0xf0] }
 0xe6d   :  { %v3618_v34 = vpack.c.bf16 %v3617_v55, %v3616_v43 }
 0xe6f   :  { %4232 = vmatmul.msk.bf16.vlgmr.msra.gmra.mxu2 %vm62_vm0, %v3618_v34 }
 0xef2   :  { %v3667_v26 = vpop.f32.mrf.mxu2 }
 0xef3   :  { %v3668_v25 = vadd.f32 %v4465_v7, %v3667_v26  ;;  %v4288_v26 = vld [vmem:[#allocation4 + $0x4c] sm:$0xf] }
 0xef5   :  { %v3674_v18 = vmul.f32 0.044715, %v3668_v25  ;;  %v3672_v0 = vmul.f32 0.5, %v3668_v25 }
 0xef7   :  { %v3676_v5 = vmul.f32 %v3674_v18, %v3668_v25 }
 0xef9   :  { %v3678_v48 = vmul.f32 %v3676_v5, %v3668_v25 }
 0xefa   :  { %v3669_v32 = vpop.f32.mrf.mxu2 }
 0xefb   :  { %v3680_v8 = vadd.f32 %v3678_v48, %v3668_v25  ;;  %v3670_v27 = vadd.f32 %v4465_v7, %v3669_v32  ;;  %v4259_v7 = vld [vmem:[#allocation4] sm:$0xf]  ;;  %v4289_v25 = vor.u32 %v4363_v22, %v4288_v26 }
 0xefd   :  { %v3675_v31 = vmul.f32 0.044715, %v3670_v27  ;;  %v3682_v13 = vmul.f32 0.7978846, %v3680_v8  ;;  %v3673_v60 = vmul.f32 0.5, %v3670_v27  ;;  %3906 = vmatpush.bf16.msrb.mxu1 %v4289_v25 }
 0xeff   :  { %v3677_v42 = vmul.f32 %v3675_v31, %v3670_v27  ;;  %4558 = vtanh.f32 %v3682_v13 }
 0xf01   :  { %v3679_v49 = vmul.f32 %v3677_v42, %v3670_v27  ;;  %v4467_v42 = vld [vmem:[#allocation2 + $0x12] ss:$0 sm:$0xff] }
 0xf03   :  { %v3681_v35 = vadd.f32 %v3679_v49, %v3670_v27 }
 0xf05   :  { %v3683_v16 = vmul.f32 0.7978846, %v3681_v35  ;;  %v4559_v41 = vpop.eup %4558 }
 0xf06   :  { %v3686_v30 = vadd.f32 1.0, %v4559_v41  ;;  %v4468_v41 = vld [vmem:[#allocation2 + $0x13] ss:$0 sm:$0xff] }
 0xf07   :  { %4560 = vtanh.f32 %v3683_v16 }
 0xf08   :  { %v3688_v24 = vmul.f32 %v3686_v30, %v3672_v0 }
 0xf0d   :  { %v4561_v10 = vpop.eup %4560 }
 0xf0e   :  { %v3687_v20 = vadd.f32 1.0, %v4561_v10 }
 0xf10   :  { %v3689_v45 = vmul.f32 %v3687_v20, %v3673_v60 }
 0xf12   :  { %v3690_v40 = vpack.c.bf16 %v3689_v45, %v3688_v24 }
 0xf14   :  { %3735 = vmatmul.bf16.vlgmr.msrb.gmra.mxu3 %v3690_v40 }
 0xf97   :  { %v3736_v56 = vpop.f32.mrf.mxu3 }
 0xf98   :  { %v3737_v39 = vadd.f32 %v4466_v12, %v3736_v56 }
 0xf9a   :  { %v3741_v47 = vadd.f32 %v3737_v39, %v3616_v43  ;;  %v4272_v43 = vor.u32 %v4359_v9, %v4271_v53 }
 0xf9c   :  { %v3745_v44 = vsel %vm62_vm0, %v3741_v47, 0.0  ;;  %3852 = vmatpush.bf16.msra.mxu0 %v4272_v43 }
 0xf9d   :  { %3746 = vadd.xlane.f32.xlu0 %v3745_v44 }
 0xf9f   :  { %v3738_v59 = vpop.f32.mrf.mxu3 }
 0xfa0   :  { %v3739_v46 = vadd.f32 %v4466_v12, %v3738_v59  ;;  %3853 = vmatpush.bf16.msra.mxu0 %v4268_v4  ;;  %v4284_v59 = vld [vmem:[#allocation4 + $0x34] sm:$0xf] }
 0xfa1   :  { %v4364_v4 = vld [vmem:[#allocation4 + $0x10] sm:$0xf0] }
 0xfa2   :  { %v3742_v21 = vadd.f32 %v3739_v46, %v3617_v55  ;;  %v4362_v46 = vld [vmem:[#allocation4 + $0x3c] sm:$0xf0]  ;;  %v4294_v57 = vor.u32 %v4364_v4, %v4293_v14 }
 0xfa4   :  { %v3748_v15 = vsel %vm62_vm0, %v3742_v21, 0.0  ;;  %3854 = vmatpush.bf16.msra.mxu0 %v4264_v17 }
 0xfa5   :  { %3749 = vadd.xlane.f32.xlu1 %v3748_v15  ;;  %v4280_v15 = vld [vmem:[#allocation4 + $0x1c] sm:$0xf] }
0x1010   :  { %v3747_v37 = vpop.xlane.xlu0 %3746 }
0x1011   :  { %v3751_v58 = vmul.f32 %v3747_v37, %v4682_v11  ;;  %v4361_v37 = vld [vmem:[#allocation4 + $0x24] sm:$0xf0] }
0x1013   :  { %v3753_v38 = vsub.f32 %v3741_v47, %v3751_v58  ;;  %v4281_v58 = vor.u32 %v4361_v37, %v4280_v15 }
0x1015   :  { %v3755_v1 = vmul.f32 %v3753_v38, %v3753_v38 }
0x1017   :  { %v3757_v54 = vsel %vm62_vm0, %v3755_v1, 0.0  ;;  %v4360_v1 = vld [vmem:[#allocation4 + $0xc] sm:$0xf0] }
0x1018   :  { %v3750_v63 = vpop.xlane.xlu1 %3749  ;;  %3758 = vadd.xlane.f32.xlu1 %v3757_v54  ;;  %v4305_v54 = vld [vmem:[#allocation4 + $0x50] sm:$0xf] }
0x1019   :  { %v3752_v62 = vmul.f32 %v3750_v63, %v4682_v11  ;;  %v4367_v63 = vld [vmem:[#allocation4 + $0x58] sm:$0xf0] }
0x101b   :  { %v3754_v52 = vsub.f32 %v3742_v21, %v3752_v62  ;;  %v4285_v21 = vor.u32 %v4362_v46, %v4284_v59  ;;  %v4301_v62 = vld [vmem:[#allocation4 + $0x38] sm:$0xf] }
0x101d   :  { %v3756_v51 = vmul.f32 %v3754_v52, %v3754_v52  ;;  %3907 = vmatpush.bf16.msrb.mxu1 %v4285_v21 }
0x101f   :  { %v3760_v36 = vsel %vm62_vm0, %v3756_v51, 0.0  ;;  %v4366_v51 = vld [vmem:[#allocation4 + $0x40] sm:$0xf0] }
0x1020   :  { %3761 = vadd.xlane.f32.xlu2 %v3760_v36 }
0x1021   :  { %3908 = vmatpush.bf16.msrb.mxu1 %v4281_v58 }
0x108b   :  { %v3759_v29 = vpop.xlane.xlu1 %3758 }
0x108c   :  { %v3763_v3 = vmul.f32 %v3759_v29, %v4682_v11  ;;  %v4302_v29 = vor.u32 %v4366_v51, %v4301_v62 }
0x108e   :  { %v3765_v28 = vadd.f32 1e-05, %v3763_v3  ;;  %v4469_v3 = vld [vmem:[%s6210_s5 + $0x2] ss:$0 sm:$0xff] }
0x1090   :  { %4562 = vrsqrt.f32 %v3765_v28  ;;  %vm3773_vm3 = vweird.f32 %v3765_v28 }
0x1093   :  { %v3762_v55 = vpop.xlane.xlu2 %3761 }
0x1094   :  { %v3764_v34 = vmul.f32 %v3762_v55, %v4682_v11  ;;  %v4260_v11 = vor.u32 %v4356_v50, %v4259_v7 }
0x1096   :  { %v4563_v19 = vpop.eup %4562  ;;  %v3766_v6 = vadd.f32 1e-05, %v3764_v34  ;;  %3855 = vmatpush.bf16.msra.mxu0 %v4260_v11  ;;  %v4297_v34 = vld [vmem:[#allocation4 + $0x20] sm:$0xf] }
0x1097   :  { %v3768_v23 = vmul.f32 %v4563_v19, %v3765_v28  ;;  %vm3774_vm2 = vweird.f32 %v4563_v19  ;;  %v4298_v33 = vor.u32 %v4365_v2, %v4297_v34 }
0x1098   :  { %4564 = vrsqrt.f32 %v3766_v6  ;;  %vm3775_vm4 = vmor %vm3773_vm3, %vm3774_vm2  ;;  %vm3783_vm6 = vweird.f32 %v3766_v6 }
0x1099   :  { %v3769_v61 = vmul.f32 %v4563_v19, %v3768_v23 }
0x109b   :  { %v3770_v18 = vmul.f32 0.5, %v3769_v61  ;;  %v4471_v61 = vld [vmem:[%s6210_s5 + $0x4] ss:$0 sm:$0xff] }
0x109d   :  { %v3771_v5 = vsub.f32 1.5, %v3770_v18 }
0x109e   :  { %v4565_v48 = vpop.eup %4564 }
0x109f   :  { %v3772_v32 = vmul.f32 %v4563_v19, %v3771_v5  ;;  %v3778_v8 = vmul.f32 %v4565_v48, %v3766_v6  ;;  %vm3784_vm5 = vweird.f32 %v4565_v48 }
0x10a0   :  { %vm3785_vm7 = vmor %vm3783_vm6, %vm3784_vm5 }
0x10a1   :  { %v3776_v27 = vsel %vm3775_vm4, %v4563_v19, %v3772_v32  ;;  %v3779_v31 = vmul.f32 %v4565_v48, %v3778_v8  ;;  %v4470_v19 = vld [vmem:[%s6210_s5 + $0x3] ss:$0 sm:$0xff] }
0x10a2   :  { %v3787_v49 = vmul.f32 %v3776_v27, %v3753_v38  ;;  %v4276_v38 = vld [vmem:[#allocation4 + $0x4] sm:$0xf] }
0x10a3   :  { %v3780_v13 = vmul.f32 0.5, %v3779_v31  ;;  %v4277_v36 = vor.u32 %v4360_v1, %v4276_v38 }
0x10a4   :  { %v3792_v30 = vmul.f32 %v4467_v42, %v3787_v49 }
0x10a5   :  { %v3781_v35 = vsub.f32 1.5, %v3780_v13  ;;  %3909 = vmatpush.bf16.msrb.mxu1 %v4277_v36 }
0x10a6   :  { %v3797_v60 = vadd.f32 %v4468_v41, %v3792_v30 }
0x10a7   :  { %v3782_v16 = vmul.f32 %v4565_v48, %v3781_v35 }
0x10a8   :  { %v3799_v45 = vpack.c.bf16 %v3797_v60, %v3797_v60 }
0x10a9   :  { %v3786_v10 = vsel %vm3785_vm7, %v4565_v48, %v3782_v16 }
0x10aa   :  { %v3788_v0 = vmul.f32 %v3786_v10, %v3754_v52  ;;  %v3815_v56 = vunpack.c.l.b16 %v3799_v45  ;;  %v4306_v52 = vor.u32 %v4367_v63, %v4305_v54 }
0x10ac   :  { %v3793_v20 = vmul.f32 %v4467_v42, %v3788_v0  ;;  %3960 = vmatpush.bf16.msrb.mxu2 %v4306_v52 }
0x10ae   :  { %v3798_v24 = vadd.f32 %v4468_v41, %v3793_v20 }
0x10b0   :  { %v3800_v40 = vpack.c.bf16 %v3798_v24, %v3798_v24  ;;  %3961 = vmatpush.bf16.msrb.mxu2 %v4302_v29 }
0x10b2   :  { %v3816_v12 = vunpack.c.l.b16 %v3800_v40 }
0x10b4   :  { %v3817_v39 = vrot.slane %v3816_v12, 7  ;;  %3962 = vmatpush.bf16.msrb.mxu2 %v4298_v33 }
0x10b6   :  { %v3819_v47 = vsel %vm3818_vm14, %v3817_v39, %v3815_v56 }
0x10b7   :  { %v3820_v44 = vpack.c.b16 %v3819_v47, %v3819_v47 }
0x10b8   :  { %3963 = vmatpush.bf16.msrb.mxu2 %v4294_v57 }
0x10b9   :  { %4273 = vmatmul.msk.bf16.vlgmr.msra.gmra.mxu0 %vm62_vm0, %v3820_v44 }
0x1136   :  { %v3857_v28 = vpop.f32.mrf.mxu0 }
0x1137   :  { %v3858_v53 = vadd.f32 %v4469_v3, %v3857_v28 }
0x1139   :  { %4566 = vtanh.f32 %v3858_v53 }
0x113e   :  { %v3859_v9 = vpop.f32.mrf.mxu0 }
0x113f   :  { %v4567_v43 = vpop.eup %4566 }
0x1140   :  { %v3862_v55 = vpack.c.bf16 %v4567_v43, %v4567_v43 }
0x1142   :  { %4290 = vmatmul.msk.bf16.vlgmr.msrb.gmra.mxu1 %vm62_vm0, %v3862_v55 }
0x11bf   :  { %v3911_v6 = vpop.f32.mrf.mxu1 }
0x11c0   :  { %v3912_v23 = vadd.f32 %v4470_v19, %v3911_v6 }
0x11c2   :  { %v3915_v17 = vmax.f32 %v3912_v23, 0.0 }
0x11c4   :  { %v3916_v7 = vpack.c.bf16 %v3915_v17, %v3915_v17 }
0x11c6   :  { %4307 = vmatmul.msk.bf16.vlgmr.msrb.gmra.mxu2 %vm62_vm0, %v3916_v7 }
0x11c7   :  { %v3913_v50 = vpop.f32.mrf.mxu1 }
0x1249   :  { %v3965_v26 = vpop.f32.mrf.mxu2 }
0x124a   :  { %v3966_v22 = vadd.f32 %v4471_v61, %v3965_v26 }
0x124c   :  { %3970 = vrot.lane.b32.xlu0 %v3966_v22, %s4635_s20 }
0x1251   :  { %v3967_v25 = vpop.f32.mrf.mxu2 }
0x12be   :  { %v3971_v18 = vpop.permute.xlu0 %3970 }
0x12bf   :  { %v3973_v11 = vsel %vm62_vm0, %v4567_v43, %v3971_v18 }
0x12c0   :  { %v3975_v5 = vsel %vm3974_vm15, %v3973_v11, 0.0 }
0x12c1   :  { %3976 = vst [vmem:[%s6211_s6] sm:$0x3] %v3975_v5 }
0x12c2   :  { %3981 = vsyncpa [#allocation3], 1 }
0x12c3   :  { %3982 = vsyncpa [#allocation5], 1 }

</bundles_post_ra>
